<compile_context>
chip_gen: v7x
topology: tpu7x:2x2x1
jax: 0.10.0
libtpu: 0.0.40
codegen_flags: <defaults>
</compile_context>

<pallas_src>
import numpy as np

import jax
import jax.numpy as jnp
from jax.experimental import pallas as pl
from jax.experimental.pallas import tpu as pltpu


# ---------------------------------------------------------------------------
# numerically stable elementwise helpers (EUP-friendly: exp only)
# ---------------------------------------------------------------------------
def _softplus(z):
    return jnp.maximum(z, 0.0) + jnp.log(1.0 + jnp.exp(-jnp.abs(z)))


def _sigmoid(z):
    return 1.0 / (1.0 + jnp.exp(-z))


def _pick_divisor(n, candidates, fallback):
    for c in candidates:
        if n % c == 0:
            return c
    return fallback


# ---------------------------------------------------------------------------
# Capability probe: pipeline_mode=pl.Buffered(1) (single-buffer the constant
# weight operands so they are not double-buffered in VMEM).  Falls back to the
# default (known-good) specs if the installed JAX rejects it or miscomputes.
# ---------------------------------------------------------------------------
_SINGLE_BUFFER_CONSTS = False   # set from __main__ after probing


def _probe_single_buffer_support():
    try:
        def k(c_ref, x_ref, o_ref, acc):
            acc[...] = x_ref[...] + c_ref[...]
            o_ref[...] = acc[...]

        f = pl.pallas_call(
            k,
            out_shape=jax.ShapeDtypeStruct((16, 256), jnp.float32),
            grid_spec=pltpu.PrefetchScalarGridSpec(
                num_scalar_prefetch=0,
                grid=(2, 2),
                in_specs=[
                    pl.BlockSpec((8, 128), lambda i, j: (0, 0),
                                 pipeline_mode=pl.Buffered(1)),
                    pl.BlockSpec((8, 128), lambda i, j: (i, j)),
                ],
                out_specs=pl.BlockSpec((8, 128), lambda i, j: (i, j)),
                scratch_shapes=[pltpu.VMEM((8, 128), jnp.float32)],
            ),
            compiler_params=pltpu.CompilerParams(
                dimension_semantics=("parallel", "arbitrary")),
        )
        y = f(jnp.full((8, 128), 2.0, jnp.float32),
              jnp.ones((16, 256), jnp.float32))
        jax.block_until_ready(y)
        return bool(jnp.allclose(y, 3.0))
    except Exception:
        return False


# ---------------------------------------------------------------------------
# Kernel 1: the full hConvGRU recurrence over all timesteps, grid=(N, T).
#   - state (inhibition/excitation) lives in VMEM scratch across T
#   - preproc+BN affine and the per-channel gate coefficients are fused
#   - KxK conv: per-kw masked bf16 shift buffer + per-tap accumulating matmuls
#   - readout maps accumulate in a per-sequence resident (T, HW) out block
# ---------------------------------------------------------------------------
def _make_hgru_kernel(H, W, K, C):
    HW = H * W
    P = K // 2
    S = P * W + P                        # max |flat shift| of a conv tap
    SPAD = ((S + 127) // 128) * 128      # lane-aligned halo width
    MW = HW + 2 * P * W                  # masked-shift buffer width

    # packed per-channel coefficient columns
    (I_ALPHA, I_MU, I_KAPPA, I_GAMMA, I_WMIX, I_U1B, I_U2B, I_BEFF) = range(8)

    def kernel(x_ref, wpre_ref, wi_ref, we_ref, u1_ref, u2_ref, coef_ref,
               ro_w_ref, wm_ref, ro_ref, inh_st, exc_st, pad_buf, msk_buf):
        t = pl.program_id(1)

        @pl.when(t == 0)
        def _init():
            inh_st[...] = jnp.zeros_like(inh_st)
            exc_st[...] = jnp.zeros_like(exc_st)
            # zero only the halo ring of the lane-padded conv buffer once per
            # sequence; the interior is always overwritten before being read.
            pad_buf[:, :SPAD] = jnp.zeros((C, SPAD), jnp.float32)
            pad_buf[:, SPAD + HW:] = jnp.zeros((C, SPAD), jnp.float32)

        cf = coef_ref[...]                         # (C, 8) f32

        def col(i):                                # (C, 1) -> lane-broadcast
            return cf[:, i:i + 1]

        def conv_same(src, w_ref):
            """Zero-padded 'same' KxK conv.

            Per kw: one masked, lane-shifted bf16 copy of the padded source
            (width mask hoisted out of the kh loop; the zero halo handles the
            height border), then K per-tap (C,C)x(C,HW) bf16 MXU matmuls with
            f32 accumulation, fed straight from static slices of that buffer.
            """
            pad_buf[:, SPAD:SPAD + HW] = src       # lane-aligned interior
            acc = None
            for kw in range(K):
                start = SPAD - P * W + (kw - P)
                msk_buf[...] = (pad_buf[:, start:start + MW]
                                * wm_ref[kw:kw + 1, :]).astype(jnp.bfloat16)
                for kh in range(K):
                    tap = kh * K + kw
                    d = jnp.dot(w_ref[tap],
                                msk_buf[:, kh * W:kh * W + HW],
                                preferred_element_type=jnp.float32)
                    acc = d if acc is None else acc + d
            # TODO(synk): at production (C=128, HW=8192) chunk HW so the f32
            #             accumulator tile stays within the 64-vreg file.
            return acc

        # fused preproc Conv3d(3, C, 1) + BatchNorm3d affine (stats folded on
        # the host into wpre / the I_BEFF coefficient column).
        x = jnp.dot(wpre_ref[...], x_ref[...],
                    preferred_element_type=jnp.float32) + col(I_BEFF)

        inh = inh_st[...]
        exc = exc_st[...]

        # --- inhibition stage ---
        g1 = _sigmoid(
            jnp.dot(u1_ref[...], exc, preferred_element_type=jnp.float32)
            + col(I_U1B))
        c1 = conv_same(exc * g1, wi_ref)
        inh_hat = _softplus(x - _softplus(c1 * (col(I_ALPHA) * inh + col(I_MU))))
        inh = inh + g1 * (inh_hat - inh)          # lerp form: fewer live tiles
        inh_st[...] = inh

        # --- excitation stage ---
        g2 = _sigmoid(
            jnp.dot(u2_ref[...], inh, preferred_element_type=jnp.float32)
            + col(I_U2B))
        c2 = conv_same(inh, we_ref)
        exc_hat = _softplus(col(I_KAPPA) * inh + col(I_GAMMA) * c2
                            + col(I_WMIX) * inh * c2)
        exc = exc + g2 * (exc_hat - exc)
        exc_st[...] = exc

        # readout_conv Conv2d(C, 1, 1) as a 1-row MXU matmul (no XLU sublane
        # reduction); bias is folded into the dense bias on the host.  The
        # (T, HW) output block is resident across t -> one writeback per batch.
        ro_ref[pl.ds(t, 1), :] = jnp.dot(ro_w_ref[...], exc,
                                         preferred_element_type=jnp.float32)

    return kernel, SPAD, MW


def hgru_recurrence(x_seq, w_pre, w_inh_taps, w_exc_taps, u1_w, u2_w, coeffs,
                    ro_w_row, wm_ext, *, H, W, K):
    """x_seq: (N, T, 3, H*W) raw frames -> readout maps (N, T, H*W)."""
    N, T, Cin, HW = x_seq.shape
    C = w_pre.shape[0]
    KK = w_inh_taps.shape[0]
    ncol = coeffs.shape[1]
    kernel, SPAD, MW = _make_hgru_kernel(H, W, K, C)
    assert wm_ext.shape == (K, MW)

    single_buf = _SINGLE_BUFFER_CONSTS

    def const_spec(shape):
        # Constant block index: fetched once.  Single-buffer it when supported
        # so the conv weights are not needlessly double-buffered in VMEM.
        if single_buf:
            return pl.BlockSpec(shape, lambda b, t: (0,) * len(shape),
                                pipeline_mode=pl.Buffered(1))
        return pl.BlockSpec(shape, lambda b, t: (0,) * len(shape))

    in_specs = [
        pl.BlockSpec((None, None, Cin, HW), lambda b, t: (b, t, 0, 0)),  # x
        const_spec((C, Cin)),        # fused preproc+BN weight
        const_spec((KK, C, C)),      # W_inh taps (bf16)
        const_spec((KK, C, C)),      # W_exc taps (bf16)
        const_spec((C, C)),          # U1
        const_spec((C, C)),          # U2
        const_spec((C, ncol)),       # packed per-channel coefficients
        const_spec((1, C)),          # readout conv row
        const_spec((K, MW)),         # periodic width masks (extended)
    ]
    out_specs = pl.BlockSpec((None, T, HW), lambda b, t: (b, 0, 0))
    scratch_shapes = [
        pltpu.VMEM((C, HW), jnp.float32),                 # inhibition state
        pltpu.VMEM((C, HW), jnp.float32),                 # excitation state
        pltpu.VMEM((C, 2 * SPAD + HW), jnp.float32),      # zero-halo source
        pltpu.VMEM((C, MW), jnp.bfloat16),                # masked shift buffer
    ]

    # explicit scoped-VMEM budget (review item): real footprint + headroom.
    f32, bf16 = 4, 2
    wbuf = 1 if single_buf else 2
    need = (
        2 * Cin * HW * f32                       # streamed frames (2 buffers)
        + 2 * T * HW * f32                       # resident output block
        + wbuf * (C * Cin * f32
                  + 2 * KK * C * C * bf16
                  + 2 * C * C * f32
                  + C * ncol * f32
                  + C * f32
                  + K * MW * f32)
        + 2 * C * HW * f32                       # state scratch
        + C * (2 * SPAD + HW) * f32              # pad_buf
        + C * MW * bf16)                         # masked buffer
    vmem_limit = max(32 * 1024 * 1024, int(need) + 16 * 1024 * 1024)

    return pl.pallas_call(
        kernel,
        out_shape=jax.ShapeDtypeStruct((N, T, HW), jnp.float32),
        grid_spec=pltpu.PrefetchScalarGridSpec(
            num_scalar_prefetch=0,
            grid=(N, T),
            in_specs=in_specs,
            out_specs=out_specs,
            scratch_shapes=scratch_shapes),
        compiler_params=pltpu.CompilerParams(
            dimension_semantics=("parallel", "arbitrary"),
            vmem_limit_bytes=vmem_limit),
    )(x_seq, w_pre, w_inh_taps, w_exc_taps, u1_w, u2_w, coeffs,
      ro_w_row, wm_ext)


# ---------------------------------------------------------------------------
# Kernel 2: readout_dense Linear(H*T*W, 1) -- single grid step at this size,
# tiled reduction with a VMEM accumulator for very large D.
# ---------------------------------------------------------------------------
def _dense_kernel(x_ref, w_ref, b_ref, o_ref, acc_ref):
    k = pl.program_id(0)

    @pl.when(k == 0)
    def _():
        acc_ref[...] = jnp.zeros_like(acc_ref)

    acc_ref[...] += jnp.dot(x_ref[...], w_ref[...],
                            preferred_element_type=jnp.float32)

    @pl.when(k == pl.num_programs(0) - 1)
    def _():
        o_ref[...] = acc_ref[...] + b_ref[...]


def dense_readout(x, w, b):
    N, D = x.shape
    td = D if D <= 8192 else _pick_divisor(
        D, (8192, 4096, 2048, 1024, 512, 256, 128), D)
    return pl.pallas_call(
        _dense_kernel,
        out_shape=jax.ShapeDtypeStruct((N, 1), jnp.float32),
        grid_spec=pltpu.PrefetchScalarGridSpec(
            num_scalar_prefetch=0,
            grid=(D // td,),
            in_specs=[
                pl.BlockSpec((N, td), lambda k: (0, k)),
                pl.BlockSpec((td, 1), lambda k: (k, 0)),
                pl.BlockSpec((1, 1), lambda k: (0, 0)),
            ],
            out_specs=pl.BlockSpec((N, 1), lambda k: (0, 0)),
            scratch_shapes=[pltpu.VMEM((N, 1), jnp.float32)],
        ),
        compiler_params=pltpu.CompilerParams(dimension_semantics=("arbitrary",)),
    )(x, w, b)


# ---------------------------------------------------------------------------
# Parameters (deterministic, synthetic)
# ---------------------------------------------------------------------------
def init_params(key, C, K, D):
    ks = jax.random.split(key, 10)

    def nrm(k, shape, s=0.1):
        return jax.random.normal(k, shape, jnp.float32) * s

    return dict(
        preproc_w=nrm(ks[0], (C, 3)),
        preproc_b=nrm(ks[1], (C,)),
        bn_gamma=jnp.ones((C,), jnp.float32),
        bn_beta=jnp.zeros((C,), jnp.float32),
        w_inh=nrm(ks[2], (K, K, C, C), 0.05),   # (kh, kw, c_in, c_out)
        w_exc=nrm(ks[3], (K, K, C, C), 0.05),
        u1_w=nrm(ks[4], (C, C)),                # (c_out, c_in)
        u1_b=nrm(ks[5], (C,)),
        u2_w=nrm(ks[6], (C, C)),
        u2_b=nrm(ks[7], (C,)),
        alpha=jnp.full((C,), 0.1, jnp.float32),
        mu=jnp.full((C,), 1.0, jnp.float32),
        kappa=jnp.full((C,), 0.5, jnp.float32),
        gamma=jnp.full((C,), 1.0, jnp.float32),
        w_mix=jnp.full((C,), 0.5, jnp.float32),
        ro_w=nrm(ks[8], (C,)),
        ro_b=jnp.zeros((), jnp.float32),
        dense_w=nrm(ks[9], (D, 1), 0.01),
        dense_b=jnp.zeros((1, 1), jnp.float32),
    )


# ---------------------------------------------------------------------------
# Full ClockHGRU forward
# ---------------------------------------------------------------------------
@jax.jit
def clock_hgru_forward(x_ncthw, params):
    N, Cin, T, H, W = x_ncthw.shape
    C = params["preproc_w"].shape[0]
    K = params["w_inh"].shape[0]
    HW = H * W
    P = K // 2

    # ---- preproc Conv3d(3,C,1) + BatchNorm3d (training batch stats, eps=1e-3)
    # folded into one per-frame affine map.  Exact: y = W x + b is affine in x,
    # so per-channel mean/var of y follow from mean(x) and Cov(x) (3x3).
    Wp, bp = params["preproc_w"], params["preproc_b"]
    xs = jnp.transpose(x_ncthw, (1, 0, 2, 3, 4)).reshape(Cin, -1)
    mean_x = jnp.mean(xs, axis=1)
    xc = xs - mean_x[:, None]
    cov_x = (xc @ xc.T) / xs.shape[1]                         # biased
    mean_y = Wp @ mean_x + bp
    var_y = jnp.einsum("ci,ij,cj->c", Wp, cov_x, Wp)
    bn_scale = params["bn_gamma"] * jax.lax.rsqrt(var_y + 1e-3)
    bn_off = params["bn_beta"] - mean_y * bn_scale
    w_eff = bn_scale[:, None] * Wp                            # (C, 3)
    b_eff = bn_scale * bp + bn_off                            # (C,)

    # packed per-channel coefficients: one small constant-index operand.
    coeffs = jnp.stack(
        [params["alpha"], params["mu"], params["kappa"], params["gamma"],
         params["w_mix"], params["u1_b"], params["u2_b"], b_eff], axis=1)

    # spatial conv weights as per-tap (c_out, c_in) blocks in bf16 (MXU path).
    # NOTE: bf16 conv weights/operands introduce ~1e-2 relative error vs the
    # f32 PyTorch reference in c1/c2 before the nonlinear gates.
    def conv_taps(w):
        return jnp.transpose(w, (0, 1, 3, 2)).reshape(
            K * K, C, C).astype(jnp.bfloat16)

    # periodic width-border masks over the extended (HW + 2*P*W) window; the
    # height border is handled by the zero halo of the padded source buffer.
    MW = HW + 2 * P * W
    colpos = np.arange(MW) % W
    wm_ext = np.stack(
        [((colpos + (kw - P) >= 0) & (colpos + (kw - P) < W))
         for kw in range(K)]).astype(np.float32)              # (K, MW)

    # NCDHW -> (N, T, 3, H*W): channels on sublanes, flattened space on lanes.
    x_seq = jnp.transpose(x_ncthw, (0, 2, 1, 3, 4)).reshape(N, T, Cin, HW)

    ro = hgru_recurrence(
        x_seq, w_eff, conv_taps(params["w_inh"]), conv_taps(params["w_exc"]),
        params["u1_w"], params["u2_w"], coeffs,
        params["ro_w"].reshape(1, C), jnp.asarray(wm_ext),
        H=H, W=W, K=K)                                        # (N, T, HW)

    # torch.cat(states, -1).reshape(N, -1): flat index = h*(T*W) + t*W + w.
    # TODO(synk): this flattening order is inferred from the cat/reshape; it
    #             only affects how dense_w is indexed.
    flat = jnp.transpose(ro.reshape(N, T, H, W), (0, 2, 1, 3)).reshape(
        N, H * T * W)

    # readout_conv bias folded into the dense bias (exact for the returned
    # output since every flattened element gets +ro_b):
    #   sum_d w_d*(m_d + ro_b) + b = sum_d w_d*m_d + (b + ro_b*sum_d w_d)
    dense_b_eff = params["dense_b"] + params["ro_b"] * jnp.sum(params["dense_w"])
    output = dense_readout(flat, params["dense_w"], dense_b_eff)  # (N, 1)

    jv_penalty = jnp.ones((1,), jnp.float32)
    return output, jv_penalty


# ---------------------------------------------------------------------------
if __name__ == "__main__":
    _SINGLE_BUFFER_CONSTS = _probe_single_buffer_support()

    key = jax.random.PRNGKey(0)
    N, Cin, T, H, W = 2, 3, 8, 16, 16   # small demo shapes
    C = 8                               # hgru_size ("dimensions")
    K = 5                               # spatial kernel (module default is 15)
    D = H * T * W                       # analog of the 65536-wide readout_dense

    kx, kp = jax.random.split(key)
    x = jax.random.normal(kx, (N, Cin, T, H, W), jnp.float32)
    params = init_params(kp, C, K, D)

    out, jv = clock_hgru_forward(x, params)
    jax.block_until_ready(out)
    assert out.shape == (N, 1) and jv.shape == (1,)
    print("KERNEL_OK")
</pallas_src>

<mosaic_0001>
module attributes {stable_mosaic.version = 11 : i64} {
  func.func @k(%arg0: i32, %arg1: i32, %arg2: memref<8x128xf32, #tpu.memory_space<vmem>>, %arg3: memref<8x128xf32, #tpu.memory_space<vmem>>, %arg4: memref<8x128xf32, #tpu.memory_space<vmem>>, %arg5: memref<8x128xf32, #tpu.memory_space<vmem>>) attributes {dimension_semantics = [#tpu.dimension_semantics<parallel>, #tpu.dimension_semantics<arbitrary>], iteration_bounds = array<i64: 2, 2>, scalar_prefetch = 0 : i64, scratch_operands = 1 : i64, tpu.core_type = #tpu.core_type<tc>, window_params = [{pipeline_mode = #tpu.pipeline_mode<synchronous>, transform_indices = @transform_0, window_bounds = array<i64: 8, 128>}, {transform_indices = @transform_1, window_bounds = array<i64: 8, 128>}, {transform_indices = @transform_2, window_bounds = array<i64: 8, 128>}]} {
    %c0 = arith.constant 0 : index
    %c0_0 = arith.constant 0 : index
    %0 = vector.load %arg3[%c0, %c0_0] : memref<8x128xf32, #tpu.memory_space<vmem>>, vector<8x128xf32>
    %c0_1 = arith.constant 0 : index
    %c0_2 = arith.constant 0 : index
    %1 = vector.load %arg2[%c0_1, %c0_2] : memref<8x128xf32, #tpu.memory_space<vmem>>, vector<8x128xf32>
    %2 = arith.addf %0, %1 : vector<8x128xf32>
    %c0_3 = arith.constant 0 : index
    %c0_4 = arith.constant 0 : index
    %3 = vector.load %arg5[%c0_3, %c0_4] : memref<8x128xf32, #tpu.memory_space<vmem>>, vector<8x128xf32>
    tpu.vector_store %arg5[%c0_3, %c0_4], %2 {strides = array<i32>} : memref<8x128xf32, #tpu.memory_space<vmem>>, vector<8x128xf32>,
    %c0_5 = arith.constant 0 : index
    %c0_6 = arith.constant 0 : index
    %4 = vector.load %arg5[%c0_5, %c0_6] : memref<8x128xf32, #tpu.memory_space<vmem>>, vector<8x128xf32>
    %c0_7 = arith.constant 0 : index
    %c0_8 = arith.constant 0 : index
    %5 = vector.load %arg4[%c0_7, %c0_8] : memref<8x128xf32, #tpu.memory_space<vmem>>, vector<8x128xf32>
    tpu.vector_store %arg4[%c0_7, %c0_8], %4 {strides = array<i32>} : memref<8x128xf32, #tpu.memory_space<vmem>>, vector<8x128xf32>,
    return
  }
  func.func @transform_0(%arg0: i32, %arg1: i32) -> (i32, i32) {
    %c0_i32 = arith.constant 0 : i32
    %c0_i32_0 = arith.constant 0 : i32
    %c0_i32_1 = arith.constant 0 : i32
    return %c0_i32, %c0_i32_0 : i32, i32
  }
  func.func @transform_1(%arg0: i32, %arg1: i32) -> (i32, i32) {
    %c0_i32 = arith.constant 0 : i32
    return %arg0, %arg1 : i32, i32
  }
  func.func @transform_2(%arg0: i32, %arg1: i32) -> (i32, i32) {
    %c0_i32 = arith.constant 0 : i32
    return %arg0, %arg1 : i32, i32
  }
}

module attributes {stable_mosaic.version = 11 : i64} {
  func.func @kernel(%arg0: i32, %arg1: i32, %arg2: memref<1x1x3x256xf32, #tpu.memory_space<vmem>>, %arg3: memref<8x3xf32, #tpu.memory_space<vmem>>, %arg4: memref<25x8x8xbf16, #tpu.memory_space<vmem>>, %arg5: memref<25x8x8xbf16, #tpu.memory_space<vmem>>, %arg6: memref<8x8xf32, #tpu.memory_space<vmem>>, %arg7: memref<8x8xf32, #tpu.memory_space<vmem>>, %arg8: memref<8x8xf32, #tpu.memory_space<vmem>>, %arg9: memref<1x8xf32, #tpu.memory_space<vmem>>, %arg10: memref<5x320xf32, #tpu.memory_space<vmem>>, %arg11: memref<1x8x256xf32, #tpu.memory_space<vmem>>, %arg12: memref<8x256xf32, #tpu.memory_space<vmem>>, %arg13: memref<8x256xf32, #tpu.memory_space<vmem>>, %arg14: memref<8x512xf32, #tpu.memory_space<vmem>>, %arg15: memref<8x320xbf16, #tpu.memory_space<vmem>>) attributes {dimension_semantics = [#tpu.dimension_semantics<parallel>, #tpu.dimension_semantics<arbitrary>], iteration_bounds = array<i64: 2, 8>, scalar_prefetch = 0 : i64, scratch_operands = 4 : i64, tpu.core_type = #tpu.core_type<tc>, window_params = [{transform_indices = @transform_0, window_bounds = array<i64: 1, 1, 3, 256>}, {pipeline_mode = #tpu.pipeline_mode<synchronous>, transform_indices = @transform_1, window_bounds = array<i64: 8, 3>}, {pipeline_mode = #tpu.pipeline_mode<synchronous>, transform_indices = @transform_2, window_bounds = array<i64: 25, 8, 8>}, {pipeline_mode = #tpu.pipeline_mode<synchronous>, transform_indices = @transform_3, window_bounds = array<i64: 25, 8, 8>}, {pipeline_mode = #tpu.pipeline_mode<synchronous>, transform_indices = @transform_4, window_bounds = array<i64: 8, 8>}, {pipeline_mode = #tpu.pipeline_mode<synchronous>, transform_indices = @transform_5, window_bounds = array<i64: 8, 8>}, {pipeline_mode = #tpu.pipeline_mode<synchronous>, transform_indices = @transform_6, window_bounds = array<i64: 8, 8>}, {pipeline_mode = #tpu.pipeline_mode<synchronous>, transform_indices = @transform_7, window_bounds = array<i64: 1, 8>}, {pipeline_mode = #tpu.pipeline_mode<synchronous>, transform_indices = @transform_8, window_bounds = array<i64: 5, 320>}, {transform_indices = @transform_9, window_bounds = array<i64: 1, 8, 256>}]} {
    %c0_i32 = arith.constant 0 : i32
    %0 = arith.cmpi eq, %arg1, %c0_i32 : i32
    %1 = arith.extui %0 : i1 to i32
    %c0_i32_0 = arith.constant 0 : i32
    %2 = arith.cmpi ne, %1, %c0_i32_0 : i32
    scf.if %2 {
      %cst_373 = arith.constant 0.000000e+00 : f32
      %412 = vector.broadcast %cst_373 : f32 to vector<8x256xf32>
      %c0_374 = arith.constant 0 : index
      %c0_375 = arith.constant 0 : index
      %413 = vector.load %arg12[%c0_374, %c0_375] : memref<8x256xf32, #tpu.memory_space<vmem>>, vector<8x256xf32>
      tpu.vector_store %arg12[%c0_374, %c0_375], %412 {strides = array<i32>} : memref<8x256xf32, #tpu.memory_space<vmem>>, vector<8x256xf32>,
      %cst_376 = arith.constant 0.000000e+00 : f32
      %414 = vector.broadcast %cst_376 : f32 to vector<8x256xf32>
      %c0_377 = arith.constant 0 : index
      %c0_378 = arith.constant 0 : index
      %415 = vector.load %arg13[%c0_377, %c0_378] : memref<8x256xf32, #tpu.memory_space<vmem>>, vector<8x256xf32>
      tpu.vector_store %arg13[%c0_377, %c0_378], %414 {strides = array<i32>} : memref<8x256xf32, #tpu.memory_space<vmem>>, vector<8x256xf32>,
      %cst_379 = arith.constant 0.000000e+00 : f32
      %416 = vector.broadcast %cst_379 : f32 to vector<8x128xf32>
      %c0_380 = arith.constant 0 : index
      %c0_381 = arith.constant 0 : index
      %417 = vector.load %arg14[%c0_380, %c0_381] : memref<8x512xf32, #tpu.memory_space<vmem>>, vector<8x128xf32>
      tpu.vector_store %arg14[%c0_380, %c0_381], %416 {strides = array<i32>} : memref<8x512xf32, #tpu.memory_space<vmem>>, vector<8x128xf32>,
      %cst_382 = arith.constant 0.000000e+00 : f32
      %418 = vector.broadcast %cst_382 : f32 to vector<8x128xf32>
      %c0_383 = arith.constant 0 : index
      %c384 = arith.constant 384 : index
      %419 = vector.load %arg14[%c0_383, %c384] : memref<8x512xf32, #tpu.memory_space<vmem>>, vector<8x128xf32>
      tpu.vector_store %arg14[%c0_383, %c384], %418 {strides = array<i32>} : memref<8x512xf32, #tpu.memory_space<vmem>>, vector<8x128xf32>,
    } else {
    }
    %c0 = arith.constant 0 : index
    %c0_1 = arith.constant 0 : index
    %3 = vector.load %arg8[%c0, %c0_1] : memref<8x8xf32, #tpu.memory_space<vmem>>, vector<8x8xf32>
    %c0_2 = arith.constant 0 : index
    %c0_3 = arith.constant 0 : index
    %4 = vector.load %arg3[%c0_2, %c0_3] : memref<8x3xf32, #tpu.memory_space<vmem>>, vector<8x3xf32>
    %c0_4 = arith.constant 0 : index
    %c0_5 = arith.constant 0 : index
    %c0_6 = arith.constant 0 : index
    %c0_7 = arith.constant 0 : index
    %5 = vector.load %arg2[%c0_4, %c0_5, %c0_6, %c0_7] : memref<1x1x3x256xf32, #tpu.memory_space<vmem>>, vector<1x1x3x256xf32>
    %6 = vector.shape_cast %5 : vector<1x1x3x256xf32> to vector<3x256xf32>
    %cst = arith.constant dense<0.000000e+00> : vector<8x256xf32>
    %7 = tpu.matmul %4, %6, %cst {dimension_numbers = #tpu.dot_dimension_numbers<[1], [0], [0], [1], [0, 0, 1, 1], [], []>} : vector<8x3xf32>, vector<3x256xf32>, vector<8x256xf32> -> vector<8x256xf32>
    %8 = vector.extract_strided_slice %3 {offsets = [0, 7], sizes = [8, 1], strides = [1, 1]} : vector<8x8xf32> to vector<8x1xf32>
    %9 = vector.broadcast %8 : vector<8x1xf32> to vector<8x256xf32>
    %10 = arith.addf %7, %9 : vector<8x256xf32>
    %c0_8 = arith.constant 0 : index
    %c0_9 = arith.constant 0 : index
    %11 = vector.load %arg12[%c0_8, %c0_9] : memref<8x256xf32, #tpu.memory_space<vmem>>, vector<8x256xf32>
    %c0_10 = arith.constant 0 : index
    %c0_11 = arith.constant 0 : index
    %12 = vector.load %arg13[%c0_10, %c0_11] : memref<8x256xf32, #tpu.memory_space<vmem>>, vector<8x256xf32>
    %c0_12 = arith.constant 0 : index
    %c0_13 = arith.constant 0 : index
    %13 = vector.load %arg6[%c0_12, %c0_13] : memref<8x8xf32, #tpu.memory_space<vmem>>, vector<8x8xf32>
    %cst_14 = arith.constant dense<0.000000e+00> : vector<8x256xf32>
    %14 = tpu.matmul %13, %12, %cst_14 {dimension_numbers = #tpu.dot_dimension_numbers<[1], [0], [0], [1], [0, 0, 1, 1], [], []>} : vector<8x8xf32>, vector<8x256xf32>, vector<8x256xf32> -> vector<8x256xf32>
    %15 = vector.extract_strided_slice %3 {offsets = [0, 5], sizes = [8, 1], strides = [1, 1]} : vector<8x8xf32> to vector<8x1xf32>
    %16 = vector.broadcast %15 : vector<8x1xf32> to vector<8x256xf32>
    %17 = arith.addf %14, %16 : vector<8x256xf32>
    %cst_15 = arith.constant 0.000000e+00 : f32
    %18 = vector.broadcast %cst_15 : f32 to vector<8x256xf32>
    %19 = arith.subf %18, %17 : vector<8x256xf32>
    %20 = math.exp %19 : vector<8x256xf32>
    %cst_16 = arith.constant 1.000000e+00 : f32
    %21 = vector.broadcast %cst_16 : f32 to vector<8x256xf32>
    %22 = arith.addf %21, %20 : vector<8x256xf32>
    %cst_17 = arith.constant 1.000000e+00 : f32
    %23 = vector.broadcast %cst_17 : f32 to vector<8x256xf32>
    %24 = arith.divf %23, %22 : vector<8x256xf32>
    %25 = arith.mulf %12, %24 : vector<8x256xf32>
    %c0_18 = arith.constant 0 : index
    %c128 = arith.constant 128 : index
    %26 = vector.load %arg14[%c0_18, %c128] : memref<8x512xf32, #tpu.memory_space<vmem>>, vector<8x256xf32>
    tpu.vector_store %arg14[%c0_18, %c128], %25 {strides = array<i32>} : memref<8x512xf32, #tpu.memory_space<vmem>>, vector<8x256xf32>,
    %c0_19 = arith.constant 0 : index
    %c94 = arith.constant 94 : index
    %27 = vector.load %arg14[%c0_19, %c94] : memref<8x512xf32, #tpu.memory_space<vmem>>, vector<8x320xf32>
    %c0_20 = arith.constant 0 : index
    %c0_21 = arith.constant 0 : index
    %28 = vector.load %arg10[%c0_20, %c0_21] : memref<5x320xf32, #tpu.memory_space<vmem>>, vector<1x320xf32>
    %29 = vector.broadcast %28 : vector<1x320xf32> to vector<8x320xf32>
    %30 = arith.mulf %27, %29 : vector<8x320xf32>
    %31 = arith.truncf %30 : vector<8x320xf32> to vector<8x320xbf16>
    %c0_22 = arith.constant 0 : index
    %c0_23 = arith.constant 0 : index
    %32 = vector.load %arg15[%c0_22, %c0_23] : memref<8x320xbf16, #tpu.memory_space<vmem>>, vector<8x320xbf16>
    tpu.vector_store %arg15[%c0_22, %c0_23], %31 {strides = array<i32>} : memref<8x320xbf16, #tpu.memory_space<vmem>>, vector<8x320xbf16>,
    %c0_24 = arith.constant 0 : index
    %c0_25 = arith.constant 0 : index
    %c0_26 = arith.constant 0 : index
    %33 = vector.load %arg4[%c0_24, %c0_25, %c0_26] : memref<25x8x8xbf16, #tpu.memory_space<vmem>>, vector<1x8x8xbf16>
    %34 = vector.shape_cast %33 : vector<1x8x8xbf16> to vector<8x8xbf16>
    %c0_27 = arith.constant 0 : index
    %c0_28 = arith.constant 0 : index
    %35 = vector.load %arg15[%c0_27, %c0_28] : memref<8x320xbf16, #tpu.memory_space<vmem>>, vector<8x256xbf16>
    %cst_29 = arith.constant dense<0.000000e+00> : vector<8x256xf32>
    %36 = tpu.matmul %34, %35, %cst_29 {dimension_numbers = #tpu.dot_dimension_numbers<[1], [0], [0], [1], [0, 0, 1, 1], [], []>} : vector<8x8xbf16>, vector<8x256xbf16>, vector<8x256xf32> -> vector<8x256xf32>
    %c5 = arith.constant 5 : index
    %c0_30 = arith.constant 0 : index
    %c0_31 = arith.constant 0 : index
    %37 = vector.load %arg4[%c5, %c0_30, %c0_31] : memref<25x8x8xbf16, #tpu.memory_space<vmem>>, vector<1x8x8xbf16>
    %38 = vector.shape_cast %37 : vector<1x8x8xbf16> to vector<8x8xbf16>
    %c0_32 = arith.constant 0 : index
    %c16 = arith.constant 16 : index
    %39 = vector.load %arg15[%c0_32, %c16] : memref<8x320xbf16, #tpu.memory_space<vmem>>, vector<8x256xbf16>
    %cst_33 = arith.constant dense<0.000000e+00> : vector<8x256xf32>
    %40 = tpu.matmul %38, %39, %cst_33 {dimension_numbers = #tpu.dot_dimension_numbers<[1], [0], [0], [1], [0, 0, 1, 1], [], []>} : vector<8x8xbf16>, vector<8x256xbf16>, vector<8x256xf32> -> vector<8x256xf32>
    %41 = arith.addf %36, %40 : vector<8x256xf32>
    %c10 = arith.constant 10 : index
    %c0_34 = arith.constant 0 : index
    %c0_35 = arith.constant 0 : index
    %42 = vector.load %arg4[%c10, %c0_34, %c0_35] : memref<25x8x8xbf16, #tpu.memory_space<vmem>>, vector<1x8x8xbf16>
    %43 = vector.shape_cast %42 : vector<1x8x8xbf16> to vector<8x8xbf16>
    %c0_36 = arith.constant 0 : index
    %c32 = arith.constant 32 : index
    %44 = vector.load %arg15[%c0_36, %c32] : memref<8x320xbf16, #tpu.memory_space<vmem>>, vector<8x256xbf16>
    %cst_37 = arith.constant dense<0.000000e+00> : vector<8x256xf32>
    %45 = tpu.matmul %43, %44, %cst_37 {dimension_numbers = #tpu.dot_dimension_numbers<[1], [0], [0], [1], [0, 0, 1, 1], [], []>} : vector<8x8xbf16>, vector<8x256xbf16>, vector<8x256xf32> -> vector<8x256xf32>
    %46 = arith.addf %41, %45 : vector<8x256xf32>
    %c15 = arith.constant 15 : index
    %c0_38 = arith.constant 0 : index
    %c0_39 = arith.constant 0 : index
    %47 = vector.load %arg4[%c15, %c0_38, %c0_39] : memref<25x8x8xbf16, #tpu.memory_space<vmem>>, vector<1x8x8xbf16>
    %48 = vector.shape_cast %47 : vector<1x8x8xbf16> to vector<8x8xbf16>
    %c0_40 = arith.constant 0 : index
    %c48 = arith.constant 48 : index
    %49 = vector.load %arg15[%c0_40, %c48] : memref<8x320xbf16, #tpu.memory_space<vmem>>, vector<8x256xbf16>
    %cst_41 = arith.constant dense<0.000000e+00> : vector<8x256xf32>
    %50 = tpu.matmul %48, %49, %cst_41 {dimension_numbers = #tpu.dot_dimension_numbers<[1], [0], [0], [1], [0, 0, 1, 1], [], []>} : vector<8x8xbf16>, vector<8x256xbf16>, vector<8x256xf32> -> vector<8x256xf32>
    %51 = arith.addf %46, %50 : vector<8x256xf32>
    %c20 = arith.constant 20 : index
    %c0_42 = arith.constant 0 : index
    %c0_43 = arith.constant 0 : index
    %52 = vector.load %arg4[%c20, %c0_42, %c0_43] : memref<25x8x8xbf16, #tpu.memory_space<vmem>>, vector<1x8x8xbf16>
    %53 = vector.shape_cast %52 : vector<1x8x8xbf16> to vector<8x8xbf16>
    %c0_44 = arith.constant 0 : index
    %c64 = arith.constant 64 : index
    %54 = vector.load %arg15[%c0_44, %c64] : memref<8x320xbf16, #tpu.memory_space<vmem>>, vector<8x256xbf16>
    %cst_45 = arith.constant dense<0.000000e+00> : vector<8x256xf32>
    %55 = tpu.matmul %53, %54, %cst_45 {dimension_numbers = #tpu.dot_dimension_numbers<[1], [0], [0], [1], [0, 0, 1, 1], [], []>} : vector<8x8xbf16>, vector<8x256xbf16>, vector<8x256xf32> -> vector<8x256xf32>
    %56 = arith.addf %51, %55 : vector<8x256xf32>
    %c0_46 = arith.constant 0 : index
    %c95 = arith.constant 95 : index
    %57 = vector.load %arg14[%c0_46, %c95] : memref<8x512xf32, #tpu.memory_space<vmem>>, vector<8x320xf32>
    %c1 = arith.constant 1 : index
    %c0_47 = arith.constant 0 : index
    %58 = vector.load %arg10[%c1, %c0_47] : memref<5x320xf32, #tpu.memory_space<vmem>>, vector<1x320xf32>
    %59 = vector.broadcast %58 : vector<1x320xf32> to vector<8x320xf32>
    %60 = arith.mulf %57, %59 : vector<8x320xf32>
    %61 = arith.truncf %60 : vector<8x320xf32> to vector<8x320xbf16>
    %c0_48 = arith.constant 0 : index
    %c0_49 = arith.constant 0 : index
    %62 = vector.load %arg15[%c0_48, %c0_49] : memref<8x320xbf16, #tpu.memory_space<vmem>>, vector<8x320xbf16>
    tpu.vector_store %arg15[%c0_48, %c0_49], %61 {strides = array<i32>} : memref<8x320xbf16, #tpu.memory_space<vmem>>, vector<8x320xbf16>,
    %c1_50 = arith.constant 1 : index
    %c0_51 = arith.constant 0 : index
    %c0_52 = arith.constant 0 : index
    %63 = vector.load %arg4[%c1_50, %c0_51, %c0_52] : memref<25x8x8xbf16, #tpu.memory_space<vmem>>, vector<1x8x8xbf16>
    %64 = vector.shape_cast %63 : vector<1x8x8xbf16> to vector<8x8xbf16>
    %c0_53 = arith.constant 0 : index
    %c0_54 = arith.constant 0 : index
    %65 = vector.load %arg15[%c0_53, %c0_54] : memref<8x320xbf16, #tpu.memory_space<vmem>>, vector<8x256xbf16>
    %cst_55 = arith.constant dense<0.000000e+00> : vector<8x256xf32>
    %66 = tpu.matmul %64, %65, %cst_55 {dimension_numbers = #tpu.dot_dimension_numbers<[1], [0], [0], [1], [0, 0, 1, 1], [], []>} : vector<8x8xbf16>, vector<8x256xbf16>, vector<8x256xf32> -> vector<8x256xf32>
    %67 = arith.addf %56, %66 : vector<8x256xf32>
    %c6 = arith.constant 6 : index
    %c0_56 = arith.constant 0 : index
    %c0_57 = arith.constant 0 : index
    %68 = vector.load %arg4[%c6, %c0_56, %c0_57] : memref<25x8x8xbf16, #tpu.memory_space<vmem>>, vector<1x8x8xbf16>
    %69 = vector.shape_cast %68 : vector<1x8x8xbf16> to vector<8x8xbf16>
    %c0_58 = arith.constant 0 : index
    %c16_59 = arith.constant 16 : index
    %70 = vector.load %arg15[%c0_58, %c16_59] : memref<8x320xbf16, #tpu.memory_space<vmem>>, vector<8x256xbf16>
    %cst_60 = arith.constant dense<0.000000e+00> : vector<8x256xf32>
    %71 = tpu.matmul %69, %70, %cst_60 {dimension_numbers = #tpu.dot_dimension_numbers<[1], [0], [0], [1], [0, 0, 1, 1], [], []>} : vector<8x8xbf16>, vector<8x256xbf16>, vector<8x256xf32> -> vector<8x256xf32>
    %72 = arith.addf %67, %71 : vector<8x256xf32>
    %c11 = arith.constant 11 : index
    %c0_61 = arith.constant 0 : index
    %c0_62 = arith.constant 0 : index
    %73 = vector.load %arg4[%c11, %c0_61, %c0_62] : memref<25x8x8xbf16, #tpu.memory_space<vmem>>, vector<1x8x8xbf16>
    %74 = vector.shape_cast %73 : vector<1x8x8xbf16> to vector<8x8xbf16>
    %c0_63 = arith.constant 0 : index
    %c32_64 = arith.constant 32 : index
    %75 = vector.load %arg15[%c0_63, %c32_64] : memref<8x320xbf16, #tpu.memory_space<vmem>>, vector<8x256xbf16>
    %cst_65 = arith.constant dense<0.000000e+00> : vector<8x256xf32>
    %76 = tpu.matmul %74, %75, %cst_65 {dimension_numbers = #tpu.dot_dimension_numbers<[1], [0], [0], [1], [0, 0, 1, 1], [], []>} : vector<8x8xbf16>, vector<8x256xbf16>, vector<8x256xf32> -> vector<8x256xf32>
    %77 = arith.addf %72, %76 : vector<8x256xf32>
    %c16_66 = arith.constant 16 : index
    %c0_67 = arith.constant 0 : index
    %c0_68 = arith.constant 0 : index
    %78 = vector.load %arg4[%c16_66, %c0_67, %c0_68] : memref<25x8x8xbf16, #tpu.memory_space<vmem>>, vector<1x8x8xbf16>
    %79 = vector.shape_cast %78 : vector<1x8x8xbf16> to vector<8x8xbf16>
    %c0_69 = arith.constant 0 : index
    %c48_70 = arith.constant 48 : index
    %80 = vector.load %arg15[%c0_69, %c48_70] : memref<8x320xbf16, #tpu.memory_space<vmem>>, vector<8x256xbf16>
    %cst_71 = arith.constant dense<0.000000e+00> : vector<8x256xf32>
    %81 = tpu.matmul %79, %80, %cst_71 {dimension_numbers = #tpu.dot_dimension_numbers<[1], [0], [0], [1], [0, 0, 1, 1], [], []>} : vector<8x8xbf16>, vector<8x256xbf16>, vector<8x256xf32> -> vector<8x256xf32>
    %82 = arith.addf %77, %81 : vector<8x256xf32>
    %c21 = arith.constant 21 : index
    %c0_72 = arith.constant 0 : index
    %c0_73 = arith.constant 0 : index
    %83 = vector.load %arg4[%c21, %c0_72, %c0_73] : memref<25x8x8xbf16, #tpu.memory_space<vmem>>, vector<1x8x8xbf16>
    %84 = vector.shape_cast %83 : vector<1x8x8xbf16> to vector<8x8xbf16>
    %c0_74 = arith.constant 0 : index
    %c64_75 = arith.constant 64 : index
    %85 = vector.load %arg15[%c0_74, %c64_75] : memref<8x320xbf16, #tpu.memory_space<vmem>>, vector<8x256xbf16>
    %cst_76 = arith.constant dense<0.000000e+00> : vector<8x256xf32>
    %86 = tpu.matmul %84, %85, %cst_76 {dimension_numbers = #tpu.dot_dimension_numbers<[1], [0], [0], [1], [0, 0, 1, 1], [], []>} : vector<8x8xbf16>, vector<8x256xbf16>, vector<8x256xf32> -> vector<8x256xf32>
    %87 = arith.addf %82, %86 : vector<8x256xf32>
    %c0_77 = arith.constant 0 : index
    %c96 = arith.constant 96 : index
    %88 = vector.load %arg14[%c0_77, %c96] : memref<8x512xf32, #tpu.memory_space<vmem>>, vector<8x320xf32>
    %c2 = arith.constant 2 : index
    %c0_78 = arith.constant 0 : index
    %89 = vector.load %arg10[%c2, %c0_78] : memref<5x320xf32, #tpu.memory_space<vmem>>, vector<1x320xf32>
    %90 = vector.broadcast %89 : vector<1x320xf32> to vector<8x320xf32>
    %91 = arith.mulf %88, %90 : vector<8x320xf32>
    %92 = arith.truncf %91 : vector<8x320xf32> to vector<8x320xbf16>
    %c0_79 = arith.constant 0 : index
    %c0_80 = arith.constant 0 : index
    %93 = vector.load %arg15[%c0_79, %c0_80] : memref<8x320xbf16, #tpu.memory_space<vmem>>, vector<8x320xbf16>
    tpu.vector_store %arg15[%c0_79, %c0_80], %92 {strides = array<i32>} : memref<8x320xbf16, #tpu.memory_space<vmem>>, vector<8x320xbf16>,
    %c2_81 = arith.constant 2 : index
    %c0_82 = arith.constant 0 : index
    %c0_83 = arith.constant 0 : index
    %94 = vector.load %arg4[%c2_81, %c0_82, %c0_83] : memref<25x8x8xbf16, #tpu.memory_space<vmem>>, vector<1x8x8xbf16>
    %95 = vector.shape_cast %94 : vector<1x8x8xbf16> to vector<8x8xbf16>
    %c0_84 = arith.constant 0 : index
    %c0_85 = arith.constant 0 : index
    %96 = vector.load %arg15[%c0_84, %c0_85] : memref<8x320xbf16, #tpu.memory_space<vmem>>, vector<8x256xbf16>
    %cst_86 = arith.constant dense<0.000000e+00> : vector<8x256xf32>
    %97 = tpu.matmul %95, %96, %cst_86 {dimension_numbers = #tpu.dot_dimension_numbers<[1], [0], [0], [1], [0, 0, 1, 1], [], []>} : vector<8x8xbf16>, vector<8x256xbf16>, vector<8x256xf32> -> vector<8x256xf32>
    %98 = arith.addf %87, %97 : vector<8x256xf32>
    %c7 = arith.constant 7 : index
    %c0_87 = arith.constant 0 : index
    %c0_88 = arith.constant 0 : index
    %99 = vector.load %arg4[%c7, %c0_87, %c0_88] : memref<25x8x8xbf16, #tpu.memory_space<vmem>>, vector<1x8x8xbf16>
    %100 = vector.shape_cast %99 : vector<1x8x8xbf16> to vector<8x8xbf16>
    %c0_89 = arith.constant 0 : index
    %c16_90 = arith.constant 16 : index
    %101 = vector.load %arg15[%c0_89, %c16_90] : memref<8x320xbf16, #tpu.memory_space<vmem>>, vector<8x256xbf16>
    %cst_91 = arith.constant dense<0.000000e+00> : vector<8x256xf32>
    %102 = tpu.matmul %100, %101, %cst_91 {dimension_numbers = #tpu.dot_dimension_numbers<[1], [0], [0], [1], [0, 0, 1, 1], [], []>} : vector<8x8xbf16>, vector<8x256xbf16>, vector<8x256xf32> -> vector<8x256xf32>
    %103 = arith.addf %98, %102 : vector<8x256xf32>
    %c12 = arith.constant 12 : index
    %c0_92 = arith.constant 0 : index
    %c0_93 = arith.constant 0 : index
    %104 = vector.load %arg4[%c12, %c0_92, %c0_93] : memref<25x8x8xbf16, #tpu.memory_space<vmem>>, vector<1x8x8xbf16>
    %105 = vector.shape_cast %104 : vector<1x8x8xbf16> to vector<8x8xbf16>
    %c0_94 = arith.constant 0 : index
    %c32_95 = arith.constant 32 : index
    %106 = vector.load %arg15[%c0_94, %c32_95] : memref<8x320xbf16, #tpu.memory_space<vmem>>, vector<8x256xbf16>
    %cst_96 = arith.constant dense<0.000000e+00> : vector<8x256xf32>
    %107 = tpu.matmul %105, %106, %cst_96 {dimension_numbers = #tpu.dot_dimension_numbers<[1], [0], [0], [1], [0, 0, 1, 1], [], []>} : vector<8x8xbf16>, vector<8x256xbf16>, vector<8x256xf32> -> vector<8x256xf32>
    %108 = arith.addf %103, %107 : vector<8x256xf32>
    %c17 = arith.constant 17 : index
    %c0_97 = arith.constant 0 : index
    %c0_98 = arith.constant 0 : index
    %109 = vector.load %arg4[%c17, %c0_97, %c0_98] : memref<25x8x8xbf16, #tpu.memory_space<vmem>>, vector<1x8x8xbf16>
    %110 = vector.shape_cast %109 : vector<1x8x8xbf16> to vector<8x8xbf16>
    %c0_99 = arith.constant 0 : index
    %c48_100 = arith.constant 48 : index
    %111 = vector.load %arg15[%c0_99, %c48_100] : memref<8x320xbf16, #tpu.memory_space<vmem>>, vector<8x256xbf16>
    %cst_101 = arith.constant dense<0.000000e+00> : vector<8x256xf32>
    %112 = tpu.matmul %110, %111, %cst_101 {dimension_numbers = #tpu.dot_dimension_numbers<[1], [0], [0], [1], [0, 0, 1, 1], [], []>} : vector<8x8xbf16>, vector<8x256xbf16>, vector<8x256xf32> -> vector<8x256xf32>
    %113 = arith.addf %108, %112 : vector<8x256xf32>
    %c22 = arith.constant 22 : index
    %c0_102 = arith.constant 0 : index
    %c0_103 = arith.constant 0 : index
    %114 = vector.load %arg4[%c22, %c0_102, %c0_103] : memref<25x8x8xbf16, #tpu.memory_space<vmem>>, vector<1x8x8xbf16>
    %115 = vector.shape_cast %114 : vector<1x8x8xbf16> to vector<8x8xbf16>
    %c0_104 = arith.constant 0 : index
    %c64_105 = arith.constant 64 : index
    %116 = vector.load %arg15[%c0_104, %c64_105] : memref<8x320xbf16, #tpu.memory_space<vmem>>, vector<8x256xbf16>
    %cst_106 = arith.constant dense<0.000000e+00> : vector<8x256xf32>
    %117 = tpu.matmul %115, %116, %cst_106 {dimension_numbers = #tpu.dot_dimension_numbers<[1], [0], [0], [1], [0, 0, 1, 1], [], []>} : vector<8x8xbf16>, vector<8x256xbf16>, vector<8x256xf32> -> vector<8x256xf32>
    %118 = arith.addf %113, %117 : vector<8x256xf32>
    %c0_107 = arith.constant 0 : index
    %c97 = arith.constant 97 : index
    %119 = vector.load %arg14[%c0_107, %c97] : memref<8x512xf32, #tpu.memory_space<vmem>>, vector<8x320xf32>
    %c3 = arith.constant 3 : index
    %c0_108 = arith.constant 0 : index
    %120 = vector.load %arg10[%c3, %c0_108] : memref<5x320xf32, #tpu.memory_space<vmem>>, vector<1x320xf32>
    %121 = vector.broadcast %120 : vector<1x320xf32> to vector<8x320xf32>
    %122 = arith.mulf %119, %121 : vector<8x320xf32>
    %123 = arith.truncf %122 : vector<8x320xf32> to vector<8x320xbf16>
    %c0_109 = arith.constant 0 : index
    %c0_110 = arith.constant 0 : index
    %124 = vector.load %arg15[%c0_109, %c0_110] : memref<8x320xbf16, #tpu.memory_space<vmem>>, vector<8x320xbf16>
    tpu.vector_store %arg15[%c0_109, %c0_110], %123 {strides = array<i32>} : memref<8x320xbf16, #tpu.memory_space<vmem>>, vector<8x320xbf16>,
    %c3_111 = arith.constant 3 : index
    %c0_112 = arith.constant 0 : index
    %c0_113 = arith.constant 0 : index
    %125 = vector.load %arg4[%c3_111, %c0_112, %c0_113] : memref<25x8x8xbf16, #tpu.memory_space<vmem>>, vector<1x8x8xbf16>
    %126 = vector.shape_cast %125 : vector<1x8x8xbf16> to vector<8x8xbf16>
    %c0_114 = arith.constant 0 : index
    %c0_115 = arith.constant 0 : index
    %127 = vector.load %arg15[%c0_114, %c0_115] : memref<8x320xbf16, #tpu.memory_space<vmem>>, vector<8x256xbf16>
    %cst_116 = arith.constant dense<0.000000e+00> : vector<8x256xf32>
    %128 = tpu.matmul %126, %127, %cst_116 {dimension_numbers = #tpu.dot_dimension_numbers<[1], [0], [0], [1], [0, 0, 1, 1], [], []>} : vector<8x8xbf16>, vector<8x256xbf16>, vector<8x256xf32> -> vector<8x256xf32>
    %129 = arith.addf %118, %128 : vector<8x256xf32>
    %c8 = arith.constant 8 : index
    %c0_117 = arith.constant 0 : index
    %c0_118 = arith.constant 0 : index
    %130 = vector.load %arg4[%c8, %c0_117, %c0_118] : memref<25x8x8xbf16, #tpu.memory_space<vmem>>, vector<1x8x8xbf16>
    %131 = vector.shape_cast %130 : vector<1x8x8xbf16> to vector<8x8xbf16>
    %c0_119 = arith.constant 0 : index
    %c16_120 = arith.constant 16 : index
    %132 = vector.load %arg15[%c0_119, %c16_120] : memref<8x320xbf16, #tpu.memory_space<vmem>>, vector<8x256xbf16>
    %cst_121 = arith.constant dense<0.000000e+00> : vector<8x256xf32>
    %133 = tpu.matmul %131, %132, %cst_121 {dimension_numbers = #tpu.dot_dimension_numbers<[1], [0], [0], [1], [0, 0, 1, 1], [], []>} : vector<8x8xbf16>, vector<8x256xbf16>, vector<8x256xf32> -> vector<8x256xf32>
    %134 = arith.addf %129, %133 : vector<8x256xf32>
    %c13 = arith.constant 13 : index
    %c0_122 = arith.constant 0 : index
    %c0_123 = arith.constant 0 : index
    %135 = vector.load %arg4[%c13, %c0_122, %c0_123] : memref<25x8x8xbf16, #tpu.memory_space<vmem>>, vector<1x8x8xbf16>
    %136 = vector.shape_cast %135 : vector<1x8x8xbf16> to vector<8x8xbf16>
    %c0_124 = arith.constant 0 : index
    %c32_125 = arith.constant 32 : index
    %137 = vector.load %arg15[%c0_124, %c32_125] : memref<8x320xbf16, #tpu.memory_space<vmem>>, vector<8x256xbf16>
    %cst_126 = arith.constant dense<0.000000e+00> : vector<8x256xf32>
    %138 = tpu.matmul %136, %137, %cst_126 {dimension_numbers = #tpu.dot_dimension_numbers<[1], [0], [0], [1], [0, 0, 1, 1], [], []>} : vector<8x8xbf16>, vector<8x256xbf16>, vector<8x256xf32> -> vector<8x256xf32>
    %139 = arith.addf %134, %138 : vector<8x256xf32>
    %c18 = arith.constant 18 : index
    %c0_127 = arith.constant 0 : index
    %c0_128 = arith.constant 0 : index
    %140 = vector.load %arg4[%c18, %c0_127, %c0_128] : memref<25x8x8xbf16, #tpu.memory_space<vmem>>, vector<1x8x8xbf16>
    %141 = vector.shape_cast %140 : vector<1x8x8xbf16> to vector<8x8xbf16>
    %c0_129 = arith.constant 0 : index
    %c48_130 = arith.constant 48 : index
    %142 = vector.load %arg15[%c0_129, %c48_130] : memref<8x320xbf16, #tpu.memory_space<vmem>>, vector<8x256xbf16>
    %cst_131 = arith.constant dense<0.000000e+00> : vector<8x256xf32>
    %143 = tpu.matmul %141, %142, %cst_131 {dimension_numbers = #tpu.dot_dimension_numbers<[1], [0], [0], [1], [0, 0, 1, 1], [], []>} : vector<8x8xbf16>, vector<8x256xbf16>, vector<8x256xf32> -> vector<8x256xf32>
    %144 = arith.addf %139, %143 : vector<8x256xf32>
    %c23 = arith.constant 23 : index
    %c0_132 = arith.constant 0 : index
    %c0_133 = arith.constant 0 : index
    %145 = vector.load %arg4[%c23, %c0_132, %c0_133] : memref<25x8x8xbf16, #tpu.memory_space<vmem>>, vector<1x8x8xbf16>
    %146 = vector.shape_cast %145 : vector<1x8x8xbf16> to vector<8x8xbf16>
    %c0_134 = arith.constant 0 : index
    %c64_135 = arith.constant 64 : index
    %147 = vector.load %arg15[%c0_134, %c64_135] : memref<8x320xbf16, #tpu.memory_space<vmem>>, vector<8x256xbf16>
    %cst_136 = arith.constant dense<0.000000e+00> : vector<8x256xf32>
    %148 = tpu.matmul %146, %147, %cst_136 {dimension_numbers = #tpu.dot_dimension_numbers<[1], [0], [0], [1], [0, 0, 1, 1], [], []>} : vector<8x8xbf16>, vector<8x256xbf16>, vector<8x256xf32> -> vector<8x256xf32>
    %149 = arith.addf %144, %148 : vector<8x256xf32>
    %c0_137 = arith.constant 0 : index
    %c98 = arith.constant 98 : index
    %150 = vector.load %arg14[%c0_137, %c98] : memref<8x512xf32, #tpu.memory_space<vmem>>, vector<8x320xf32>
    %c4 = arith.constant 4 : index
    %c0_138 = arith.constant 0 : index
    %151 = vector.load %arg10[%c4, %c0_138] : memref<5x320xf32, #tpu.memory_space<vmem>>, vector<1x320xf32>
    %152 = vector.broadcast %151 : vector<1x320xf32> to vector<8x320xf32>
    %153 = arith.mulf %150, %152 : vector<8x320xf32>
    %154 = arith.truncf %153 : vector<8x320xf32> to vector<8x320xbf16>
    %c0_139 = arith.constant 0 : index
    %c0_140 = arith.constant 0 : index
    %155 = vector.load %arg15[%c0_139, %c0_140] : memref<8x320xbf16, #tpu.memory_space<vmem>>, vector<8x320xbf16>
    tpu.vector_store %arg15[%c0_139, %c0_140], %154 {strides = array<i32>} : memref<8x320xbf16, #tpu.memory_space<vmem>>, vector<8x320xbf16>,
    %c4_141 = arith.constant 4 : index
    %c0_142 = arith.constant 0 : index
    %c0_143 = arith.constant 0 : index
    %156 = vector.load %arg4[%c4_141, %c0_142, %c0_143] : memref<25x8x8xbf16, #tpu.memory_space<vmem>>, vector<1x8x8xbf16>
    %157 = vector.shape_cast %156 : vector<1x8x8xbf16> to vector<8x8xbf16>
    %c0_144 = arith.constant 0 : index
    %c0_145 = arith.constant 0 : index
    %158 = vector.load %arg15[%c0_144, %c0_145] : memref<8x320xbf16, #tpu.memory_space<vmem>>, vector<8x256xbf16>
    %cst_146 = arith.constant dense<0.000000e+00> : vector<8x256xf32>
    %159 = tpu.matmul %157, %158, %cst_146 {dimension_numbers = #tpu.dot_dimension_numbers<[1], [0], [0], [1], [0, 0, 1, 1], [], []>} : vector<8x8xbf16>, vector<8x256xbf16>, vector<8x256xf32> -> vector<8x256xf32>
    %160 = arith.addf %149, %159 : vector<8x256xf32>
    %c9 = arith.constant 9 : index
    %c0_147 = arith.constant 0 : index
    %c0_148 = arith.constant 0 : index
    %161 = vector.load %arg4[%c9, %c0_147, %c0_148] : memref<25x8x8xbf16, #tpu.memory_space<vmem>>, vector<1x8x8xbf16>
    %162 = vector.shape_cast %161 : vector<1x8x8xbf16> to vector<8x8xbf16>
    %c0_149 = arith.constant 0 : index
    %c16_150 = arith.constant 16 : index
    %163 = vector.load %arg15[%c0_149, %c16_150] : memref<8x320xbf16, #tpu.memory_space<vmem>>, vector<8x256xbf16>
    %cst_151 = arith.constant dense<0.000000e+00> : vector<8x256xf32>
    %164 = tpu.matmul %162, %163, %cst_151 {dimension_numbers = #tpu.dot_dimension_numbers<[1], [0], [0], [1], [0, 0, 1, 1], [], []>} : vector<8x8xbf16>, vector<8x256xbf16>, vector<8x256xf32> -> vector<8x256xf32>
    %165 = arith.addf %160, %164 : vector<8x256xf32>
    %c14 = arith.constant 14 : index
    %c0_152 = arith.constant 0 : index
    %c0_153 = arith.constant 0 : index
    %166 = vector.load %arg4[%c14, %c0_152, %c0_153] : memref<25x8x8xbf16, #tpu.memory_space<vmem>>, vector<1x8x8xbf16>
    %167 = vector.shape_cast %166 : vector<1x8x8xbf16> to vector<8x8xbf16>
    %c0_154 = arith.constant 0 : index
    %c32_155 = arith.constant 32 : index
    %168 = vector.load %arg15[%c0_154, %c32_155] : memref<8x320xbf16, #tpu.memory_space<vmem>>, vector<8x256xbf16>
    %cst_156 = arith.constant dense<0.000000e+00> : vector<8x256xf32>
    %169 = tpu.matmul %167, %168, %cst_156 {dimension_numbers = #tpu.dot_dimension_numbers<[1], [0], [0], [1], [0, 0, 1, 1], [], []>} : vector<8x8xbf16>, vector<8x256xbf16>, vector<8x256xf32> -> vector<8x256xf32>
    %170 = arith.addf %165, %169 : vector<8x256xf32>
    %c19 = arith.constant 19 : index
    %c0_157 = arith.constant 0 : index
    %c0_158 = arith.constant 0 : index
    %171 = vector.load %arg4[%c19, %c0_157, %c0_158] : memref<25x8x8xbf16, #tpu.memory_space<vmem>>, vector<1x8x8xbf16>
    %172 = vector.shape_cast %171 : vector<1x8x8xbf16> to vector<8x8xbf16>
    %c0_159 = arith.constant 0 : index
    %c48_160 = arith.constant 48 : index
    %173 = vector.load %arg15[%c0_159, %c48_160] : memref<8x320xbf16, #tpu.memory_space<vmem>>, vector<8x256xbf16>
    %cst_161 = arith.constant dense<0.000000e+00> : vector<8x256xf32>
    %174 = tpu.matmul %172, %173, %cst_161 {dimension_numbers = #tpu.dot_dimension_numbers<[1], [0], [0], [1], [0, 0, 1, 1], [], []>} : vector<8x8xbf16>, vector<8x256xbf16>, vector<8x256xf32> -> vector<8x256xf32>
    %175 = arith.addf %170, %174 : vector<8x256xf32>
    %c24 = arith.constant 24 : index
    %c0_162 = arith.constant 0 : index
    %c0_163 = arith.constant 0 : index
    %176 = vector.load %arg4[%c24, %c0_162, %c0_163] : memref<25x8x8xbf16, #tpu.memory_space<vmem>>, vector<1x8x8xbf16>
    %177 = vector.shape_cast %176 : vector<1x8x8xbf16> to vector<8x8xbf16>
    %c0_164 = arith.constant 0 : index
    %c64_165 = arith.constant 64 : index
    %178 = vector.load %arg15[%c0_164, %c64_165] : memref<8x320xbf16, #tpu.memory_space<vmem>>, vector<8x256xbf16>
    %cst_166 = arith.constant dense<0.000000e+00> : vector<8x256xf32>
    %179 = tpu.matmul %177, %178, %cst_166 {dimension_numbers = #tpu.dot_dimension_numbers<[1], [0], [0], [1], [0, 0, 1, 1], [], []>} : vector<8x8xbf16>, vector<8x256xbf16>, vector<8x256xf32> -> vector<8x256xf32>
    %180 = arith.addf %175, %179 : vector<8x256xf32>
    %181 = vector.extract_strided_slice %3 {offsets = [0, 0], sizes = [8, 1], strides = [1, 1]} : vector<8x8xf32> to vector<8x1xf32>
    %182 = vector.broadcast %181 : vector<8x1xf32> to vector<8x256xf32>
    %183 = arith.mulf %182, %11 : vector<8x256xf32>
    %184 = vector.extract_strided_slice %3 {offsets = [0, 1], sizes = [8, 1], strides = [1, 1]} : vector<8x8xf32> to vector<8x1xf32>
    %185 = vector.broadcast %184 : vector<8x1xf32> to vector<8x256xf32>
    %186 = arith.addf %183, %185 : vector<8x256xf32>
    %187 = arith.mulf %180, %186 : vector<8x256xf32>
    %cst_167 = arith.constant 0.000000e+00 : f32
    %188 = vector.broadcast %cst_167 : f32 to vector<8x256xf32>
    %189 = arith.maximumf %187, %188 : vector<8x256xf32>
    %190 = math.absf %187 : vector<8x256xf32>
    %cst_168 = arith.constant 0.000000e+00 : f32
    %191 = vector.broadcast %cst_168 : f32 to vector<8x256xf32>
    %192 = arith.subf %191, %190 : vector<8x256xf32>
    %193 = math.exp %192 : vector<8x256xf32>
    %cst_169 = arith.constant 1.000000e+00 : f32
    %194 = vector.broadcast %cst_169 : f32 to vector<8x256xf32>
    %195 = arith.addf %194, %193 : vector<8x256xf32>
    %196 = math.log %195 : vector<8x256xf32>
    %197 = arith.addf %189, %196 : vector<8x256xf32>
    %198 = arith.subf %10, %197 : vector<8x256xf32>
    %cst_170 = arith.constant 0.000000e+00 : f32
    %199 = vector.broadcast %cst_170 : f32 to vector<8x256xf32>
    %200 = arith.maximumf %198, %199 : vector<8x256xf32>
    %201 = math.absf %198 : vector<8x256xf32>
    %cst_171 = arith.constant 0.000000e+00 : f32
    %202 = vector.broadcast %cst_171 : f32 to vector<8x256xf32>
    %203 = arith.subf %202, %201 : vector<8x256xf32>
    %204 = math.exp %203 : vector<8x256xf32>
    %cst_172 = arith.constant 1.000000e+00 : f32
    %205 = vector.broadcast %cst_172 : f32 to vector<8x256xf32>
    %206 = arith.addf %205, %204 : vector<8x256xf32>
    %207 = math.log %206 : vector<8x256xf32>
    %208 = arith.addf %200, %207 : vector<8x256xf32>
    %209 = arith.subf %208, %11 : vector<8x256xf32>
    %210 = arith.mulf %24, %209 : vector<8x256xf32>
    %211 = arith.addf %11, %210 : vector<8x256xf32>
    %c0_173 = arith.constant 0 : index
    %c0_174 = arith.constant 0 : index
    %212 = vector.load %arg12[%c0_173, %c0_174] : memref<8x256xf32, #tpu.memory_space<vmem>>, vector<8x256xf32>
    tpu.vector_store %arg12[%c0_173, %c0_174], %211 {strides = array<i32>} : memref<8x256xf32, #tpu.memory_space<vmem>>, vector<8x256xf32>,
    %c0_175 = arith.constant 0 : index
    %c0_176 = arith.constant 0 : index
    %213 = vector.load %arg7[%c0_175, %c0_176] : memref<8x8xf32, #tpu.memory_space<vmem>>, vector<8x8xf32>
    %cst_177 = arith.constant dense<0.000000e+00> : vector<8x256xf32>
    %214 = tpu.matmul %213, %211, %cst_177 {dimension_numbers = #tpu.dot_dimension_numbers<[1], [0], [0], [1], [0, 0, 1, 1], [], []>} : vector<8x8xf32>, vector<8x256xf32>, vector<8x256xf32> -> vector<8x256xf32>
    %215 = vector.extract_strided_slice %3 {offsets = [0, 6], sizes = [8, 1], strides = [1, 1]} : vector<8x8xf32> to vector<8x1xf32>
    %216 = vector.broadcast %215 : vector<8x1xf32> to vector<8x256xf32>
    %217 = arith.addf %214, %216 : vector<8x256xf32>
    %cst_178 = arith.constant 0.000000e+00 : f32
    %218 = vector.broadcast %cst_178 : f32 to vector<8x256xf32>
    %219 = arith.subf %218, %217 : vector<8x256xf32>
    %220 = math.exp %219 : vector<8x256xf32>
    %cst_179 = arith.constant 1.000000e+00 : f32
    %221 = vector.broadcast %cst_179 : f32 to vector<8x256xf32>
    %222 = arith.addf %221, %220 : vector<8x256xf32>
    %cst_180 = arith.constant 1.000000e+00 : f32
    %223 = vector.broadcast %cst_180 : f32 to vector<8x256xf32>
    %224 = arith.divf %223, %222 : vector<8x256xf32>
    %c0_181 = arith.constant 0 : index
    %c128_182 = arith.constant 128 : index
    %225 = vector.load %arg14[%c0_181, %c128_182] : memref<8x512xf32, #tpu.memory_space<vmem>>, vector<8x256xf32>
    tpu.vector_store %arg14[%c0_181, %c128_182], %211 {strides = array<i32>} : memref<8x512xf32, #tpu.memory_space<vmem>>, vector<8x256xf32>,
    %c0_183 = arith.constant 0 : index
    %c94_184 = arith.constant 94 : index
    %226 = vector.load %arg14[%c0_183, %c94_184] : memref<8x512xf32, #tpu.memory_space<vmem>>, vector<8x320xf32>
    %c0_185 = arith.constant 0 : index
    %c0_186 = arith.constant 0 : index
    %227 = vector.load %arg10[%c0_185, %c0_186] : memref<5x320xf32, #tpu.memory_space<vmem>>, vector<1x320xf32>
    %228 = vector.broadcast %227 : vector<1x320xf32> to vector<8x320xf32>
    %229 = arith.mulf %226, %228 : vector<8x320xf32>
    %230 = arith.truncf %229 : vector<8x320xf32> to vector<8x320xbf16>
    %c0_187 = arith.constant 0 : index
    %c0_188 = arith.constant 0 : index
    %231 = vector.load %arg15[%c0_187, %c0_188] : memref<8x320xbf16, #tpu.memory_space<vmem>>, vector<8x320xbf16>
    tpu.vector_store %arg15[%c0_187, %c0_188], %230 {strides = array<i32>} : memref<8x320xbf16, #tpu.memory_space<vmem>>, vector<8x320xbf16>,
    %c0_189 = arith.constant 0 : index
    %c0_190 = arith.constant 0 : index
    %c0_191 = arith.constant 0 : index
    %232 = vector.load %arg5[%c0_189, %c0_190, %c0_191] : memref<25x8x8xbf16, #tpu.memory_space<vmem>>, vector<1x8x8xbf16>
    %233 = vector.shape_cast %232 : vector<1x8x8xbf16> to vector<8x8xbf16>
    %c0_192 = arith.constant 0 : index
    %c0_193 = arith.constant 0 : index
    %234 = vector.load %arg15[%c0_192, %c0_193] : memref<8x320xbf16, #tpu.memory_space<vmem>>, vector<8x256xbf16>
    %cst_194 = arith.constant dense<0.000000e+00> : vector<8x256xf32>
    %235 = tpu.matmul %233, %234, %cst_194 {dimension_numbers = #tpu.dot_dimension_numbers<[1], [0], [0], [1], [0, 0, 1, 1], [], []>} : vector<8x8xbf16>, vector<8x256xbf16>, vector<8x256xf32> -> vector<8x256xf32>
    %c5_195 = arith.constant 5 : index
    %c0_196 = arith.constant 0 : index
    %c0_197 = arith.constant 0 : index
    %236 = vector.load %arg5[%c5_195, %c0_196, %c0_197] : memref<25x8x8xbf16, #tpu.memory_space<vmem>>, vector<1x8x8xbf16>
    %237 = vector.shape_cast %236 : vector<1x8x8xbf16> to vector<8x8xbf16>
    %c0_198 = arith.constant 0 : index
    %c16_199 = arith.constant 16 : index
    %238 = vector.load %arg15[%c0_198, %c16_199] : memref<8x320xbf16, #tpu.memory_space<vmem>>, vector<8x256xbf16>
    %cst_200 = arith.constant dense<0.000000e+00> : vector<8x256xf32>
    %239 = tpu.matmul %237, %238, %cst_200 {dimension_numbers = #tpu.dot_dimension_numbers<[1], [0], [0], [1], [0, 0, 1, 1], [], []>} : vector<8x8xbf16>, vector<8x256xbf16>, vector<8x256xf32> -> vector<8x256xf32>
    %240 = arith.addf %235, %239 : vector<8x256xf32>
    %c10_201 = arith.constant 10 : index
    %c0_202 = arith.constant 0 : index
    %c0_203 = arith.constant 0 : index
    %241 = vector.load %arg5[%c10_201, %c0_202, %c0_203] : memref<25x8x8xbf16, #tpu.memory_space<vmem>>, vector<1x8x8xbf16>
    %242 = vector.shape_cast %241 : vector<1x8x8xbf16> to vector<8x8xbf16>
    %c0_204 = arith.constant 0 : index
    %c32_205 = arith.constant 32 : index
    %243 = vector.load %arg15[%c0_204, %c32_205] : memref<8x320xbf16, #tpu.memory_space<vmem>>, vector<8x256xbf16>
    %cst_206 = arith.constant dense<0.000000e+00> : vector<8x256xf32>
    %244 = tpu.matmul %242, %243, %cst_206 {dimension_numbers = #tpu.dot_dimension_numbers<[1], [0], [0], [1], [0, 0, 1, 1], [], []>} : vector<8x8xbf16>, vector<8x256xbf16>, vector<8x256xf32> -> vector<8x256xf32>
    %245 = arith.addf %240, %244 : vector<8x256xf32>
    %c15_207 = arith.constant 15 : index
    %c0_208 = arith.constant 0 : index
    %c0_209 = arith.constant 0 : index
    %246 = vector.load %arg5[%c15_207, %c0_208, %c0_209] : memref<25x8x8xbf16, #tpu.memory_space<vmem>>, vector<1x8x8xbf16>
    %247 = vector.shape_cast %246 : vector<1x8x8xbf16> to vector<8x8xbf16>
    %c0_210 = arith.constant 0 : index
    %c48_211 = arith.constant 48 : index
    %248 = vector.load %arg15[%c0_210, %c48_211] : memref<8x320xbf16, #tpu.memory_space<vmem>>, vector<8x256xbf16>
    %cst_212 = arith.constant dense<0.000000e+00> : vector<8x256xf32>
    %249 = tpu.matmul %247, %248, %cst_212 {dimension_numbers = #tpu.dot_dimension_numbers<[1], [0], [0], [1], [0, 0, 1, 1], [], []>} : vector<8x8xbf16>, vector<8x256xbf16>, vector<8x256xf32> -> vector<8x256xf32>
    %250 = arith.addf %245, %249 : vector<8x256xf32>
    %c20_213 = arith.constant 20 : index
    %c0_214 = arith.constant 0 : index
    %c0_215 = arith.constant 0 : index
    %251 = vector.load %arg5[%c20_213, %c0_214, %c0_215] : memref<25x8x8xbf16, #tpu.memory_space<vmem>>, vector<1x8x8xbf16>
    %252 = vector.shape_cast %251 : vector<1x8x8xbf16> to vector<8x8xbf16>
    %c0_216 = arith.constant 0 : index
    %c64_217 = arith.constant 64 : index
    %253 = vector.load %arg15[%c0_216, %c64_217] : memref<8x320xbf16, #tpu.memory_space<vmem>>, vector<8x256xbf16>
    %cst_218 = arith.constant dense<0.000000e+00> : vector<8x256xf32>
    %254 = tpu.matmul %252, %253, %cst_218 {dimension_numbers = #tpu.dot_dimension_numbers<[1], [0], [0], [1], [0, 0, 1, 1], [], []>} : vector<8x8xbf16>, vector<8x256xbf16>, vector<8x256xf32> -> vector<8x256xf32>
    %255 = arith.addf %250, %254 : vector<8x256xf32>
    %c0_219 = arith.constant 0 : index
    %c95_220 = arith.constant 95 : index
    %256 = vector.load %arg14[%c0_219, %c95_220] : memref<8x512xf32, #tpu.memory_space<vmem>>, vector<8x320xf32>
    %c1_221 = arith.constant 1 : index
    %c0_222 = arith.constant 0 : index
    %257 = vector.load %arg10[%c1_221, %c0_222] : memref<5x320xf32, #tpu.memory_space<vmem>>, vector<1x320xf32>
    %258 = vector.broadcast %257 : vector<1x320xf32> to vector<8x320xf32>
    %259 = arith.mulf %256, %258 : vector<8x320xf32>
    %260 = arith.truncf %259 : vector<8x320xf32> to vector<8x320xbf16>
    %c0_223 = arith.constant 0 : index
    %c0_224 = arith.constant 0 : index
    %261 = vector.load %arg15[%c0_223, %c0_224] : memref<8x320xbf16, #tpu.memory_space<vmem>>, vector<8x320xbf16>
    tpu.vector_store %arg15[%c0_223, %c0_224], %260 {strides = array<i32>} : memref<8x320xbf16, #tpu.memory_space<vmem>>, vector<8x320xbf16>,
    %c1_225 = arith.constant 1 : index
    %c0_226 = arith.constant 0 : index
    %c0_227 = arith.constant 0 : index
    %262 = vector.load %arg5[%c1_225, %c0_226, %c0_227] : memref<25x8x8xbf16, #tpu.memory_space<vmem>>, vector<1x8x8xbf16>
    %263 = vector.shape_cast %262 : vector<1x8x8xbf16> to vector<8x8xbf16>
    %c0_228 = arith.constant 0 : index
    %c0_229 = arith.constant 0 : index
    %264 = vector.load %arg15[%c0_228, %c0_229] : memref<8x320xbf16, #tpu.memory_space<vmem>>, vector<8x256xbf16>
    %cst_230 = arith.constant dense<0.000000e+00> : vector<8x256xf32>
    %265 = tpu.matmul %263, %264, %cst_230 {dimension_numbers = #tpu.dot_dimension_numbers<[1], [0], [0], [1], [0, 0, 1, 1], [], []>} : vector<8x8xbf16>, vector<8x256xbf16>, vector<8x256xf32> -> vector<8x256xf32>
    %266 = arith.addf %255, %265 : vector<8x256xf32>
    %c6_231 = arith.constant 6 : index
    %c0_232 = arith.constant 0 : index
    %c0_233 = arith.constant 0 : index
    %267 = vector.load %arg5[%c6_231, %c0_232, %c0_233] : memref<25x8x8xbf16, #tpu.memory_space<vmem>>, vector<1x8x8xbf16>
    %268 = vector.shape_cast %267 : vector<1x8x8xbf16> to vector<8x8xbf16>
    %c0_234 = arith.constant 0 : index
    %c16_235 = arith.constant 16 : index
    %269 = vector.load %arg15[%c0_234, %c16_235] : memref<8x320xbf16, #tpu.memory_space<vmem>>, vector<8x256xbf16>
    %cst_236 = arith.constant dense<0.000000e+00> : vector<8x256xf32>
    %270 = tpu.matmul %268, %269, %cst_236 {dimension_numbers = #tpu.dot_dimension_numbers<[1], [0], [0], [1], [0, 0, 1, 1], [], []>} : vector<8x8xbf16>, vector<8x256xbf16>, vector<8x256xf32> -> vector<8x256xf32>
    %271 = arith.addf %266, %270 : vector<8x256xf32>
    %c11_237 = arith.constant 11 : index
    %c0_238 = arith.constant 0 : index
    %c0_239 = arith.constant 0 : index
    %272 = vector.load %arg5[%c11_237, %c0_238, %c0_239] : memref<25x8x8xbf16, #tpu.memory_space<vmem>>, vector<1x8x8xbf16>
    %273 = vector.shape_cast %272 : vector<1x8x8xbf16> to vector<8x8xbf16>
    %c0_240 = arith.constant 0 : index
    %c32_241 = arith.constant 32 : index
    %274 = vector.load %arg15[%c0_240, %c32_241] : memref<8x320xbf16, #tpu.memory_space<vmem>>, vector<8x256xbf16>
    %cst_242 = arith.constant dense<0.000000e+00> : vector<8x256xf32>
    %275 = tpu.matmul %273, %274, %cst_242 {dimension_numbers = #tpu.dot_dimension_numbers<[1], [0], [0], [1], [0, 0, 1, 1], [], []>} : vector<8x8xbf16>, vector<8x256xbf16>, vector<8x256xf32> -> vector<8x256xf32>
    %276 = arith.addf %271, %275 : vector<8x256xf32>
    %c16_243 = arith.constant 16 : index
    %c0_244 = arith.constant 0 : index
    %c0_245 = arith.constant 0 : index
    %277 = vector.load %arg5[%c16_243, %c0_244, %c0_245] : memref<25x8x8xbf16, #tpu.memory_space<vmem>>, vector<1x8x8xbf16>
    %278 = vector.shape_cast %277 : vector<1x8x8xbf16> to vector<8x8xbf16>
    %c0_246 = arith.constant 0 : index
    %c48_247 = arith.constant 48 : index
    %279 = vector.load %arg15[%c0_246, %c48_247] : memref<8x320xbf16, #tpu.memory_space<vmem>>, vector<8x256xbf16>
    %cst_248 = arith.constant dense<0.000000e+00> : vector<8x256xf32>
    %280 = tpu.matmul %278, %279, %cst_248 {dimension_numbers = #tpu.dot_dimension_numbers<[1], [0], [0], [1], [0, 0, 1, 1], [], []>} : vector<8x8xbf16>, vector<8x256xbf16>, vector<8x256xf32> -> vector<8x256xf32>
    %281 = arith.addf %276, %280 : vector<8x256xf32>
    %c21_249 = arith.constant 21 : index
    %c0_250 = arith.constant 0 : index
    %c0_251 = arith.constant 0 : index
    %282 = vector.load %arg5[%c21_249, %c0_250, %c0_251] : memref<25x8x8xbf16, #tpu.memory_space<vmem>>, vector<1x8x8xbf16>
    %283 = vector.shape_cast %282 : vector<1x8x8xbf16> to vector<8x8xbf16>
    %c0_252 = arith.constant 0 : index
    %c64_253 = arith.constant 64 : index
    %284 = vector.load %arg15[%c0_252, %c64_253] : memref<8x320xbf16, #tpu.memory_space<vmem>>, vector<8x256xbf16>
    %cst_254 = arith.constant dense<0.000000e+00> : vector<8x256xf32>
    %285 = tpu.matmul %283, %284, %cst_254 {dimension_numbers = #tpu.dot_dimension_numbers<[1], [0], [0], [1], [0, 0, 1, 1], [], []>} : vector<8x8xbf16>, vector<8x256xbf16>, vector<8x256xf32> -> vector<8x256xf32>
    %286 = arith.addf %281, %285 : vector<8x256xf32>
    %c0_255 = arith.constant 0 : index
    %c96_256 = arith.constant 96 : index
    %287 = vector.load %arg14[%c0_255, %c96_256] : memref<8x512xf32, #tpu.memory_space<vmem>>, vector<8x320xf32>
    %c2_257 = arith.constant 2 : index
    %c0_258 = arith.constant 0 : index
    %288 = vector.load %arg10[%c2_257, %c0_258] : memref<5x320xf32, #tpu.memory_space<vmem>>, vector<1x320xf32>
    %289 = vector.broadcast %288 : vector<1x320xf32> to vector<8x320xf32>
    %290 = arith.mulf %287, %289 : vector<8x320xf32>
    %291 = arith.truncf %290 : vector<8x320xf32> to vector<8x320xbf16>
    %c0_259 = arith.constant 0 : index
    %c0_260 = arith.constant 0 : index
    %292 = vector.load %arg15[%c0_259, %c0_260] : memref<8x320xbf16, #tpu.memory_space<vmem>>, vector<8x320xbf16>
    tpu.vector_store %arg15[%c0_259, %c0_260], %291 {strides = array<i32>} : memref<8x320xbf16, #tpu.memory_space<vmem>>, vector<8x320xbf16>,
    %c2_261 = arith.constant 2 : index
    %c0_262 = arith.constant 0 : index
    %c0_263 = arith.constant 0 : index
    %293 = vector.load %arg5[%c2_261, %c0_262, %c0_263] : memref<25x8x8xbf16, #tpu.memory_space<vmem>>, vector<1x8x8xbf16>
    %294 = vector.shape_cast %293 : vector<1x8x8xbf16> to vector<8x8xbf16>
    %c0_264 = arith.constant 0 : index
    %c0_265 = arith.constant 0 : index
    %295 = vector.load %arg15[%c0_264, %c0_265] : memref<8x320xbf16, #tpu.memory_space<vmem>>, vector<8x256xbf16>
    %cst_266 = arith.constant dense<0.000000e+00> : vector<8x256xf32>
    %296 = tpu.matmul %294, %295, %cst_266 {dimension_numbers = #tpu.dot_dimension_numbers<[1], [0], [0], [1], [0, 0, 1, 1], [], []>} : vector<8x8xbf16>, vector<8x256xbf16>, vector<8x256xf32> -> vector<8x256xf32>
    %297 = arith.addf %286, %296 : vector<8x256xf32>
    %c7_267 = arith.constant 7 : index
    %c0_268 = arith.constant 0 : index
    %c0_269 = arith.constant 0 : index
    %298 = vector.load %arg5[%c7_267, %c0_268, %c0_269] : memref<25x8x8xbf16, #tpu.memory_space<vmem>>, vector<1x8x8xbf16>
    %299 = vector.shape_cast %298 : vector<1x8x8xbf16> to vector<8x8xbf16>
    %c0_270 = arith.constant 0 : index
    %c16_271 = arith.constant 16 : index
    %300 = vector.load %arg15[%c0_270, %c16_271] : memref<8x320xbf16, #tpu.memory_space<vmem>>, vector<8x256xbf16>
    %cst_272 = arith.constant dense<0.000000e+00> : vector<8x256xf32>
    %301 = tpu.matmul %299, %300, %cst_272 {dimension_numbers = #tpu.dot_dimension_numbers<[1], [0], [0], [1], [0, 0, 1, 1], [], []>} : vector<8x8xbf16>, vector<8x256xbf16>, vector<8x256xf32> -> vector<8x256xf32>
    %302 = arith.addf %297, %301 : vector<8x256xf32>
    %c12_273 = arith.constant 12 : index
    %c0_274 = arith.constant 0 : index
    %c0_275 = arith.constant 0 : index
    %303 = vector.load %arg5[%c12_273, %c0_274, %c0_275] : memref<25x8x8xbf16, #tpu.memory_space<vmem>>, vector<1x8x8xbf16>
    %304 = vector.shape_cast %303 : vector<1x8x8xbf16> to vector<8x8xbf16>
    %c0_276 = arith.constant 0 : index
    %c32_277 = arith.constant 32 : index
    %305 = vector.load %arg15[%c0_276, %c32_277] : memref<8x320xbf16, #tpu.memory_space<vmem>>, vector<8x256xbf16>
    %cst_278 = arith.constant dense<0.000000e+00> : vector<8x256xf32>
    %306 = tpu.matmul %304, %305, %cst_278 {dimension_numbers = #tpu.dot_dimension_numbers<[1], [0], [0], [1], [0, 0, 1, 1], [], []>} : vector<8x8xbf16>, vector<8x256xbf16>, vector<8x256xf32> -> vector<8x256xf32>
    %307 = arith.addf %302, %306 : vector<8x256xf32>
    %c17_279 = arith.constant 17 : index
    %c0_280 = arith.constant 0 : index
    %c0_281 = arith.constant 0 : index
    %308 = vector.load %arg5[%c17_279, %c0_280, %c0_281] : memref<25x8x8xbf16, #tpu.memory_space<vmem>>, vector<1x8x8xbf16>
    %309 = vector.shape_cast %308 : vector<1x8x8xbf16> to vector<8x8xbf16>
    %c0_282 = arith.constant 0 : index
    %c48_283 = arith.constant 48 : index
    %310 = vector.load %arg15[%c0_282, %c48_283] : memref<8x320xbf16, #tpu.memory_space<vmem>>, vector<8x256xbf16>
    %cst_284 = arith.constant dense<0.000000e+00> : vector<8x256xf32>
    %311 = tpu.matmul %309, %310, %cst_284 {dimension_numbers = #tpu.dot_dimension_numbers<[1], [0], [0], [1], [0, 0, 1, 1], [], []>} : vector<8x8xbf16>, vector<8x256xbf16>, vector<8x256xf32> -> vector<8x256xf32>
    %312 = arith.addf %307, %311 : vector<8x256xf32>
    %c22_285 = arith.constant 22 : index
    %c0_286 = arith.constant 0 : index
    %c0_287 = arith.constant 0 : index
    %313 = vector.load %arg5[%c22_285, %c0_286, %c0_287] : memref<25x8x8xbf16, #tpu.memory_space<vmem>>, vector<1x8x8xbf16>
    %314 = vector.shape_cast %313 : vector<1x8x8xbf16> to vector<8x8xbf16>
    %c0_288 = arith.constant 0 : index
    %c64_289 = arith.constant 64 : index
    %315 = vector.load %arg15[%c0_288, %c64_289] : memref<8x320xbf16, #tpu.memory_space<vmem>>, vector<8x256xbf16>
    %cst_290 = arith.constant dense<0.000000e+00> : vector<8x256xf32>
    %316 = tpu.matmul %314, %315, %cst_290 {dimension_numbers = #tpu.dot_dimension_numbers<[1], [0], [0], [1], [0, 0, 1, 1], [], []>} : vector<8x8xbf16>, vector<8x256xbf16>, vector<8x256xf32> -> vector<8x256xf32>
    %317 = arith.addf %312, %316 : vector<8x256xf32>
    %c0_291 = arith.constant 0 : index
    %c97_292 = arith.constant 97 : index
    %318 = vector.load %arg14[%c0_291, %c97_292] : memref<8x512xf32, #tpu.memory_space<vmem>>, vector<8x320xf32>
    %c3_293 = arith.constant 3 : index
    %c0_294 = arith.constant 0 : index
    %319 = vector.load %arg10[%c3_293, %c0_294] : memref<5x320xf32, #tpu.memory_space<vmem>>, vector<1x320xf32>
    %320 = vector.broadcast %319 : vector<1x320xf32> to vector<8x320xf32>
    %321 = arith.mulf %318, %320 : vector<8x320xf32>
    %322 = arith.truncf %321 : vector<8x320xf32> to vector<8x320xbf16>
    %c0_295 = arith.constant 0 : index
    %c0_296 = arith.constant 0 : index
    %323 = vector.load %arg15[%c0_295, %c0_296] : memref<8x320xbf16, #tpu.memory_space<vmem>>, vector<8x320xbf16>
    tpu.vector_store %arg15[%c0_295, %c0_296], %322 {strides = array<i32>} : memref<8x320xbf16, #tpu.memory_space<vmem>>, vector<8x320xbf16>,
    %c3_297 = arith.constant 3 : index
    %c0_298 = arith.constant 0 : index
    %c0_299 = arith.constant 0 : index
    %324 = vector.load %arg5[%c3_297, %c0_298, %c0_299] : memref<25x8x8xbf16, #tpu.memory_space<vmem>>, vector<1x8x8xbf16>
    %325 = vector.shape_cast %324 : vector<1x8x8xbf16> to vector<8x8xbf16>
    %c0_300 = arith.constant 0 : index
    %c0_301 = arith.constant 0 : index
    %326 = vector.load %arg15[%c0_300, %c0_301] : memref<8x320xbf16, #tpu.memory_space<vmem>>, vector<8x256xbf16>
    %cst_302 = arith.constant dense<0.000000e+00> : vector<8x256xf32>
    %327 = tpu.matmul %325, %326, %cst_302 {dimension_numbers = #tpu.dot_dimension_numbers<[1], [0], [0], [1], [0, 0, 1, 1], [], []>} : vector<8x8xbf16>, vector<8x256xbf16>, vector<8x256xf32> -> vector<8x256xf32>
    %328 = arith.addf %317, %327 : vector<8x256xf32>
    %c8_303 = arith.constant 8 : index
    %c0_304 = arith.constant 0 : index
    %c0_305 = arith.constant 0 : index
    %329 = vector.load %arg5[%c8_303, %c0_304, %c0_305] : memref<25x8x8xbf16, #tpu.memory_space<vmem>>, vector<1x8x8xbf16>
    %330 = vector.shape_cast %329 : vector<1x8x8xbf16> to vector<8x8xbf16>
    %c0_306 = arith.constant 0 : index
    %c16_307 = arith.constant 16 : index
    %331 = vector.load %arg15[%c0_306, %c16_307] : memref<8x320xbf16, #tpu.memory_space<vmem>>, vector<8x256xbf16>
    %cst_308 = arith.constant dense<0.000000e+00> : vector<8x256xf32>
    %332 = tpu.matmul %330, %331, %cst_308 {dimension_numbers = #tpu.dot_dimension_numbers<[1], [0], [0], [1], [0, 0, 1, 1], [], []>} : vector<8x8xbf16>, vector<8x256xbf16>, vector<8x256xf32> -> vector<8x256xf32>
    %333 = arith.addf %328, %332 : vector<8x256xf32>
    %c13_309 = arith.constant 13 : index
    %c0_310 = arith.constant 0 : index
    %c0_311 = arith.constant 0 : index
    %334 = vector.load %arg5[%c13_309, %c0_310, %c0_311] : memref<25x8x8xbf16, #tpu.memory_space<vmem>>, vector<1x8x8xbf16>
    %335 = vector.shape_cast %334 : vector<1x8x8xbf16> to vector<8x8xbf16>
    %c0_312 = arith.constant 0 : index
    %c32_313 = arith.constant 32 : index
    %336 = vector.load %arg15[%c0_312, %c32_313] : memref<8x320xbf16, #tpu.memory_space<vmem>>, vector<8x256xbf16>
    %cst_314 = arith.constant dense<0.000000e+00> : vector<8x256xf32>
    %337 = tpu.matmul %335, %336, %cst_314 {dimension_numbers = #tpu.dot_dimension_numbers<[1], [0], [0], [1], [0, 0, 1, 1], [], []>} : vector<8x8xbf16>, vector<8x256xbf16>, vector<8x256xf32> -> vector<8x256xf32>
    %338 = arith.addf %333, %337 : vector<8x256xf32>
    %c18_315 = arith.constant 18 : index
    %c0_316 = arith.constant 0 : index
    %c0_317 = arith.constant 0 : index
    %339 = vector.load %arg5[%c18_315, %c0_316, %c0_317] : memref<25x8x8xbf16, #tpu.memory_space<vmem>>, vector<1x8x8xbf16>
    %340 = vector.shape_cast %339 : vector<1x8x8xbf16> to vector<8x8xbf16>
    %c0_318 = arith.constant 0 : index
    %c48_319 = arith.constant 48 : index
    %341 = vector.load %arg15[%c0_318, %c48_319] : memref<8x320xbf16, #tpu.memory_space<vmem>>, vector<8x256xbf16>
    %cst_320 = arith.constant dense<0.000000e+00> : vector<8x256xf32>
    %342 = tpu.matmul %340, %341, %cst_320 {dimension_numbers = #tpu.dot_dimension_numbers<[1], [0], [0], [1], [0, 0, 1, 1], [], []>} : vector<8x8xbf16>, vector<8x256xbf16>, vector<8x256xf32> -> vector<8x256xf32>
    %343 = arith.addf %338, %342 : vector<8x256xf32>
    %c23_321 = arith.constant 23 : index
    %c0_322 = arith.constant 0 : index
    %c0_323 = arith.constant 0 : index
    %344 = vector.load %arg5[%c23_321, %c0_322, %c0_323] : memref<25x8x8xbf16, #tpu.memory_space<vmem>>, vector<1x8x8xbf16>
    %345 = vector.shape_cast %344 : vector<1x8x8xbf16> to vector<8x8xbf16>
    %c0_324 = arith.constant 0 : index
    %c64_325 = arith.constant 64 : index
    %346 = vector.load %arg15[%c0_324, %c64_325] : memref<8x320xbf16, #tpu.memory_space<vmem>>, vector<8x256xbf16>
    %cst_326 = arith.constant dense<0.000000e+00> : vector<8x256xf32>
    %347 = tpu.matmul %345, %346, %cst_326 {dimension_numbers = #tpu.dot_dimension_numbers<[1], [0], [0], [1], [0, 0, 1, 1], [], []>} : vector<8x8xbf16>, vector<8x256xbf16>, vector<8x256xf32> -> vector<8x256xf32>
    %348 = arith.addf %343, %347 : vector<8x256xf32>
    %c0_327 = arith.constant 0 : index
    %c98_328 = arith.constant 98 : index
    %349 = vector.load %arg14[%c0_327, %c98_328] : memref<8x512xf32, #tpu.memory_space<vmem>>, vector<8x320xf32>
    %c4_329 = arith.constant 4 : index
    %c0_330 = arith.constant 0 : index
    %350 = vector.load %arg10[%c4_329, %c0_330] : memref<5x320xf32, #tpu.memory_space<vmem>>, vector<1x320xf32>
    %351 = vector.broadcast %350 : vector<1x320xf32> to vector<8x320xf32>
    %352 = arith.mulf %349, %351 : vector<8x320xf32>
    %353 = arith.truncf %352 : vector<8x320xf32> to vector<8x320xbf16>
    %c0_331 = arith.constant 0 : index
    %c0_332 = arith.constant 0 : index
    %354 = vector.load %arg15[%c0_331, %c0_332] : memref<8x320xbf16, #tpu.memory_space<vmem>>, vector<8x320xbf16>
    tpu.vector_store %arg15[%c0_331, %c0_332], %353 {strides = array<i32>} : memref<8x320xbf16, #tpu.memory_space<vmem>>, vector<8x320xbf16>,
    %c4_333 = arith.constant 4 : index
    %c0_334 = arith.constant 0 : index
    %c0_335 = arith.constant 0 : index
    %355 = vector.load %arg5[%c4_333, %c0_334, %c0_335] : memref<25x8x8xbf16, #tpu.memory_space<vmem>>, vector<1x8x8xbf16>
    %356 = vector.shape_cast %355 : vector<1x8x8xbf16> to vector<8x8xbf16>
    %c0_336 = arith.constant 0 : index
    %c0_337 = arith.constant 0 : index
    %357 = vector.load %arg15[%c0_336, %c0_337] : memref<8x320xbf16, #tpu.memory_space<vmem>>, vector<8x256xbf16>
    %cst_338 = arith.constant dense<0.000000e+00> : vector<8x256xf32>
    %358 = tpu.matmul %356, %357, %cst_338 {dimension_numbers = #tpu.dot_dimension_numbers<[1], [0], [0], [1], [0, 0, 1, 1], [], []>} : vector<8x8xbf16>, vector<8x256xbf16>, vector<8x256xf32> -> vector<8x256xf32>
    %359 = arith.addf %348, %358 : vector<8x256xf32>
    %c9_339 = arith.constant 9 : index
    %c0_340 = arith.constant 0 : index
    %c0_341 = arith.constant 0 : index
    %360 = vector.load %arg5[%c9_339, %c0_340, %c0_341] : memref<25x8x8xbf16, #tpu.memory_space<vmem>>, vector<1x8x8xbf16>
    %361 = vector.shape_cast %360 : vector<1x8x8xbf16> to vector<8x8xbf16>
    %c0_342 = arith.constant 0 : index
    %c16_343 = arith.constant 16 : index
    %362 = vector.load %arg15[%c0_342, %c16_343] : memref<8x320xbf16, #tpu.memory_space<vmem>>, vector<8x256xbf16>
    %cst_344 = arith.constant dense<0.000000e+00> : vector<8x256xf32>
    %363 = tpu.matmul %361, %362, %cst_344 {dimension_numbers = #tpu.dot_dimension_numbers<[1], [0], [0], [1], [0, 0, 1, 1], [], []>} : vector<8x8xbf16>, vector<8x256xbf16>, vector<8x256xf32> -> vector<8x256xf32>
    %364 = arith.addf %359, %363 : vector<8x256xf32>
    %c14_345 = arith.constant 14 : index
    %c0_346 = arith.constant 0 : index
    %c0_347 = arith.constant 0 : index
    %365 = vector.load %arg5[%c14_345, %c0_346, %c0_347] : memref<25x8x8xbf16, #tpu.memory_space<vmem>>, vector<1x8x8xbf16>
    %366 = vector.shape_cast %365 : vector<1x8x8xbf16> to vector<8x8xbf16>
    %c0_348 = arith.constant 0 : index
    %c32_349 = arith.constant 32 : index
    %367 = vector.load %arg15[%c0_348, %c32_349] : memref<8x320xbf16, #tpu.memory_space<vmem>>, vector<8x256xbf16>
    %cst_350 = arith.constant dense<0.000000e+00> : vector<8x256xf32>
    %368 = tpu.matmul %366, %367, %cst_350 {dimension_numbers = #tpu.dot_dimension_numbers<[1], [0], [0], [1], [0, 0, 1, 1], [], []>} : vector<8x8xbf16>, vector<8x256xbf16>, vector<8x256xf32> -> vector<8x256xf32>
    %369 = arith.addf %364, %368 : vector<8x256xf32>
    %c19_351 = arith.constant 19 : index
    %c0_352 = arith.constant 0 : index
    %c0_353 = arith.constant 0 : index
    %370 = vector.load %arg5[%c19_351, %c0_352, %c0_353] : memref<25x8x8xbf16, #tpu.memory_space<vmem>>, vector<1x8x8xbf16>
    %371 = vector.shape_cast %370 : vector<1x8x8xbf16> to vector<8x8xbf16>
    %c0_354 = arith.constant 0 : index
    %c48_355 = arith.constant 48 : index
    %372 = vector.load %arg15[%c0_354, %c48_355] : memref<8x320xbf16, #tpu.memory_space<vmem>>, vector<8x256xbf16>
    %cst_356 = arith.constant dense<0.000000e+00> : vector<8x256xf32>
    %373 = tpu.matmul %371, %372, %cst_356 {dimension_numbers = #tpu.dot_dimension_numbers<[1], [0], [0], [1], [0, 0, 1, 1], [], []>} : vector<8x8xbf16>, vector<8x256xbf16>, vector<8x256xf32> -> vector<8x256xf32>
    %374 = arith.addf %369, %373 : vector<8x256xf32>
    %c24_357 = arith.constant 24 : index
    %c0_358 = arith.constant 0 : index
    %c0_359 = arith.constant 0 : index
    %375 = vector.load %arg5[%c24_357, %c0_358, %c0_359] : memref<25x8x8xbf16, #tpu.memory_space<vmem>>, vector<1x8x8xbf16>
    %376 = vector.shape_cast %375 : vector<1x8x8xbf16> to vector<8x8xbf16>
    %c0_360 = arith.constant 0 : index
    %c64_361 = arith.constant 64 : index
    %377 = vector.load %arg15[%c0_360, %c64_361] : memref<8x320xbf16, #tpu.memory_space<vmem>>, vector<8x256xbf16>
    %cst_362 = arith.constant dense<0.000000e+00> : vector<8x256xf32>
    %378 = tpu.matmul %376, %377, %cst_362 {dimension_numbers = #tpu.dot_dimension_numbers<[1], [0], [0], [1], [0, 0, 1, 1], [], []>} : vector<8x8xbf16>, vector<8x256xbf16>, vector<8x256xf32> -> vector<8x256xf32>
    %379 = arith.addf %374, %378 : vector<8x256xf32>
    %380 = vector.extract_strided_slice %3 {offsets = [0, 2], sizes = [8, 1], strides = [1, 1]} : vector<8x8xf32> to vector<8x1xf32>
    %381 = vector.broadcast %380 : vector<8x1xf32> to vector<8x256xf32>
    %382 = arith.mulf %381, %211 : vector<8x256xf32>
    %383 = vector.extract_strided_slice %3 {offsets = [0, 3], sizes = [8, 1], strides = [1, 1]} : vector<8x8xf32> to vector<8x1xf32>
    %384 = vector.broadcast %383 : vector<8x1xf32> to vector<8x256xf32>
    %385 = arith.mulf %384, %379 : vector<8x256xf32>
    %386 = arith.addf %382, %385 : vector<8x256xf32>
    %387 = vector.extract_strided_slice %3 {offsets = [0, 4], sizes = [8, 1], strides = [1, 1]} : vector<8x8xf32> to vector<8x1xf32>
    %388 = vector.broadcast %387 : vector<8x1xf32> to vector<8x256xf32>
    %389 = arith.mulf %388, %211 : vector<8x256xf32>
    %390 = arith.mulf %389, %379 : vector<8x256xf32>
    %391 = arith.addf %386, %390 : vector<8x256xf32>
    %cst_363 = arith.constant 0.000000e+00 : f32
    %392 = vector.broadcast %cst_363 : f32 to vector<8x256xf32>
    %393 = arith.maximumf %391, %392 : vector<8x256xf32>
    %394 = math.absf %391 : vector<8x256xf32>
    %cst_364 = arith.constant 0.000000e+00 : f32
    %395 = vector.broadcast %cst_364 : f32 to vector<8x256xf32>
    %396 = arith.subf %395, %394 : vector<8x256xf32>
    %397 = math.exp %396 : vector<8x256xf32>
    %cst_365 = arith.constant 1.000000e+00 : f32
    %398 = vector.broadcast %cst_365 : f32 to vector<8x256xf32>
    %399 = arith.addf %398, %397 : vector<8x256xf32>
    %400 = math.log %399 : vector<8x256xf32>
    %401 = arith.addf %393, %400 : vector<8x256xf32>
    %402 = arith.subf %401, %12 : vector<8x256xf32>
    %403 = arith.mulf %224, %402 : vector<8x256xf32>
    %404 = arith.addf %12, %403 : vector<8x256xf32>
    %c0_366 = arith.constant 0 : index
    %c0_367 = arith.constant 0 : index
    %405 = vector.load %arg13[%c0_366, %c0_367] : memref<8x256xf32, #tpu.memory_space<vmem>>, vector<8x256xf32>
    tpu.vector_store %arg13[%c0_366, %c0_367], %404 {strides = array<i32>} : memref<8x256xf32, #tpu.memory_space<vmem>>, vector<8x256xf32>,
    %c0_368 = arith.constant 0 : index
    %c0_369 = arith.constant 0 : index
    %406 = vector.load %arg9[%c0_368, %c0_369] : memref<1x8xf32, #tpu.memory_space<vmem>>, vector<1x8xf32>
    %cst_370 = arith.constant dense<0.000000e+00> : vector<1x256xf32>
    %407 = tpu.matmul %406, %404, %cst_370 {dimension_numbers = #tpu.dot_dimension_numbers<[1], [0], [0], [1], [0, 0, 1, 1], [], []>} : vector<1x8xf32>, vector<8x256xf32>, vector<1x256xf32> -> vector<1x256xf32>
    %c0_371 = arith.constant 0 : index
    %408 = arith.index_cast %arg1 : i32 to index
    %c0_372 = arith.constant 0 : index
    %409 = vector.load %arg11[%c0_371, %408, %c0_372] : memref<1x8x256xf32, #tpu.memory_space<vmem>>, vector<1x1x256xf32>
    %410 = vector.shape_cast %409 : vector<1x1x256xf32> to vector<1x256xf32>
    %411 = vector.shape_cast %407 : vector<1x256xf32> to vector<1x1x256xf32>
    tpu.vector_store %arg11[%c0_371, %408, %c0_372], %411 {strides = array<i32>} : memref<1x8x256xf32, #tpu.memory_space<vmem>>, vector<1x1x256xf32>,
    return
  }
  func.func @transform_0(%arg0: i32, %arg1: i32) -> (i32, i32, i32, i32) {
    %c0_i32 = arith.constant 0 : i32
    %c0_i32_0 = arith.constant 0 : i32
    %c0_i32_1 = arith.constant 0 : i32
    return %arg0, %arg1, %c0_i32, %c0_i32_0 : i32, i32, i32, i32
  }
  func.func @transform_1(%arg0: i32, %arg1: i32) -> (i32, i32) {
    %c0_i32 = arith.constant 0 : i32
    %c0_i32_0 = arith.constant 0 : i32
    %c0_i32_1 = arith.constant 0 : i32
    return %c0_i32, %c0_i32_0 : i32, i32
  }
  func.func @transform_2(%arg0: i32, %arg1: i32) -> (i32, i32, i32) {
    %c0_i32 = arith.constant 0 : i32
    %c0_i32_0 = arith.constant 0 : i32
    %c0_i32_1 = arith.constant 0 : i32
    %c0_i32_2 = arith.constant 0 : i32
    return %c0_i32, %c0_i32_0, %c0_i32_1 : i32, i32, i32
  }
  func.func @transform_3(%arg0: i32, %arg1: i32) -> (i32, i32, i32) {
    %c0_i32 = arith.constant 0 : i32
    %c0_i32_0 = arith.constant 0 : i32
    %c0_i32_1 = arith.constant 0 : i32
    %c0_i32_2 = arith.constant 0 : i32
    return %c0_i32, %c0_i32_0, %c0_i32_1 : i32, i32, i32
  }
  func.func @transform_4(%arg0: i32, %arg1: i32) -> (i32, i32) {
    %c0_i32 = arith.constant 0 : i32
    %c0_i32_0 = arith.constant 0 : i32
    %c0_i32_1 = arith.constant 0 : i32
    return %c0_i32, %c0_i32_0 : i32, i32
  }
  func.func @transform_5(%arg0: i32, %arg1: i32) -> (i32, i32) {
    %c0_i32 = arith.constant 0 : i32
    %c0_i32_0 = arith.constant 0 : i32
    %c0_i32_1 = arith.constant 0 : i32
    return %c0_i32, %c0_i32_0 : i32, i32
  }
  func.func @transform_6(%arg0: i32, %arg1: i32) -> (i32, i32) {
    %c0_i32 = arith.constant 0 : i32
    %c0_i32_0 = arith.constant 0 : i32
    %c0_i32_1 = arith.constant 0 : i32
    return %c0_i32, %c0_i32_0 : i32, i32
  }
  func.func @transform_7(%arg0: i32, %arg1: i32) -> (i32, i32) {
    %c0_i32 = arith.constant 0 : i32
    %c0_i32_0 = arith.constant 0 : i32
    %c0_i32_1 = arith.constant 0 : i32
    return %c0_i32, %c0_i32_0 : i32, i32
  }
  func.func @transform_8(%arg0: i32, %arg1: i32) -> (i32, i32) {
    %c0_i32 = arith.constant 0 : i32
    %c0_i32_0 = arith.constant 0 : i32
    %c0_i32_1 = arith.constant 0 : i32
    return %c0_i32, %c0_i32_0 : i32, i32
  }
  func.func @transform_9(%arg0: i32, %arg1: i32) -> (i32, i32, i32) {
    %c0_i32 = arith.constant 0 : i32
    %c0_i32_0 = arith.constant 0 : i32
    %c0_i32_1 = arith.constant 0 : i32
    return %arg0, %c0_i32, %c0_i32_0 : i32, i32, i32
  }
}

module attributes {stable_mosaic.version = 11 : i64} {
  func.func @_dense_kernel(%arg0: i32, %arg1: memref<2x2048xf32, #tpu.memory_space<vmem>>, %arg2: memref<2048x1xf32, #tpu.memory_space<vmem>>, %arg3: memref<1x1xf32, #tpu.memory_space<vmem>>, %arg4: memref<2x1xf32, #tpu.memory_space<vmem>>, %arg5: memref<2x1xf32, #tpu.memory_space<vmem>>) attributes {dimension_semantics = [#tpu.dimension_semantics<arbitrary>], iteration_bounds = array<i64: 1>, scalar_prefetch = 0 : i64, scratch_operands = 1 : i64, tpu.core_type = #tpu.core_type<tc>, window_params = [{transform_indices = @transform_0, window_bounds = array<i64: 2, 2048>}, {transform_indices = @transform_1, window_bounds = array<i64: 2048, 1>}, {pipeline_mode = #tpu.pipeline_mode<synchronous>, transform_indices = @transform_2, window_bounds = array<i64: 1, 1>}, {pipeline_mode = #tpu.pipeline_mode<synchronous>, transform_indices = @transform_3, window_bounds = array<i64: 2, 1>}]} {
    %c0_i32 = arith.constant 0 : i32
    %0 = arith.cmpi eq, %arg0, %c0_i32 : i32
    %1 = arith.extui %0 : i1 to i32
    %c0_i32_0 = arith.constant 0 : i32
    %2 = arith.cmpi ne, %1, %c0_i32_0 : i32
    scf.if %2 {
      %cst_10 = arith.constant 0.000000e+00 : f32
      %12 = vector.broadcast %cst_10 : f32 to vector<2x1xf32>
      %c0_11 = arith.constant 0 : index
      %c0_12 = arith.constant 0 : index
      %13 = vector.load %arg5[%c0_11, %c0_12] : memref<2x1xf32, #tpu.memory_space<vmem>>, vector<2x1xf32>
      tpu.vector_store %arg5[%c0_11, %c0_12], %12 {strides = array<i32>} : memref<2x1xf32, #tpu.memory_space<vmem>>, vector<2x1xf32>,
    } else {
    }
    %c0 = arith.constant 0 : index
    %c0_1 = arith.constant 0 : index
    %3 = vector.load %arg5[%c0, %c0_1] : memref<2x1xf32, #tpu.memory_space<vmem>>, vector<2x1xf32>
    %c0_2 = arith.constant 0 : index
    %c0_3 = arith.constant 0 : index
    %4 = vector.load %arg1[%c0_2, %c0_3] : memref<2x2048xf32, #tpu.memory_space<vmem>>, vector<2x2048xf32>
    %c0_4 = arith.constant 0 : index
    %c0_5 = arith.constant 0 : index
    %5 = vector.load %arg2[%c0_4, %c0_5] : memref<2048x1xf32, #tpu.memory_space<vmem>>, vector<2048x1xf32>
    %cst = arith.constant dense<0.000000e+00> : vector<2x1xf32>
    %6 = tpu.matmul %4, %5, %cst {dimension_numbers = #tpu.dot_dimension_numbers<[1], [0], [0], [1], [0, 0, 1, 1], [], []>} : vector<2x2048xf32>, vector<2048x1xf32>, vector<2x1xf32> -> vector<2x1xf32>
    %7 = arith.addf %3, %6 : vector<2x1xf32>
    %c0_6 = arith.constant 0 : index
    %c0_7 = arith.constant 0 : index
    %8 = vector.load %arg5[%c0_6, %c0_7] : memref<2x1xf32, #tpu.memory_space<vmem>>, vector<2x1xf32>
    tpu.vector_store %arg5[%c0_6, %c0_7], %7 {strides = array<i32>} : memref<2x1xf32, #tpu.memory_space<vmem>>, vector<2x1xf32>,
    %c0_i32_8 = arith.constant 0 : i32
    %9 = arith.cmpi eq, %arg0, %c0_i32_8 : i32
    %10 = arith.extui %9 : i1 to i32
    %c0_i32_9 = arith.constant 0 : i32
    %11 = arith.cmpi ne, %10, %c0_i32_9 : i32
    scf.if %11 {
      %c0_10 = arith.constant 0 : index
      %c0_11 = arith.constant 0 : index
      %12 = vector.load %arg5[%c0_10, %c0_11] : memref<2x1xf32, #tpu.memory_space<vmem>>, vector<2x1xf32>
      %c0_12 = arith.constant 0 : index
      %c0_13 = arith.constant 0 : index
      %13 = vector.load %arg3[%c0_12, %c0_13] : memref<1x1xf32, #tpu.memory_space<vmem>>, vector<1x1xf32>
      %14 = vector.broadcast %13 : vector<1x1xf32> to vector<2x1xf32>
      %15 = arith.addf %12, %14 : vector<2x1xf32>
      %c0_14 = arith.constant 0 : index
      %c0_15 = arith.constant 0 : index
      %16 = vector.load %arg4[%c0_14, %c0_15] : memref<2x1xf32, #tpu.memory_space<vmem>>, vector<2x1xf32>
      tpu.vector_store %arg4[%c0_14, %c0_15], %15 {strides = array<i32>} : memref<2x1xf32, #tpu.memory_space<vmem>>, vector<2x1xf32>,
    } else {
    }
    return
  }
  func.func @transform_0(%arg0: i32) -> (i32, i32) {
    %c0_i32 = arith.constant 0 : i32
    %c0_i32_0 = arith.constant 0 : i32
    return %c0_i32, %arg0 : i32, i32
  }
  func.func @transform_1(%arg0: i32) -> (i32, i32) {
    %c0_i32 = arith.constant 0 : i32
    %c0_i32_0 = arith.constant 0 : i32
    return %arg0, %c0_i32 : i32, i32
  }
  func.func @transform_2(%arg0: i32) -> (i32, i32) {
    %c0_i32 = arith.constant 0 : i32
    %c0_i32_0 = arith.constant 0 : i32
    %c0_i32_1 = arith.constant 0 : i32
    return %c0_i32, %c0_i32_0 : i32, i32
  }
  func.func @transform_3(%arg0: i32) -> (i32, i32) {
    %c0_i32 = arith.constant 0 : i32
    %c0_i32_0 = arith.constant 0 : i32
    %c0_i32_1 = arith.constant 0 : i32
    return %c0_i32, %c0_i32_0 : i32, i32
  }
}

</mosaic_0001>

<bundles_post_ra>
// kernel: tpu_custom_call.1
= control target key start
LH: loop header
LB: loop body
LE: loop exit
PB: predicated region body
PF: predicated region fallthrough
CT: control target
= control target key end

     0   :  { %s833_s0 = inlined_call_operand.hbm [shape: f32[8,128], index: 0, kind: input, shape index: {}]   ;;  %s834_s1 = inlined_call_operand.hbm [shape: f32[16,256], index: 1, kind: input, shape index: {}]   ;;  %s835_s2 = inlined_call_operand.hbm [shape: f32[16,256], index: 2, kind: output, shape index: {}]  }
   0x1   :  { %842 = sst [smem:[#allocation14_spill]] %s833_s0 }
   0x2   :  { %7 = vsyncpa [#allocation4], 0 }
   0x3   :  { %8 = vsyncpa [#allocation7], 0 }
   0x4   :  { %10 = vsyncpa [#allocation7 + $0x1], 0 }
   0x5   :  { %11 = vsyncpa [#allocation5], 0 }
   0x6   :  { %13 = vsyncpa [#allocation5 + $0x1], 0  ;;  %s595_s9 = smov 0   ;;  %s597_s10 = smov 0  }
   0x7   :  { %s599_s11 = smov 0   ;;  %s601_s12 = smov 0  }
   0x8   :  { %s603_s13 = smov 0   ;;  %s605_s14 = smov 0  }
   0x9   :  { %s607_s15 = smov 0   ;;  %s609_s16 = smov 0  }
   0xa LB: > { %s309_s17 = sadd.s32 4294967295, %s575_s16   ;;  %s310_s18 = sadd.s32 4294967294, %s575_s16   ;;  %s575_s16 = sphi %s609_s16, %s19_s16   ;;  %s571_s15 = sphi %s607_s15, %s868_s15   ;;  %s567_s14 = sphi %s605_s14, %s867_s14   ;;  %s563_s13 = sphi %s603_s13, %s866_s13   ;;  %s559_s12 = sphi %s601_s12, %s865_s12   ;;  %s555_s11 = sphi %s599_s11, %s864_s11   ;;  %s551_s10 = sphi %s597_s10, %s863_s10   ;;  %s547_s9 = sphi %s595_s9, %s862_s9  }
   0xb   : > { %p74_p0 = scmp.ne.s32.totalorder %s551_s10, %s547_s9  ;;  %p639_p1 = scmp.eq.s32.totalorder %s309_s17, 0 }
   0xc   : > { %p643_p2 = scmp.eq.s32.totalorder %s309_s17, 3  ;;  %p106_p3 = scmp.eq.s32.totalorder %s310_s18, 3 }
   0xd   : > { %s843_s19 = scalar_select %p639_p1, 1, 0 }
   0xe   : > { %s844_s20 = scalar_select %p643_p2, 1, 0 }
   0xf   : > { %p649_p4 = por %p639_p1, %p74_p0  ;;  %p311_p5 = scmp.ge.s32.totalorder %s575_s16, 1 }
  0x10   : > { %p654_p6 = por %p106_p3, %p74_p0  ;;  %p113_p7 = scmp.lt.s32.totalorder %s575_s16, 5 }
  0x11   : > { %s845_s21 = scalar_select %p649_p4, 1, 0 }
  0x12   : > { %s846_s22 = scalar_select %p654_p6, 1, 0 }
  0x13   : > { %p659_p8 = pnand %p311_p5, %p113_p7  ;;  %s577_s24 = smov [#allocation3]  }
  0x14   : > { %847 = sst [smem:[#allocation12_spill]] %s846_s22  ;;  %s126_s25 = sshll.u32 %s577_s24, 4  ;;  %s127_s25 = int_to_ptr.vmem [resolvable:$true] %s126_s25 }
  0x15   : > { %s848_s23 = scalar_select %p659_p8, 1, 0 }
  0x16   : > { %p334_p9 = pneg %p659_p8  ;;  %s28_s27 = sadd.s32 1, %s567_s14 }
  0x17   : > { %s850_s0 = sld [smem:[#allocation14_spill]] }
  0x18   : > { %p667_p10 = pnand %p334_p9, %p639_p1 }
  0x1a   : > { %p417_p12 = pneg %p667_p10 }
  0x1d   : > { %s415_s30 = scalar_lea.hbm %s850_s0, 128 }
  0x1e   : > { %p416_p11 = scmp.ne.s32.totalorder %s850_s0, %s415_s30  ;;  %p422_p3 = scmp.lt.u32.totalorder %s415_s30, %s850_s0 }
  0x20   : > { %p418_p13 = pnand %p417_p12, %p416_p11 }
  0x22   : > { %p419_p0 = pneg %p418_p13 }
  0x24   : > { %p424_p5 = pnand %p422_p3, %p419_p0 }
  0x26   : > { %427 = shalt.err (!%p424_p5)
}
  0x27   : > { %s428_s7 = scalar_lea.vmem %s127_s25, 128  ;;  %p436_p4 = scmp.lt.s32.totalorder %s127_s25, %s127_s25 }
  0x28   : > { %p429_p7 = scmp.ne.s32.totalorder %s127_s25, %s428_s7  ;;  %p437_p1 = scmp.lt.s32.totalorder %s428_s7, %s428_s7 }
  0x2a   : > { %p431_p9 = pnand %p429_p7, %p417_p12  ;;  %p438_p8 = por %p437_p1, %p436_p4 }
  0x2c   : > { %p432_p6 = pneg %p431_p9 }
  0x2e   : > { %p439_p2 = pnand %p438_p8, %p432_p6 }
  0x30   : > { %442 = shalt.err (!%p439_p2)
}
  0x31   : > { %337 = dma.hbm_to_vmem [thread:$0]  (!%p667_p10), %s850_s0, 128, %s127_s25, [#allocation4]  }
  0x32   : > { %p29_p1 = scmp.ge.s32.totalorder %s28_s27, 2  ;;  %s31_s18 = sadd.s32 1, %s571_s15 }
  0x33   : > { %s61_s24 = sadd.s32 1, %s555_s11  ;;  %p68_p2 = scmp.ne.s32.totalorder %s555_s11, %s551_s10 }
  0x34   : > { %s870_s27 = smov (%p29_p1, %s28_s27), 0  ;;  %s872_s18 = smov (!%p29_p1, %s31_s18), %s571_s15 }
  0x35   : > { %851 = sst [smem:[#allocation13_spill]] %s870_s27  ;;  %s57_s26 = ssub.s32 %s567_s14, %s870_s27 }
  0x36   : > { %p69_p4 = scmp.eq.s32.totalorder %s575_s16, 0  ;;  %p33_p6 = scmp.ge.s32.totalorder %s872_s18, 2 }
  0x37   : > { %p852_p8 = scmp.ne.s32.totalorder %s844_s20, 0  ;;  %p347_p12 = scmp.lt.s32.totalorder %s575_s16, 4 }
  0x38   : > { %p704_p10 = por %p69_p4, %p68_p2  ;;  %s874_s18 = smov (%p33_p6, %s872_s18), 0 }
  0x39   : > { %p700_p11 = por %p852_p8, %p68_p2  ;;  %s137_s29 = sand.u32 1, %s555_s11  }
  0x3a   : > { %s315_s30 = sshll.u32 %s571_s15, 1  ;;  %s56_s3 = ssub.s32 %s571_s15, %s874_s18 }
  0x3b   : > { %s58_s4 = sor.u32 %s57_s26, %s56_s3  ;;  %s314_s5 = sshll.u32 %s137_s29, 3 }
  0x3c   : > { %p59_p13 = scmp.eq.s32.totalorder %s58_s4, 0  ;;  %s146_s20 = sadd.s32 %s567_s14, %s315_s30 }
  0x3d   : > { %s141_s6 = scalar_lea.vmem [#allocation6], %s314_s5  ;;  %s316_s17 = sshll.u32 %s146_s20, 7 }
  0x3e   : > { %s150_s7 = sshll.u32 %s141_s6, 4  ;;  %s724_s22 = scalar_lea.hbm %s834_s1, %s316_s17  ;;  %s719_s7 = int_to_ptr.vmem [resolvable:$true] %s150_s7 }
  0x3f   : > { %s717_s8 = scalar_select %p59_p13, %s555_s11, %s61_s24  }
  0x40   : > { %p730_p0 = pnand %p347_p12, %p704_p10  ;;  %s138_s24 = scalar_lea.sflag [#allocation7], %s137_s29 }
  0x41   : > { %s443_s30 = scalar_lea.hbm %s724_s22, 128  ;;  %s448_s25 = scalar_lea.hbm %s834_s1, 512 }
  0x42   : > { %p444_p3 = scmp.ne.s32.totalorder %s724_s22, %s443_s30  ;;  %p445_p5 = pneg %p730_p0 }
  0x43   : > { %p449_p1 = scmp.lt.u32.totalorder %s724_s22, %s834_s1  ;;  %p450_p2 = scmp.lt.u32.totalorder %s448_s25, %s443_s30 }
  0x44   : > { %p446_p7 = pnand %p445_p5, %p444_p3  ;;  %p452_p6 = scmp.lt.u32.totalorder %s443_s30, %s724_s22 }
  0x45   : > { %p451_p4 = por %p450_p2, %p449_p1 }
  0x46   : > { %p447_p9 = pneg %p446_p7 }
  0x47   : > { %p453_p8 = por %p452_p6, %p451_p4 }
  0x49   : > { %p454_p10 = pnand %p453_p8, %p447_p9 }
  0x4b   : > { %457 = shalt.err (!%p454_p10)
}
  0x4c   : > { %s458_s29 = scalar_lea.vmem %s719_s7, 128  ;;  %s578_s5 = smov [#allocation6]  }
  0x4d   : > { %p459_p12 = scmp.ne.s32.totalorder %s719_s7, %s458_s29  ;;  %s463_s20 = sshll.u32 %s578_s5, 4  ;;  %s464_s20 = int_to_ptr.vmem [resolvable:$false] %s463_s20 }
  0x4e   : > { %s465_s6 = scalar_lea.vmem %s464_s20, 256  ;;  %p466_p7 = scmp.lt.s32.totalorder %s719_s7, %s464_s20 }
  0x4f   : > { %p461_p13 = pnand %p459_p12, %p445_p5  ;;  %p467_p1 = scmp.lt.s32.totalorder %s465_s6, %s458_s29 }
  0x51   : > { %p462_p3 = pneg %p461_p13  ;;  %p468_p2 = por %p467_p1, %p466_p7 }
  0x53   : > { %p469_p4 = pnand %p468_p2, %p462_p3 }
  0x55   : > { %472 = shalt.err (!%p469_p4)
}
  0x56   : > { %341 = dma.hbm_to_vmem [thread:$0]  (!%p730_p0), %s724_s22, 128, %s719_s7, %s138_s24  }
  0x57   : > { %p856_p9 = scmp.ne.s32.totalorder %s848_s23, 0 }
  0x58   : > { %p857_p5 = scmp.ne.s32.totalorder (!%p856_p9), %s843_s19, 0 }
  0x59   : > { %159 = sbr.rel (%p856_p9) target bundleno = 127 (0x7f), region = 28 }
  0x60   : > { %534 = dma.done.wait (%p857_p5), [#allocation4], 128  }
  0x61   : > { %536 = vsyncadd (%p857_p5), [#allocation4], 4294967168  ;;  %s766_s17 = sand.u32 1, %s551_s10   ;;  %p858_p6 = scmp.ne.s32.totalorder %s845_s21, 0 }
  0x62   : > { %s319_s30 = sshll.u32 %s766_s17, 3  ;;  %s166_s26 = scalar_lea.sflag [#allocation7], %s766_s17 }
  0x63   : > { %s169_s0 = scalar_lea.vmem [#allocation6], %s319_s30 }
  0x64   : > { %538 = dma.done.wait (%p858_p6), %s166_s26, 128  }
  0x65   : > { %540 = vsyncadd (%p858_p6), %s166_s26, 4294967168  ;;  %s322_s19 = sshll.u32 %s563_s13, 1  ;;  %s189_s23 = scalar_lea.vmem [#allocation8], %s319_s30  ;;  %v190_v0 = vld [vmem:[%s169_s0] sm:$0xff]  ;;  %v191_v1 = vld [vmem:[#allocation3] sm:$0xff] }
  0x66   : > { %s208_s22 = sadd.s32 %s559_s12, %s322_s19  ;;  %s212_s7 = sshll.u32 %s189_s23, 4  ;;  %v192_v2 = vadd.f32 %v191_v1, %v190_v0  ;;  %s776_s7 = int_to_ptr.vmem [resolvable:$true] %s212_s7 }
  0x67   : > { %s323_s24 = sshll.u32 %s208_s22, 7  ;;  %s197_s3 = scalar_lea.sflag [#allocation5], %s766_s17 }
  0x68   : > { %s781_s21 = scalar_lea.hbm %s835_s2, %s323_s24  ;;  %195 = vst [vmem:[%s189_s23] sm:$0xff] %v192_v2  ;;  %s473_s13 = scalar_lea.vmem %s776_s7, 128 }
  0x69   : > { %p474_p0 = scmp.ne.s32.totalorder %s776_s7, %s473_s13  ;;  %s579_s12 = smov [#allocation8]  }
  0x6a   : > { %s477_s4 = sshll.u32 %s579_s12, 4  ;;  %s478_s4 = int_to_ptr.vmem [resolvable:$false] %s477_s4 }
  0x6b   : > { %p475_p8 = pnand %p474_p0, %p700_p11  ;;  %s479_s29 = scalar_lea.vmem %s478_s4, 256 }
  0x6c   : > { %p480_p12 = scmp.lt.s32.totalorder %s776_s7, %s478_s4  ;;  %p481_p13 = scmp.lt.s32.totalorder %s479_s29, %s473_s13 }
  0x6d   : > { %p476_p10 = pneg %p475_p8 }
  0x6e   : > { %p482_p3 = por %p481_p13, %p480_p12 }
  0x70   : > { %p483_p7 = pnand %p482_p3, %p476_p10 }
  0x72   : > { %486 = shalt.err (!%p483_p7)
}
  0x73   : > { %s487_s5 = scalar_lea.hbm %s781_s21, 128  ;;  %s491_s17 = scalar_lea.hbm %s835_s2, 512 }
  0x74   : > { %p488_p1 = scmp.ne.s32.totalorder %s781_s21, %s487_s5  ;;  %p492_p9 = scmp.lt.u32.totalorder %s781_s21, %s835_s2 }
  0x75   : > { %p493_p5 = scmp.lt.u32.totalorder %s491_s17, %s487_s5  ;;  %p495_p0 = scmp.lt.u32.totalorder %s487_s5, %s781_s21 }
  0x76   : > { %p489_p2 = pnand %p488_p1, %p700_p11 }
  0x77   : > { %p494_p6 = por %p493_p5, %p492_p9 }
  0x78   : > { %p490_p4 = pneg %p489_p2 }
  0x79   : > { %p496_p8 = por %p495_p0, %p494_p6 }
  0x7b   : > { %p497_p10 = pnand %p496_p8, %p490_p4 }
  0x7d   : > { %500 = shalt.err (!%p497_p10)
}
  0x7e   : > { %332 = dma.vmem_to_hbm [thread:$0]  (%p700_p11), %s776_s7, 128, %s781_s21, %s197_s3  }
  0x7f PF: > { %s859_s0 = sld [smem:[#allocation12_spill]]  ;;  %p349_p12 = scmp.ge.s32.totalorder %s575_s16, 2 }
  0x80   : > { %s224_s19 = sand.u32 1, %s547_s9  }
  0x81   : > { %s225_s22 = scalar_lea.sflag [#allocation5], %s224_s19 }
  0x85   : > { %p860_p13 = scmp.ne.s32.totalorder %s859_s0, 0 }
  0x87   : > { %p343_p3 = pnand %p349_p12, %p860_p13 }
  0x89   : > { %542 = dma.done.wait (!%p343_p3), %s225_s22, 128  }
  0x8a   : > { %544 = vsyncadd (!%p343_p3), %s225_s22, 4294967168  ;;  %s19_s16 = sadd.s32 1, %s575_s16   ;;  %s861_s28 = sld [smem:[#allocation13_spill]] }
  0x8b   : > { %p16_p7 = scmp.ge.s32.totalorder %s19_s16, 6   ;;  %s862_s9 = smov %s551_s10 }
  0x8c   : > { %s863_s10 = smov %s555_s11  ;;  %s864_s11 = smov %s717_s8 }
  0x8d   : > { %s865_s12 = smov %s567_s14  ;;  %s866_s13 = smov %s571_s15 }
  0x8e   : > { %s868_s15 = smov %s874_s18  ;;  %18 = sbr.rel (!%p16_p7) target bundleno = 10 (0xa), region = 78 }
  0x90   : > { %s867_s14 = smov %s861_s28 }
  0x95   :  { %230 = vsyncpa [#allocation4], 1 }
  0x96   :  { %232 = vsyncpa [#allocation4 + $0x1], 1 }
  0x97   :  { %233 = vsyncpa [#allocation7], 1 }
  0x98   :  { %235 = vsyncpa [#allocation7 + $0x1], 1 }
  0x99   :  { %236 = vsyncpa [#allocation5], 1 }
  0x9a   :  { %238 = vsyncpa [#allocation5 + $0x1], 1 }

// kernel: clock_hgru_forward.3
= control target key start
LH: loop header
LB: loop body
LE: loop exit
PB: predicated region body
PF: predicated region fallthrough
CT: control target
= control target key end

     0   :  { %v1494_v47 = vmov 1983009808   ;;  %v291_v49 = vlaneseq  ;;  %vm20_vm0 = vcmask 1024   ;;  %s2345_s1 = inlined_call_operand.vmem [shape: f32[2048,1], index: 1, kind: input, shape index: {}]   ;;  %s2346_s0 = inlined_call_operand.vmem [shape: f32[2,2048], index: 0, kind: input, shape index: {}]   ;;  %s2347_s2 = inlined_call_operand.<no memory space> [shape: f32[1,1], index: 2, kind: input, shape index: {}]   ;;  %s2348_s3 = inlined_call_operand.vmem [shape: f32[2,1], index: 3, kind: output, shape index: {}]  }
   0x1   :  { %v43_v0 = vld [vmem:[%s2345_s1 + $0x80] sm:$0xff]  ;;  %v44_v1 = vld [vmem:[%s2345_s1 + $0x88] sm:$0xff]  ;;  %v45_v11 = vld [vmem:[%s2345_s1 + $0x90] sm:$0xff]  ;;  %v289_v48 = vunpack.c.l.s4 %v1494_v47 }
   0x2   :  { %v75_v2 = vld [vmem:[%s2345_s1 + $0x180] sm:$0xff]  ;;  %v1232_v3 = vpack.c.bf16 %v44_v1, %v43_v0  ;;  %v76_v4 = vld [vmem:[%s2345_s1 + $0x188] sm:$0xff]  ;;  %v46_v13 = vld [vmem:[%s2345_s1 + $0x98] sm:$0xff]  ;;  %v292_v0 = vshrl.u32 %v291_v49, 7 }
   0x3   :  { %v27_v5 = vld [vmem:[%s2345_s1] sm:$0xff]  ;;  %v28_v6 = vld [vmem:[%s2345_s1 + $0x8] sm:$0xff]  ;;  %v1264_v7 = vpack.c.bf16 %v76_v4, %v75_v2  ;;  %v77_v14 = vld [vmem:[%s2345_s1 + $0x190] sm:$0xff]  ;;  %v1236_v16 = vpack.c.bf16 %v46_v13, %v45_v11  ;;  %v290_v63 = vunpack.c.0.s8 %v289_v48 }
   0x4   :  { %v1234_v8 = vpack.c.bf16 %v28_v6, %v27_v5  ;;  %v59_v9 = vld [vmem:[%s2345_s1 + $0x100] sm:$0xff]  ;;  %v60_v10 = vld [vmem:[%s2345_s1 + $0x108] sm:$0xff]  ;;  %1233 = vmatprep.subr.bf16.mxu0 %v1232_v3  ;;  %v78_v15 = vld [vmem:[%s2345_s1 + $0x198] sm:$0xff] }
   0x5   :  { %v1266_v12 = vpack.c.bf16 %v60_v10, %v59_v9  ;;  %1265 = vmatprep.subr.bf16.mxu1 %v1264_v7  ;;  %v1268_v17 = vpack.c.bf16 %v78_v15, %v77_v14  ;;  %v29_v18 = vld [vmem:[%s2345_s1 + $0x10] sm:$0xff]  ;;  %v30_v19 = vld [vmem:[%s2345_s1 + $0x18] sm:$0xff]  ;;  %v47_v23 = vld [vmem:[%s2345_s1 + $0xa0] sm:$0xff]  ;;  %v1666_v13 = vsub.s32 %v290_v63, %v292_v0 }
   0x6   :  { %1235 = vmatpush3.bf16.msra.mxu0 %v1234_v8  ;;  %v61_v20 = vld [vmem:[%s2345_s1 + $0x110] sm:$0xff]  ;;  %v1238_v21 = vpack.c.bf16 %v30_v19, %v29_v18  ;;  %v62_v22 = vld [vmem:[%s2345_s1 + $0x118] sm:$0xff]  ;;  %v48_v24 = vld [vmem:[%s2345_s1 + $0xa8] sm:$0xff] }
   0x7   :  { %1267 = vmatpush3.bf16.msra.mxu1 %v1266_v12  ;;  %1237 = vmatprep.subr.bf16.mxu0 %v1236_v16  ;;  %v1270_v25 = vpack.c.bf16 %v62_v22, %v61_v20  ;;  %v1240_v26 = vpack.c.bf16 %v48_v24, %v47_v23  ;;  %v79_v27 = vld [vmem:[%s2345_s1 + $0x1a0] sm:$0xff]  ;;  %v80_v28 = vld [vmem:[%s2345_s1 + $0x1a8] sm:$0xff]  ;;  %v49_v35 = vld [vmem:[%s2345_s1 + $0xb0] sm:$0xff] }
   0x8   :  { %1269 = vmatprep.subr.bf16.mxu1 %v1268_v17  ;;  %v31_v29 = vld [vmem:[%s2345_s1 + $0x20] sm:$0xff]  ;;  %v1272_v30 = vpack.c.bf16 %v80_v28, %v79_v27  ;;  %v32_v31 = vld [vmem:[%s2345_s1 + $0x28] sm:$0xff]  ;;  %v50_v36 = vld [vmem:[%s2345_s1 + $0xb8] sm:$0xff] }
   0x9   :  { %v63_v32 = vld [vmem:[%s2345_s1 + $0x120] sm:$0xff]  ;;  %v64_v33 = vld [vmem:[%s2345_s1 + $0x128] sm:$0xff]  ;;  %v1242_v34 = vpack.c.bf16 %v32_v31, %v31_v29  ;;  %v81_v37 = vld [vmem:[%s2345_s1 + $0x1b0] sm:$0xff]  ;;  %v1244_v39 = vpack.c.bf16 %v50_v36, %v49_v35 }
   0xa   :  { %1239 = vmatpush3.bf16.msra.mxu0 %v1238_v21  ;;  %v1274_v38 = vpack.c.bf16 %v64_v33, %v63_v32  ;;  %v82_v40 = vld [vmem:[%s2345_s1 + $0x1b8] sm:$0xff]  ;;  %v33_v41 = vld [vmem:[%s2345_s1 + $0x30] sm:$0xff]  ;;  %v51_v46 = vld [vmem:[%s2345_s1 + $0xc0] sm:$0xff] }
   0xb   :  { %1271 = vmatpush3.bf16.msra.mxu1 %v1270_v25  ;;  %1241 = vmatprep.subr.bf16.mxu0 %v1240_v26  ;;  %v34_v42 = vld [vmem:[%s2345_s1 + $0x38] sm:$0xff]  ;;  %v1276_v43 = vpack.c.bf16 %v82_v40, %v81_v37  ;;  %v65_v44 = vld [vmem:[%s2345_s1 + $0x130] sm:$0xff]  ;;  %v52_v50 = vld [vmem:[%s2345_s1 + $0xc8] sm:$0xff] }
   0xc   :  { %1273 = vmatprep.subr.bf16.mxu1 %v1272_v30  ;;  %v66_v45 = vld [vmem:[%s2345_s1 + $0x138] sm:$0xff]  ;;  %v83_v51 = vld [vmem:[%s2345_s1 + $0x1c0] sm:$0xff]  ;;  %v84_v52 = vld [vmem:[%s2345_s1 + $0x1c8] sm:$0xff]  ;;  %v1246_v53 = vpack.c.bf16 %v34_v42, %v33_v41  ;;  %v1248_v55 = vpack.c.bf16 %v52_v50, %v51_v46 }
   0xd   :  { %v1278_v54 = vpack.c.bf16 %v66_v45, %v65_v44  ;;  %v35_v56 = vld [vmem:[%s2345_s1 + $0x40] sm:$0xff]  ;;  %v36_v57 = vld [vmem:[%s2345_s1 + $0x48] sm:$0xff]  ;;  %v1280_v59 = vpack.c.bf16 %v84_v52, %v83_v51  ;;  %v53_v61 = vld [vmem:[%s2345_s1 + $0xd0] sm:$0xff] }
   0xe   :  { %1243 = vmatpush3.bf16.msra.mxu0 %v1242_v34  ;;  %v67_v58 = vld [vmem:[%s2345_s1 + $0x140] sm:$0xff]  ;;  %v68_v60 = vld [vmem:[%s2345_s1 + $0x148] sm:$0xff]  ;;  %v54_v62 = vld [vmem:[%s2345_s1 + $0xd8] sm:$0xff]  ;;  %v1250_v3 = vpack.c.bf16 %v36_v57, %v35_v56 }
   0xf   :  { %1275 = vmatpush3.bf16.msra.mxu1 %v1274_v38  ;;  %1245 = vmatprep.subr.bf16.mxu0 %v1244_v39  ;;  %v85_v1 = vld [vmem:[%s2345_s1 + $0x1d0] sm:$0xff]  ;;  %v86_v2 = vld [vmem:[%s2345_s1 + $0x1d8] sm:$0xff]  ;;  %v1282_v4 = vpack.c.bf16 %v68_v60, %v67_v58  ;;  %v1252_v5 = vpack.c.bf16 %v54_v62, %v53_v61  ;;  %v55_v11 = vld [vmem:[%s2345_s1 + $0xe0] sm:$0xff] }
  0x10   :  { %1277 = vmatprep.subr.bf16.mxu1 %v1276_v43  ;;  %v37_v6 = vld [vmem:[%s2345_s1 + $0x50] sm:$0xff]  ;;  %v38_v7 = vld [vmem:[%s2345_s1 + $0x58] sm:$0xff]  ;;  %v1284_v9 = vpack.c.bf16 %v86_v2, %v85_v1  ;;  %v56_v12 = vld [vmem:[%s2345_s1 + $0xe8] sm:$0xff] }
  0x11   :  { %v69_v8 = vld [vmem:[%s2345_s1 + $0x150] sm:$0xff]  ;;  %v70_v10 = vld [vmem:[%s2345_s1 + $0x158] sm:$0xff]  ;;  %v87_v14 = vld [vmem:[%s2345_s1 + $0x1e0] sm:$0xff]  ;;  %v1254_v16 = vpack.c.bf16 %v38_v7, %v37_v6  ;;  %v1256_v19 = vpack.c.bf16 %v56_v12, %v55_v11 }
  0x12   :  { %1247 = vmatpush3.bf16.msra.mxu0 %v1246_v53  ;;  %v88_v15 = vld [vmem:[%s2345_s1 + $0x1e8] sm:$0xff]  ;;  %v39_v17 = vld [vmem:[%s2345_s1 + $0x60] sm:$0xff]  ;;  %v1286_v18 = vpack.c.bf16 %v70_v10, %v69_v8  ;;  %v57_v25 = vld [vmem:[%s2345_s1 + $0xf0] sm:$0xff] }
  0x13   :  { %1279 = vmatpush3.bf16.msra.mxu1 %v1278_v54  ;;  %1249 = vmatprep.subr.bf16.mxu0 %v1248_v55  ;;  %v40_v20 = vld [vmem:[%s2345_s1 + $0x68] sm:$0xff]  ;;  %v71_v21 = vld [vmem:[%s2345_s1 + $0x160] sm:$0xff]  ;;  %v1288_v23 = vpack.c.bf16 %v88_v15, %v87_v14  ;;  %v58_v26 = vld [vmem:[%s2345_s1 + $0xf8] sm:$0xff] }
  0x14   :  { %1281 = vmatprep.subr.bf16.mxu1 %v1280_v59  ;;  %v23_v22 = vld [vmem:[%s2346_s0] sm:$0xff]  ;;  %v72_v24 = vld [vmem:[%s2345_s1 + $0x168] sm:$0xff]  ;;  %v89_v29 = vld [vmem:[%s2345_s1 + $0x1f0] sm:$0xff]  ;;  %v1258_v31 = vpack.c.bf16 %v40_v20, %v39_v17  ;;  %v1260_v35 = vpack.c.bf16 %v58_v26, %v57_v25 }
  0x15   :  { %v294_v27 = vrot.slane %v23_v22, %v1666_v13  ;;  %v287_v28 = vcombine.high %v23_v22, %v23_v22  ;;  %v90_v30 = vld [vmem:[%s2345_s1 + $0x1f8] sm:$0xff]  ;;  %v1290_v34 = vpack.c.bf16 %v72_v24, %v71_v21  ;;  %v41_v36 = vld [vmem:[%s2345_s1 + $0x70] sm:$0xff]  ;;  %v107_v42 = vld [vmem:[%s2345_s1 + $0x280] sm:$0xff] }
  0x16   :  { %1251 = vmatpush3.bf16.msra.mxu0 %v1250_v3  ;;  %v42_v37 = vld [vmem:[%s2345_s1 + $0x78] sm:$0xff]  ;;  %v73_v38 = vld [vmem:[%s2345_s1 + $0x170] sm:$0xff]  ;;  %v1292_v39 = vpack.c.bf16 %v90_v30, %v89_v29  ;;  %v108_v43 = vld [vmem:[%s2345_s1 + $0x288] sm:$0xff] }
  0x17   :  { %1283 = vmatpush3.bf16.msra.mxu1 %v1282_v4  ;;  %1253 = vmatprep.subr.bf16.mxu0 %v1252_v5  ;;  %v302_v32 = vcombine.high %v294_v27, %v294_v27  ;;  %v301_v33 = vrot.slane %v287_v28, %v1666_v13  ;;  %v74_v40 = vld [vmem:[%s2345_s1 + $0x178] sm:$0xff]  ;;  %v139_v44 = vld [vmem:[%s2345_s1 + $0x380] sm:$0xff]  ;;  %v140_v45 = vld [vmem:[%s2345_s1 + $0x388] sm:$0xff]  ;;  %v1262_v46 = vpack.c.bf16 %v42_v37, %v41_v36 }
  0x18   :  { %1285 = vmatprep.subr.bf16.mxu1 %v1284_v9  ;;  %v1294_v47 = vpack.c.bf16 %v74_v40, %v73_v38  ;;  %v1296_v48 = vpack.c.bf16 %v108_v43, %v107_v42  ;;  %v91_v49 = vld [vmem:[%s2345_s1 + $0x200] sm:$0xff]  ;;  %v92_v50 = vld [vmem:[%s2345_s1 + $0x208] sm:$0xff]  ;;  %v1328_v52 = vpack.c.bf16 %v140_v45, %v139_v44  ;;  %v109_v54 = vld [vmem:[%s2345_s1 + $0x290] sm:$0xff] }
  0x19   :  { %435 = vmatprep.mubr.f32.mxu0 %v302_v32  ;;  %v303_v41 = vcombine.high %v301_v33, %v301_v33  ;;  %v123_v51 = vld [vmem:[%s2345_s1 + $0x300] sm:$0xff]  ;;  %v124_v53 = vld [vmem:[%s2345_s1 + $0x308] sm:$0xff]  ;;  %v110_v55 = vld [vmem:[%s2345_s1 + $0x298] sm:$0xff]  ;;  %v1298_v58 = vpack.c.bf16 %v92_v50, %v91_v49 }
  0x1a   :  { %1255 = vmatpush3.bf16.msra.mxu0 %v1254_v16  ;;  %v141_v56 = vld [vmem:[%s2345_s1 + $0x390] sm:$0xff]  ;;  %v142_v57 = vld [vmem:[%s2345_s1 + $0x398] sm:$0xff]  ;;  %v1330_v59 = vpack.c.bf16 %v124_v53, %v123_v51  ;;  %v1300_v60 = vpack.c.bf16 %v110_v55, %v109_v54  ;;  %v111_v2 = vld [vmem:[%s2345_s1 + $0x2a0] sm:$0xff] }
  0x1b   :  { %1287 = vmatpush3.bf16.msra.mxu1 %v1286_v18  ;;  %1257 = vmatprep.subr.bf16.mxu0 %v1256_v19  ;;  %v93_v61 = vld [vmem:[%s2345_s1 + $0x210] sm:$0xff]  ;;  %v94_v62 = vld [vmem:[%s2345_s1 + $0x218] sm:$0xff]  ;;  %v1332_v0 = vpack.c.bf16 %v142_v57, %v141_v56  ;;  %v112_v3 = vld [vmem:[%s2345_s1 + $0x2a8] sm:$0xff] }
  0x1c   :  { %1289 = vmatprep.subr.bf16.mxu1 %v1288_v23  ;;  %505 = vmatprep.mubr.f32.mxu1 %v303_v41  ;;  %v125_v63 = vld [vmem:[%s2345_s1 + $0x310] sm:$0xff]  ;;  %v126_v1 = vld [vmem:[%s2345_s1 + $0x318] sm:$0xff]  ;;  %v143_v4 = vld [vmem:[%s2345_s1 + $0x3a0] sm:$0xff]  ;;  %v1302_v6 = vpack.c.bf16 %v94_v62, %v93_v61  ;;  %v1304_v8 = vpack.c.bf16 %v112_v3, %v111_v2 }
  0x1d   :  { %v144_v5 = vld [vmem:[%s2345_s1 + $0x3a8] sm:$0xff]  ;;  %v1334_v7 = vpack.c.bf16 %v126_v1, %v125_v63  ;;  %v95_v9 = vld [vmem:[%s2345_s1 + $0x220] sm:$0xff]  ;;  %v113_v15 = vld [vmem:[%s2345_s1 + $0x2b0] sm:$0xff] }
  0x1e   :  { %1259 = vmatpush3.bf16.msra.mxu0 %v1258_v31  ;;  %v96_v10 = vld [vmem:[%s2345_s1 + $0x228] sm:$0xff]  ;;  %v127_v11 = vld [vmem:[%s2345_s1 + $0x320] sm:$0xff]  ;;  %v1336_v12 = vpack.c.bf16 %v144_v5, %v143_v4  ;;  %v114_v16 = vld [vmem:[%s2345_s1 + $0x2b8] sm:$0xff] }
  0x1f   :  { %1291 = vmatpush3.bf16.msra.mxu1 %v1290_v34  ;;  %1261 = vmatprep.subr.bf16.mxu0 %v1260_v35  ;;  %v128_v14 = vld [vmem:[%s2345_s1 + $0x328] sm:$0xff]  ;;  %v145_v17 = vld [vmem:[%s2345_s1 + $0x3b0] sm:$0xff]  ;;  %v146_v18 = vld [vmem:[%s2345_s1 + $0x3b8] sm:$0xff]  ;;  %v1306_v19 = vpack.c.bf16 %v96_v10, %v95_v9  ;;  %v1308_v21 = vpack.c.bf16 %v114_v16, %v113_v15 }
  0x20   :  { %1293 = vmatprep.subr.bf16.mxu1 %v1292_v39  ;;  %v1338_v20 = vpack.c.bf16 %v128_v14, %v127_v11  ;;  %v97_v22 = vld [vmem:[%s2345_s1 + $0x230] sm:$0xff]  ;;  %v98_v23 = vld [vmem:[%s2345_s1 + $0x238] sm:$0xff]  ;;  %v1340_v25 = vpack.c.bf16 %v146_v18, %v145_v17  ;;  %v116_v28 = vld [vmem:[%s2345_s1 + $0x2c8] sm:$0xff] }
  0x21   :  { %v129_v24 = vld [vmem:[%s2345_s1 + $0x330] sm:$0xff]  ;;  %v130_v26 = vld [vmem:[%s2345_s1 + $0x338] sm:$0xff]  ;;  %v147_v29 = vld [vmem:[%s2345_s1 + $0x3c0] sm:$0xff]  ;;  %v1310_v32 = vpack.c.bf16 %v98_v23, %v97_v22 }
  0x22   :  { %1263 = vmatpush3.bf16.msra.mxu0 %v1262_v46  ;;  %v148_v30 = vld [vmem:[%s2345_s1 + $0x3c8] sm:$0xff]  ;;  %v1342_v35 = vpack.c.bf16 %v130_v26, %v129_v24  ;;  %v99_v37 = vld [vmem:[%s2345_s1 + $0x240] sm:$0xff]  ;;  %v117_v42 = vld [vmem:[%s2345_s1 + $0x2d0] sm:$0xff] }
  0x23   :  { %1295 = vmatpush3.bf16.msra.mxu1 %v1294_v47  ;;  %1297 = vmatprep.subr.bf16.mxu0 %v1296_v48  ;;  %v24_v31 = vld [vmem:[%s2346_s0 + $0x8] sm:$0xff]  ;;  %v131_v39 = vld [vmem:[%s2345_s1 + $0x340] sm:$0xff]  ;;  %v1344_v40 = vpack.c.bf16 %v148_v30, %v147_v29  ;;  %v118_v43 = vld [vmem:[%s2345_s1 + $0x2d8] sm:$0xff] }
  0x24   :  { %1329 = vmatprep.subr.bf16.mxu1 %v1328_v52  ;;  %v304_v34 = vcombine.high %v24_v31, %v24_v31  ;;  %v100_v38 = vld [vmem:[%s2345_s1 + $0x248] sm:$0xff]  ;;  %v149_v46 = vld [vmem:[%s2345_s1 + $0x3d0] sm:$0xff]  ;;  %v150_v47 = vld [vmem:[%s2345_s1 + $0x3d8] sm:$0xff]  ;;  %v1316_v51 = vpack.c.bf16 %v118_v43, %v117_v42 }
  0x25   :  { %436 = vmatmul.mubr.f32.vlgmr.msra.gmra.mrb[0].mxu0 %v294_v27  ;;  %v115_v27 = vld [vmem:[%s2345_s1 + $0x2c0] sm:$0xff]  ;;  %v132_v41 = vld [vmem:[%s2345_s1 + $0x348] sm:$0xff]  ;;  %v1314_v48 = vpack.c.bf16 %v100_v38, %v99_v37  ;;  %v101_v52 = vld [vmem:[%s2345_s1 + $0x250] sm:$0xff]  ;;  %v1348_v55 = vpack.c.bf16 %v150_v47, %v149_v46 }
  0x26   :  { %506 = vmatmul.mubr.f32.vlgmr.msra.gmra.mrb[0].mxu1 %v301_v33  ;;  %1299 = vmatpush3.bf16.msra.mxu0 %v1298_v58  ;;  %v1827_v33 = vrot.slane %v24_v31, %v1666_v13  ;;  %v1312_v36 = vpack.c.bf16 %v116_v28, %v115_v27  ;;  %v1850_v45 = vrot.slane %v304_v34, %v1666_v13  ;;  %v102_v53 = vld [vmem:[%s2345_s1 + $0x258] sm:$0xff]  ;;  %v133_v54 = vld [vmem:[%s2345_s1 + $0x350] sm:$0xff]  ;;  %v119_v57 = vld [vmem:[%s2345_s1 + $0x2e0] sm:$0xff] }
  0x27   :  { %1331 = vmatpush3.bf16.msra.mxu1 %v1330_v59  ;;  %1301 = vmatprep.subr.bf16.mxu0 %v1300_v60  ;;  %v1346_v50 = vpack.c.bf16 %v132_v41, %v131_v39  ;;  %v134_v56 = vld [vmem:[%s2345_s1 + $0x358] sm:$0xff]  ;;  %v120_v58 = vld [vmem:[%s2345_s1 + $0x2e8] sm:$0xff]  ;;  %v151_v59 = vld [vmem:[%s2345_s1 + $0x3e0] sm:$0xff]  ;;  %v1318_v61 = vpack.c.bf16 %v102_v53, %v101_v52 }
  0x28   :  { %1333 = vmatprep.subr.bf16.mxu1 %v1332_v0  ;;  %v319_v44 = vcombine.high %v1827_v33, %v1827_v33  ;;  %v320_v49 = vcombine.high %v1850_v45, %v1850_v45  ;;  %v152_v60 = vld [vmem:[%s2345_s1 + $0x3e8] sm:$0xff]  ;;  %v1350_v62 = vpack.c.bf16 %v134_v56, %v133_v54  ;;  %v1320_v63 = vpack.c.bf16 %v120_v58, %v119_v57  ;;  %v103_v0 = vld [vmem:[%s2345_s1 + $0x260] sm:$0xff]  ;;  %v121_v5 = vld [vmem:[%s2345_s1 + $0x2f0] sm:$0xff] }
  0x29   :  { %v104_v1 = vld [vmem:[%s2345_s1 + $0x268] sm:$0xff]  ;;  %v135_v2 = vld [vmem:[%s2345_s1 + $0x360] sm:$0xff]  ;;  %v1352_v3 = vpack.c.bf16 %v152_v60, %v151_v59  ;;  %v106_v14 = vld [vmem:[%s2345_s1 + $0x278] sm:$0xff] }
  0x2a   :  { %1303 = vmatpush3.bf16.msra.mxu0 %v1302_v6  ;;  %575 = vmatprep.mubr.f32.mxu0 %v319_v44  ;;  %v136_v4 = vld [vmem:[%s2345_s1 + $0x368] sm:$0xff]  ;;  %v122_v6 = vld [vmem:[%s2345_s1 + $0x2f8] sm:$0xff]  ;;  %v1322_v9 = vpack.c.bf16 %v104_v1, %v103_v0  ;;  %v137_v15 = vld [vmem:[%s2345_s1 + $0x370] sm:$0xff] }
  0x2b   :  { %1335 = vmatpush3.bf16.msra.mxu1 %v1334_v7  ;;  %1305 = vmatprep.subr.bf16.mxu0 %v1304_v8  ;;  %v153_v7 = vld [vmem:[%s2345_s1 + $0x3f0] sm:$0xff]  ;;  %v154_v8 = vld [vmem:[%s2345_s1 + $0x3f8] sm:$0xff]  ;;  %v1354_v10 = vpack.c.bf16 %v136_v4, %v135_v2  ;;  %v1324_v11 = vpack.c.bf16 %v122_v6, %v121_v5  ;;  %v171_v18 = vld [vmem:[%s2345_s1 + $0x480] sm:$0xff] }
  0x2c   :  { %1337 = vmatprep.subr.bf16.mxu1 %v1336_v12  ;;  %645 = vmatprep.mubr.f32.mxu1 %v320_v49  ;;  %v105_v12 = vld [vmem:[%s2345_s1 + $0x270] sm:$0xff]  ;;  %v1356_v16 = vpack.c.bf16 %v154_v8, %v153_v7  ;;  %v138_v17 = vld [vmem:[%s2345_s1 + $0x378] sm:$0xff]  ;;  %v155_v23 = vld [vmem:[%s2345_s1 + $0x400] sm:$0xff] }
  0x2d   :  { %v1326_v22 = vpack.c.bf16 %v106_v14, %v105_v12  ;;  %v1358_v24 = vpack.c.bf16 %v138_v17, %v137_v15  ;;  %v156_v26 = vld [vmem:[%s2345_s1 + $0x408] sm:$0xff]  ;;  %v187_v27 = vld [vmem:[%s2345_s1 + $0x500] sm:$0xff]  ;;  %v173_v30 = vld [vmem:[%s2345_s1 + $0x490] sm:$0xff] }
  0x2e   :  { %1307 = vmatpush3.bf16.msra.mxu0 %v1306_v19  ;;  %v172_v19 = vld [vmem:[%s2345_s1 + $0x488] sm:$0xff]  ;;  %v174_v31 = vld [vmem:[%s2345_s1 + $0x498] sm:$0xff]  ;;  %v25_v37 = vld [vmem:[%s2346_s0 + $0x10] sm:$0xff] }
  0x2f   :  { %1339 = vmatpush3.bf16.msra.mxu1 %v1338_v20  ;;  %1309 = vmatprep.subr.bf16.mxu0 %v1308_v21  ;;  %v203_v20 = vld [vmem:[%s2345_s1 + $0x580] sm:$0xff]  ;;  %v204_v21 = vld [vmem:[%s2345_s1 + $0x588] sm:$0xff]  ;;  %v206_v34 = vld [vmem:[%s2345_s1 + $0x598] sm:$0xff]  ;;  %v1364_v38 = vpack.c.bf16 %v174_v31, %v173_v30  ;;  %v1969_v42 = vrot.slane %v25_v37, %v1666_v13  ;;  %v321_v43 = vcombine.high %v25_v37, %v25_v37 }
  0x30   :  { %1341 = vmatprep.subr.bf16.mxu1 %v1340_v25  ;;  %v1360_v25 = vpack.c.bf16 %v172_v19, %v171_v18  ;;  %v188_v28 = vld [vmem:[%s2345_s1 + $0x508] sm:$0xff]  ;;  %v1392_v29 = vpack.c.bf16 %v204_v21, %v203_v20  ;;  %v157_v39 = vld [vmem:[%s2345_s1 + $0x410] sm:$0xff]  ;;  %v190_v46 = vld [vmem:[%s2345_s1 + $0x518] sm:$0xff] }
  0x31   :  { %v189_v41 = vld [vmem:[%s2345_s1 + $0x510] sm:$0xff]  ;;  %v175_v47 = vld [vmem:[%s2345_s1 + $0x4a0] sm:$0xff]  ;;  %v1990_v52 = vrot.slane %v321_v43, %v1666_v13  ;;  %v160_v56 = vld [vmem:[%s2345_s1 + $0x428] sm:$0xff] }
  0x32   :  { %1311 = vmatpush3.bf16.msra.mxu0 %v1310_v32  ;;  %v205_v32 = vld [vmem:[%s2345_s1 + $0x590] sm:$0xff]  ;;  %v207_v49 = vld [vmem:[%s2345_s1 + $0x5a0] sm:$0xff]  ;;  %v192_v59 = vld [vmem:[%s2345_s1 + $0x528] sm:$0xff] }
  0x33   :  { %1343 = vmatpush3.bf16.msra.mxu1 %v1342_v35  ;;  %1313 = vmatprep.subr.bf16.mxu0 %v1312_v36  ;;  %v1362_v35 = vpack.c.bf16 %v156_v26, %v155_v23  ;;  %v1394_v36 = vpack.c.bf16 %v188_v28, %v187_v27  ;;  %v1396_v44 = vpack.c.bf16 %v206_v34, %v205_v32  ;;  %v191_v57 = vld [vmem:[%s2345_s1 + $0x520] sm:$0xff]  ;;  %v177_v60 = vld [vmem:[%s2345_s1 + $0x4b0] sm:$0xff]  ;;  %v162_v4 = vld [vmem:[%s2345_s1 + $0x438] sm:$0xff] }
  0x34   :  { %1345 = vmatprep.subr.bf16.mxu1 %v1344_v40  ;;  %v158_v40 = vld [vmem:[%s2345_s1 + $0x418] sm:$0xff]  ;;  %v1402_v1 = vpack.c.bf16 %v192_v59, %v191_v57  ;;  %v193_v5 = vld [vmem:[%s2345_s1 + $0x530] sm:$0xff]  ;;  %v179_v8 = vld [vmem:[%s2345_s1 + $0x4c0] sm:$0xff] }
  0x35   :  { %v1366_v53 = vpack.c.bf16 %v158_v40, %v157_v39  ;;  %v194_v7 = vld [vmem:[%s2345_s1 + $0x538] sm:$0xff]  ;;  %v164_v17 = vld [vmem:[%s2345_s1 + $0x448] sm:$0xff]  ;;  %v195_v18 = vld [vmem:[%s2345_s1 + $0x540] sm:$0xff] }
  0x36   :  { %1315 = vmatpush3.bf16.msra.mxu0 %v1314_v48  ;;  %v176_v48 = vld [vmem:[%s2345_s1 + $0x4a8] sm:$0xff]  ;;  %v1406_v14 = vpack.c.bf16 %v194_v7, %v193_v5  ;;  %v181_v21 = vld [vmem:[%s2345_s1 + $0x4d0] sm:$0xff]  ;;  %v198_v32 = vld [vmem:[%s2345_s1 + $0x558] sm:$0xff] }
  0x37   :  { %1347 = vmatpush3.bf16.msra.mxu1 %v1346_v50  ;;  %1317 = vmatprep.subr.bf16.mxu0 %v1316_v51  ;;  %v208_v50 = vld [vmem:[%s2345_s1 + $0x5a8] sm:$0xff]  ;;  %v336_v51 = vcombine.high %v1969_v42, %v1969_v42  ;;  %v1368_v54 = vpack.c.bf16 %v176_v48, %v175_v47  ;;  %v213_v23 = vld [vmem:[%s2345_s1 + $0x5d0] sm:$0xff]  ;;  %v183_v34 = vld [vmem:[%s2345_s1 + $0x4e0] sm:$0xff] }
  0x38   :  { %1349 = vmatprep.subr.bf16.mxu1 %v1348_v55  ;;  %v159_v55 = vld [vmem:[%s2345_s1 + $0x420] sm:$0xff]  ;;  %v1400_v58 = vpack.c.bf16 %v208_v50, %v207_v49  ;;  %v196_v20 = vld [vmem:[%s2345_s1 + $0x548] sm:$0xff]  ;;  %v165_v28 = vld [vmem:[%s2345_s1 + $0x450] sm:$0xff] }
  0x39   :  { %v1370_v0 = vpack.c.bf16 %v160_v56, %v159_v55  ;;  %v1410_v26 = vpack.c.bf16 %v196_v20, %v195_v18  ;;  %v197_v30 = vld [vmem:[%s2345_s1 + $0x550] sm:$0xff]  ;;  %v216_v37 = vld [vmem:[%s2345_s1 + $0x5e8] sm:$0xff]  ;;  %v186_v49 = vld [vmem:[%s2345_s1 + $0x4f8] sm:$0xff] }
  0x3a   :  { %1319 = vmatpush3.bf16.msra.mxu0 %v1318_v61  ;;  %v178_v61 = vld [vmem:[%s2345_s1 + $0x4b8] sm:$0xff]  ;;  %v1414_v39 = vpack.c.bf16 %v198_v32, %v197_v30  ;;  %v168_v43 = vld [vmem:[%s2345_s1 + $0x468] sm:$0xff]  ;;  %v185_v48 = vld [vmem:[%s2345_s1 + $0x4f0] sm:$0xff] }
  0x3b   :  { %1351 = vmatpush3.bf16.msra.mxu1 %v1350_v62  ;;  %1321 = vmatprep.subr.bf16.mxu0 %v1320_v63  ;;  %v209_v62 = vld [vmem:[%s2345_s1 + $0x5b0] sm:$0xff]  ;;  %v210_v63 = vld [vmem:[%s2345_s1 + $0x5b8] sm:$0xff]  ;;  %v1372_v2 = vpack.c.bf16 %v178_v61, %v177_v60  ;;  %v200_v47 = vld [vmem:[%s2345_s1 + $0x568] sm:$0xff]  ;;  %v1388_v55 = vpack.c.bf16 %v186_v49, %v185_v48 }
  0x3c   :  { %1353 = vmatprep.subr.bf16.mxu1 %v1352_v3  ;;  %v161_v3 = vld [vmem:[%s2345_s1 + $0x430] sm:$0xff]  ;;  %v1404_v6 = vpack.c.bf16 %v210_v63, %v209_v62  ;;  %v170_v57 = vld [vmem:[%s2345_s1 + $0x478] sm:$0xff]  ;;  %v235_v60 = vld [vmem:[%s2345_s1 + $0x680] sm:$0xff] }
  0x3d   :  { %v1374_v12 = vpack.c.bf16 %v162_v4, %v161_v3  ;;  %v217_v50 = vld [vmem:[%s2345_s1 + $0x5f0] sm:$0xff]  ;;  %v202_v59 = vld [vmem:[%s2345_s1 + $0x578] sm:$0xff]  ;;  %v236_v61 = vld [vmem:[%s2345_s1 + $0x688] sm:$0xff] }
  0x3e   :  { %1323 = vmatpush3.bf16.msra.mxu0 %v1322_v9  ;;  %v180_v9 = vld [vmem:[%s2345_s1 + $0x4c8] sm:$0xff]  ;;  %v169_v56 = vld [vmem:[%s2345_s1 + $0x470] sm:$0xff]  ;;  %v267_v62 = vld [vmem:[%s2345_s1 + $0x780] sm:$0xff]  ;;  %v1424_v3 = vpack.c.bf16 %v236_v61, %v235_v60 }
  0x3f   :  { %1355 = vmatpush3.bf16.msra.mxu1 %v1354_v10  ;;  %1325 = vmatprep.subr.bf16.mxu0 %v1324_v11  ;;  %v211_v10 = vld [vmem:[%s2345_s1 + $0x5c0] sm:$0xff]  ;;  %v212_v11 = vld [vmem:[%s2345_s1 + $0x5c8] sm:$0xff]  ;;  %v1376_v15 = vpack.c.bf16 %v180_v9, %v179_v8  ;;  %v237_v9 = vld [vmem:[%s2345_s1 + $0x690] sm:$0xff] }
  0x40   :  { %1357 = vmatprep.subr.bf16.mxu1 %v1356_v16  ;;  %v163_v16 = vld [vmem:[%s2345_s1 + $0x440] sm:$0xff]  ;;  %v1408_v19 = vpack.c.bf16 %v212_v11, %v211_v10  ;;  %v268_v63 = vld [vmem:[%s2345_s1 + $0x788] sm:$0xff]  ;;  %v238_v10 = vld [vmem:[%s2345_s1 + $0x698] sm:$0xff] }
  0x41   :  { %v219_v4 = vld [vmem:[%s2345_s1 + $0x600] sm:$0xff]  ;;  %v220_v5 = vld [vmem:[%s2345_s1 + $0x608] sm:$0xff]  ;;  %v1456_v7 = vpack.c.bf16 %v268_v63, %v267_v62  ;;  %v1428_v18 = vpack.c.bf16 %v238_v10, %v237_v9  ;;  %v222_v20 = vld [vmem:[%s2345_s1 + $0x618] sm:$0xff] }
  0x42   :  { %1327 = vmatpush3.bf16.msra.mxu0 %v1326_v22  ;;  %v182_v22 = vld [vmem:[%s2345_s1 + $0x4d8] sm:$0xff]  ;;  %v252_v8 = vld [vmem:[%s2345_s1 + $0x708] sm:$0xff]  ;;  %v245_v61 = vld [vmem:[%s2345_s1 + $0x6d0] sm:$0xff] }
  0x43   :  { %1359 = vmatpush3.bf16.msra.mxu1 %v1358_v24  ;;  %1361 = vmatprep.subr.bf16.mxu0 %v1360_v25  ;;  %v214_v24 = vld [vmem:[%s2345_s1 + $0x5d8] sm:$0xff]  ;;  %v1378_v25 = vpack.c.bf16 %v164_v17, %v163_v16  ;;  %v1380_v27 = vpack.c.bf16 %v182_v22, %v181_v21  ;;  %v1426_v16 = vpack.c.bf16 %v220_v5, %v219_v4  ;;  %v253_v21 = vld [vmem:[%s2345_s1 + $0x710] sm:$0xff]  ;;  %v224_v32 = vld [vmem:[%s2345_s1 + $0x628] sm:$0xff] }
  0x44   :  { %1393 = vmatprep.subr.bf16.mxu1 %v1392_v29  ;;  %v166_v29 = vld [vmem:[%s2345_s1 + $0x458] sm:$0xff]  ;;  %v1412_v31 = vpack.c.bf16 %v214_v24, %v213_v23  ;;  %v239_v23 = vld [vmem:[%s2345_s1 + $0x6a0] sm:$0xff]  ;;  %v240_v24 = vld [vmem:[%s2345_s1 + $0x6a8] sm:$0xff] }
  0x45   :  { %576 = vmatmul.mubr.f32.vlgmr.msra.gmra.mrb[2].mxu0 %v1827_v33  ;;  %v1398_v33 = vpack.c.bf16 %v190_v46, %v189_v41  ;;  %v167_v41 = vld [vmem:[%s2345_s1 + $0x460] sm:$0xff]  ;;  %v254_v22 = vld [vmem:[%s2345_s1 + $0x718] sm:$0xff]  ;;  %v260_v60 = vld [vmem:[%s2345_s1 + $0x748] sm:$0xff] }
  0x46   :  { %1363 = vmatpush3.bf16.msra.mxu0 %v1362_v35  ;;  %646 = vmatmul.mubr.f32.vlgmr.msra.gmra.mrb[2].mxu1 %v1850_v45  ;;  %v337_v45 = vcombine.high %v1990_v52, %v1990_v52  ;;  %v184_v35 = vld [vmem:[%s2345_s1 + $0x4e8] sm:$0xff]  ;;  %v1462_v30 = vpack.c.bf16 %v254_v22, %v253_v21  ;;  %v258_v49 = vld [vmem:[%s2345_s1 + $0x738] sm:$0xff]  ;;  %v277_v63 = vld [vmem:[%s2345_s1 + $0x7d0] sm:$0xff] }
  0x47   :  { %1395 = vmatpush3.bf16.msra.mxu1 %v1394_v36  ;;  %1365 = vmatprep.subr.bf16.mxu0 %v1364_v38  ;;  %v215_v36 = vld [vmem:[%s2345_s1 + $0x5e0] sm:$0xff]  ;;  %v1382_v38 = vpack.c.bf16 %v166_v29, %v165_v28  ;;  %v1384_v40 = vpack.c.bf16 %v184_v35, %v183_v34  ;;  %v246_v62 = vld [vmem:[%s2345_s1 + $0x6d8] sm:$0xff]  ;;  %v229_v4 = vld [vmem:[%s2345_s1 + $0x650] sm:$0xff] }
  0x48   :  { %1397 = vmatprep.subr.bf16.mxu1 %v1396_v44  ;;  %715 = vmatprep.mubr.f32.mxu0 %v336_v51  ;;  %v199_v44 = vld [vmem:[%s2345_s1 + $0x560] sm:$0xff]  ;;  %v1416_v46 = vpack.c.bf16 %v216_v37, %v215_v36  ;;  %v218_v51 = vld [vmem:[%s2345_s1 + $0x5f8] sm:$0xff]  ;;  %v241_v36 = vld [vmem:[%s2345_s1 + $0x6b0] sm:$0xff] }
  0x49   :  { %785 = vmatprep.mubr.f32.mxu1 %v337_v45  ;;  %v201_v45 = vld [vmem:[%s2345_s1 + $0x570] sm:$0xff]  ;;  %v255_v34 = vld [vmem:[%s2345_s1 + $0x720] sm:$0xff]  ;;  %v242_v37 = vld [vmem:[%s2345_s1 + $0x6b8] sm:$0xff] }
  0x4a   :  { %1367 = vmatpush3.bf16.msra.mxu0 %v1366_v53  ;;  %v1386_v53 = vpack.c.bf16 %v168_v43, %v167_v41  ;;  %v1436_v43 = vpack.c.bf16 %v242_v37, %v241_v36  ;;  %v230_v5 = vld [vmem:[%s2345_s1 + $0x658] sm:$0xff]  ;;  %v247_v9 = vld [vmem:[%s2345_s1 + $0x6e0] sm:$0xff]  ;;  %v248_v10 = vld [vmem:[%s2345_s1 + $0x6e8] sm:$0xff]  ;;  %v1495_v36 = vmov 0.0   ;;  %v8_v37 = vstv %s2347_s2 }
  0x4b   :  { %1399 = vmatpush3.bf16.msra.mxu1 %v1398_v33  ;;  %1369 = vmatprep.subr.bf16.mxu0 %v1368_v54  ;;  %v26_v33 = vld [vmem:[%s2346_s0 + $0x18] sm:$0xff]  ;;  %v1418_v54 = vpack.c.bf16 %v200_v47, %v199_v44  ;;  %v225_v44 = vld [vmem:[%s2345_s1 + $0x630] sm:$0xff]  ;;  %v263_v21 = vld [vmem:[%s2345_s1 + $0x760] sm:$0xff]  ;;  %21 = vst.msk [vmem:[#allocation2] sm:$0x3] %vm20_vm0, %v1495_v36 }
  0x4c   :  { %1401 = vmatprep.subr.bf16.mxu1 %v1400_v58  ;;  %v1420_v58 = vpack.c.bf16 %v218_v51, %v217_v50  ;;  %v2161_v11 = vrot.slane %v26_v33, %v1666_v13  ;;  %v257_v47 = vld [vmem:[%s2345_s1 + $0x730] sm:$0xff]  ;;  %v243_v50 = vld [vmem:[%s2345_s1 + $0x6c0] sm:$0xff]  ;;  %v244_v51 = vld [vmem:[%s2345_s1 + $0x6c8] sm:$0xff]  ;;  %9 = vst [vmem:[#allocation3] sm:$0x1] %v8_v37 }
  0x4d   :  { %v264_v22 = vld [vmem:[%s2345_s1 + $0x768] sm:$0xff] }
  0x4e   :  { %1371 = vmatpush3.bf16.msra.mxu0 %v1370_v0  ;;  %v338_v0 = vcombine.high %v26_v33, %v26_v33  ;;  %v276_v33 = vld [vmem:[%s2345_s1 + $0x7c8] sm:$0xff] }
  0x4f   :  { %1403 = vmatpush3.bf16.msra.mxu1 %v1402_v1  ;;  %1373 = vmatprep.subr.bf16.mxu0 %v1372_v2  ;;  %v1390_v1 = vpack.c.bf16 %v170_v57, %v169_v56  ;;  %v1422_v2 = vpack.c.bf16 %v202_v59, %v201_v45  ;;  %v1440_v56 = vpack.c.bf16 %v244_v51, %v243_v50  ;;  %v227_v57 = vld [vmem:[%s2345_s1 + $0x640] sm:$0xff]  ;;  %v228_v45 = vld [vmem:[%s2345_s1 + $0x648] sm:$0xff] }
  0x50   :  { %1405 = vmatprep.subr.bf16.mxu1 %v1404_v6  ;;  %v251_v6 = vld [vmem:[%s2345_s1 + $0x700] sm:$0xff] }
  0x51   :  { %v1458_v17 = vpack.c.bf16 %v252_v8, %v251_v6  ;;  %v261_v6 = vld [vmem:[%s2345_s1 + $0x750] sm:$0xff]  ;;  %v262_v8 = vld [vmem:[%s2345_s1 + $0x758] sm:$0xff] }
  0x52   :  { %1375 = vmatpush3.bf16.msra.mxu0 %v1374_v12  ;;  %v269_v12 = vld [vmem:[%s2345_s1 + $0x790] sm:$0xff] }
  0x53   :  { %1407 = vmatpush3.bf16.msra.mxu1 %v1406_v14  ;;  %1377 = vmatprep.subr.bf16.mxu0 %v1376_v15  ;;  %v270_v14 = vld [vmem:[%s2345_s1 + $0x798] sm:$0xff]  ;;  %v2170_v15 = vrot.slane %v338_v0, %v1666_v13 }
  0x54   :  { %1409 = vmatprep.subr.bf16.mxu1 %v1408_v19  ;;  %v221_v19 = vld [vmem:[%s2345_s1 + $0x610] sm:$0xff]  ;;  %v1460_v13 = vpack.c.bf16 %v270_v14, %v269_v12  ;;  %v278_v0 = vld [vmem:[%s2345_s1 + $0x7d8] sm:$0xff]  ;;  %v279_v12 = vld [vmem:[%s2345_s1 + $0x7e0] sm:$0xff] }
  0x55   :  { %v354_v28 = vcombine.high %v2170_v15, %v2170_v15  ;;  %v1430_v29 = vpack.c.bf16 %v222_v20, %v221_v19  ;;  %v280_v14 = vld [vmem:[%s2345_s1 + $0x7e8] sm:$0xff]  ;;  %v231_v19 = vld [vmem:[%s2345_s1 + $0x660] sm:$0xff] }
  0x56   :  { %1379 = vmatpush3.bf16.msra.mxu0 %v1378_v25  ;;  %v353_v25 = vcombine.high %v2161_v11, %v2161_v11  ;;  %v232_v20 = vld [vmem:[%s2345_s1 + $0x668] sm:$0xff] }
  0x57   :  { %1411 = vmatpush3.bf16.msra.mxu1 %v1410_v26  ;;  %1381 = vmatprep.subr.bf16.mxu0 %v1380_v27  ;;  %v271_v26 = vld [vmem:[%s2345_s1 + $0x7a0] sm:$0xff]  ;;  %v272_v27 = vld [vmem:[%s2345_s1 + $0x7a8] sm:$0xff] }
  0x58   :  { %1413 = vmatprep.subr.bf16.mxu1 %v1412_v31  ;;  %v1432_v31 = vpack.c.bf16 %v240_v24, %v239_v23  ;;  %v1464_v35 = vpack.c.bf16 %v272_v27, %v271_v26  ;;  %v249_v23 = vld [vmem:[%s2345_s1 + $0x6f0] sm:$0xff]  ;;  %v250_v24 = vld [vmem:[%s2345_s1 + $0x6f8] sm:$0xff]  ;;  %v1450_v27 = vpack.c.bf16 %v232_v20, %v231_v19 }
  0x59   :  { %v282_v26 = vld [vmem:[%s2345_s1 + $0x7f8] sm:$0xff] }
  0x5a   :  { %1383 = vmatpush3.bf16.msra.mxu0 %v1382_v38  ;;  %v273_v38 = vld [vmem:[%s2345_s1 + $0x7b0] sm:$0xff] }
  0x5b   :  { %1415 = vmatpush3.bf16.msra.mxu1 %v1414_v39  ;;  %1385 = vmatprep.subr.bf16.mxu0 %v1384_v40  ;;  %v274_v39 = vld [vmem:[%s2345_s1 + $0x7b8] sm:$0xff] }
  0x5c   :  { %1417 = vmatprep.subr.bf16.mxu1 %v1416_v46  ;;  %v226_v46 = vld [vmem:[%s2345_s1 + $0x638] sm:$0xff]  ;;  %v1468_v48 = vpack.c.bf16 %v274_v39, %v273_v38 }
  0x5e   :  { %1387 = vmatpush3.bf16.msra.mxu0 %v1386_v53  ;;  %v275_v53 = vld [vmem:[%s2345_s1 + $0x7c0] sm:$0xff] }
  0x5f   :  { %1419 = vmatpush3.bf16.msra.mxu1 %v1418_v54  ;;  %1389 = vmatprep.subr.bf16.mxu0 %v1388_v55  ;;  %v1438_v54 = vpack.c.bf16 %v226_v46, %v225_v44  ;;  %v1470_v55 = vpack.c.bf16 %v258_v49, %v257_v47  ;;  %v1472_v59 = vpack.c.bf16 %v276_v33, %v275_v53 }
  0x60   :  { %1421 = vmatprep.subr.bf16.mxu1 %v1420_v58  ;;  %v259_v58 = vld [vmem:[%s2345_s1 + $0x740] sm:$0xff] }
  0x62   :  { %1391 = vmatpush3.bf16.msra.mxu0 %v1390_v1  ;;  %v1442_v1 = vpack.c.bf16 %v228_v45, %v227_v57 }
  0x63   :  { %1423 = vmatpush3.bf16.msra.mxu1 %v1422_v2  ;;  %1425 = vmatprep.subr.bf16.mxu0 %v1424_v3  ;;  %v1474_v2 = vpack.c.bf16 %v260_v60, %v259_v58  ;;  %v1444_v3 = vpack.c.bf16 %v246_v62, %v245_v61 }
  0x64   :  { %1457 = vmatprep.subr.bf16.mxu1 %v1456_v7  ;;  %v1476_v7 = vpack.c.bf16 %v278_v0, %v277_v63 }
  0x65   :  { %716 = vmatmul.mubr.f32.vlgmr.msra.gmra.mrb[4].mxu0 %v1969_v42  ;;  %v223_v42 = vld [vmem:[%s2345_s1 + $0x620] sm:$0xff] }
  0x66   :  { %1427 = vmatpush3.bf16.msra.mxu0 %v1426_v16  ;;  %786 = vmatmul.mubr.f32.vlgmr.msra.gmra.mrb[4].mxu1 %v1990_v52  ;;  %v256_v52 = vld [vmem:[%s2345_s1 + $0x728] sm:$0xff]  ;;  %v1434_v40 = vpack.c.bf16 %v224_v32, %v223_v42  ;;  %v1446_v16 = vpack.c.bf16 %v230_v5, %v229_v4  ;;  %v265_v32 = vld [vmem:[%s2345_s1 + $0x770] sm:$0xff] }
  0x67   :  { %1459 = vmatpush3.bf16.msra.mxu1 %v1458_v17  ;;  %1429 = vmatprep.subr.bf16.mxu0 %v1428_v18  ;;  %v1466_v41 = vpack.c.bf16 %v256_v52, %v255_v34  ;;  %v1478_v17 = vpack.c.bf16 %v262_v8, %v261_v6  ;;  %v1448_v18 = vpack.c.bf16 %v248_v10, %v247_v9  ;;  %v266_v34 = vld [vmem:[%s2345_s1 + $0x778] sm:$0xff]  ;;  %v951_v6 = vld [vmem:[#allocation3] ss:$0 sm:$0xff] }
  0x68   :  { %1461 = vmatprep.subr.bf16.mxu1 %v1460_v13  ;;  %855 = vmatprep.mubr.f32.mxu0 %v353_v25  ;;  %v1480_v13 = vpack.c.bf16 %v280_v14, %v279_v12  ;;  %v281_v25 = vld [vmem:[%s2345_s1 + $0x7f0] sm:$0xff]  ;;  %v1486_v52 = vpack.c.bf16 %v266_v34, %v265_v32 }
  0x69   :  { %925 = vmatprep.mubr.f32.mxu1 %v354_v28  ;;  %v1482_v28 = vpack.c.bf16 %v264_v22, %v263_v21  ;;  %v1484_v42 = vpack.c.bf16 %v282_v26, %v281_v25 }
  0x6a   :  { %1431 = vmatpush3.bf16.msra.mxu0 %v1430_v29  ;;  %v1452_v29 = vpack.c.bf16 %v250_v24, %v249_v23 }
  0x6b   :  { %1463 = vmatpush3.bf16.msra.mxu1 %v1462_v30  ;;  %1433 = vmatprep.subr.bf16.mxu0 %v1432_v31  ;;  %v233_v30 = vld [vmem:[%s2345_s1 + $0x670] sm:$0xff]  ;;  %v234_v31 = vld [vmem:[%s2345_s1 + $0x678] sm:$0xff] }
  0x6c   :  { %1465 = vmatprep.subr.bf16.mxu1 %v1464_v35  ;;  %v1454_v35 = vpack.c.bf16 %v234_v31, %v233_v30 }
  0x6e   :  { %1435 = vmatpush3.bf16.msra.mxu0 %v1434_v40 }
  0x6f   :  { %1467 = vmatpush3.bf16.msra.mxu1 %v1466_v41  ;;  %1437 = vmatprep.subr.bf16.mxu0 %v1436_v43 }
  0x70   :  { %1469 = vmatprep.subr.bf16.mxu1 %v1468_v48 }
  0x72   :  { %1439 = vmatpush3.bf16.msra.mxu0 %v1438_v54 }
  0x73   :  { %1471 = vmatpush3.bf16.msra.mxu1 %v1470_v55  ;;  %1441 = vmatprep.subr.bf16.mxu0 %v1440_v56 }
  0x74   :  { %1473 = vmatprep.subr.bf16.mxu1 %v1472_v59 }
  0x76   :  { %1443 = vmatpush3.bf16.msra.mxu0 %v1442_v1 }
  0x77   :  { %1475 = vmatpush3.bf16.msra.mxu1 %v1474_v2  ;;  %1445 = vmatprep.subr.bf16.mxu0 %v1444_v3  ;;  %v22_v3 = vld [vmem:[#allocation2] sm:$0x3] }
  0x78   :  { %1477 = vmatprep.subr.bf16.mxu1 %v1476_v7 }
  0x7a   :  { %1447 = vmatpush3.bf16.msra.mxu0 %v1446_v16 }
  0x7b   :  { %1479 = vmatpush3.bf16.msra.mxu1 %v1478_v17  ;;  %1449 = vmatprep.subr.bf16.mxu0 %v1448_v18 }
  0x7c   :  { %1481 = vmatprep.subr.bf16.mxu1 %v1480_v13 }
  0x7e   :  { %1451 = vmatpush3.bf16.msra.mxu0 %v1450_v27 }
  0x7f   :  { %1483 = vmatpush3.bf16.msra.mxu1 %v1482_v28  ;;  %1453 = vmatprep.subr.bf16.mxu0 %v1452_v29 }
  0x80   :  { %1485 = vmatprep.subr.bf16.mxu1 %v1484_v42 }
  0x82   :  { %1455 = vmatpush3.bf16.msra.mxu0 %v1454_v35 }
  0x83   :  { %1487 = vmatpush3.bf16.msra.mxu1 %v1486_v52 }
  0x85   :  { %856 = vmatmul.mubr.f32.vlgmr.msra.gmra.mrb[6].mxu0 %v2161_v11 }
  0x86   :  { %926 = vmatmul.mubr.f32.vlgmr.msra.gmra.mrb[6].mxu1 %v2170_v15 }
  0xf8   :  { %v984_v38 = vpop.f32.mrb[0].mxu0 }
  0xf9   :  { %v1019_v39 = vpop.f32.mrb[0].mxu1  ;;  %v985_v40 = vpop.f32.mrb[1].mxu0 }
  0xfa   :  { %v986_v41 = vadd.f32 %v985_v40, %v984_v38  ;;  %v1020_v43 = vpop.f32.mrb[1].mxu1 }
  0xfb   :  { %v1021_v44 = vadd.f32 %v1020_v43, %v1019_v39 }
  0xfd   :  { %v508_v46 = vadd.f32 %v1021_v44, %v986_v41 }
 0x118   :  { %v1054_v47 = vpop.f32.mrb[2].mxu0 }
 0x119   :  { %v1055_v11 = vpop.f32.mrb[3].mxu0  ;;  %v1089_v48 = vpop.f32.mrb[2].mxu1 }
 0x11a   :  { %v1056_v15 = vadd.f32 %v1055_v11, %v1054_v47  ;;  %v1090_v49 = vpop.f32.mrb[3].mxu1 }
 0x11b   :  { %v1091_v50 = vadd.f32 %v1090_v49, %v1089_v48 }
 0x11c   :  { %v578_v51 = vadd.f32 %v1056_v15, %v508_v46 }
 0x11e   :  { %v648_v53 = vadd.f32 %v1091_v50, %v578_v51 }
 0x138   :  { %v1124_v33 = vpop.f32.mrb[4].mxu0 }
 0x139   :  { %v1125_v54 = vpop.f32.mrb[5].mxu0  ;;  %v1159_v55 = vpop.f32.mrb[4].mxu1 }
 0x13a   :  { %v1126_v56 = vadd.f32 %v1125_v54, %v1124_v33  ;;  %v1160_v57 = vpop.f32.mrb[5].mxu1 }
 0x13b   :  { %v1161_v45 = vadd.f32 %v1160_v57, %v1159_v55 }
 0x13c   :  { %v718_v58 = vadd.f32 %v1126_v56, %v648_v53 }
 0x13e   :  { %v788_v59 = vadd.f32 %v1161_v45, %v718_v58 }
 0x158   :  { %v1194_v60 = vpop.f32.mrb[6].mxu0 }
 0x159   :  { %v1195_v61 = vpop.f32.mrb[7].mxu0  ;;  %v1229_v62 = vpop.f32.mrb[6].mxu1 }
 0x15a   :  { %v1196_v63 = vadd.f32 %v1195_v61, %v1194_v60  ;;  %v1230_v0 = vpop.f32.mrb[7].mxu1 }
 0x15b   :  { %v1231_v1 = vadd.f32 %v1230_v0, %v1229_v62 }
 0x15c   :  { %v858_v2 = vadd.f32 %v1196_v63, %v788_v59 }
 0x15e   :  { %v928_v4 = vadd.f32 %v1231_v1, %v858_v2 }
 0x160   :  { %v931_v5 = vadd.f32 %v928_v4, %v22_v3 }
 0x162   :  { %933 = vst.msk [vmem:[#allocation2] sm:$0x3] %vm20_vm0, %v931_v5 }
 0x169   :  { %v937_v7 = vld [vmem:[#allocation2] sm:$0x3] }
 0x16a   :  { %v945_v8 = vadd.f32 %v951_v6, %v937_v7 }
 0x16c   :  { %946 = vst.msk [vmem:[%s2348_s3] sm:$0x3] %vm20_vm0, %v945_v8 }

// kernel: clock_hgru_forward.2
= control target key start
LH: loop header
LB: loop body
LE: loop exit
PB: predicated region body
PF: predicated region fallthrough
CT: control target
= control target key end

     0   :  { %s5435_s30 = smov 0   ;;  %s5437_s10 = smov 0   ;;  %s6471_s0 = inlined_call_operand.vmem [shape: f32[2,8,3,256], index: 0, kind: input, shape index: {}]   ;;  %s6472_s1 = inlined_call_operand.vmem [shape: f32[8,3], index: 1, kind: input, shape index: {}]   ;;  %s6473_s2 = inlined_call_operand.vmem [shape: bf16[25,8,8], index: 2, kind: input, shape index: {}]   ;;  %s6474_s3 = inlined_call_operand.vmem [shape: bf16[25,8,8], index: 3, kind: input, shape index: {}]   ;;  %s6475_s4 = inlined_call_operand.vmem [shape: f32[8,8], index: 4, kind: input, shape index: {}]   ;;  %s6476_s5 = inlined_call_operand.vmem [shape: f32[8,8], index: 5, kind: input, shape index: {}]   ;;  %s6477_s6 = inlined_call_operand.vmem [shape: f32[8,8], index: 6, kind: input, shape index: {}]   ;;  %s6478_s7 = inlined_call_operand.vmem [shape: f32[1,8], index: 7, kind: input, shape index: {}]   ;;  %s6479_s8 = inlined_call_operand.vmem [shape: f32[5,320], index: 8, kind: input, shape index: {}]   ;;  %s6480_s9 = inlined_call_operand.vmem [shape: f32[2,8,256], index: 9, kind: output, shape index: {}]  }
   0x1   :  { %s5439_s11 = smov 0   ;;  %s5441_s12 = smov 0  }
   0x2   :  { %s5443_s13 = smov 0  }
   0x3 LB: > { %s28_s14 = sadd.s32 1, %s5351_s11  ;;  %s31_s15 = sadd.s32 1, %s5355_s12  ;;  %s5359_s13 = sphi %s5443_s13, %s19_s13   ;;  %s5355_s12 = sphi %s5441_s12, %s6493_s12   ;;  %s5351_s11 = sphi %s5439_s11, %s6492_s11   ;;  %s5347_s10 = sphi %s5437_s10, %s6491_s10   ;;  %s5343_s30 = sphi %s5435_s30, %s6490_s30  }
   0x4   : > { %p29_p0 = scmp.ge.s32.totalorder %s28_s14, 8  ;;  %p4741_p1 = scmp.ge.s32.totalorder %s5359_s13, 1 }
   0x5   : > { %p305_p2 = scmp.lt.s32.totalorder %s5359_s13, 17 }
   0x6   : > { %s6495_s14 = smov (%p29_p0, %s28_s14), 0  ;;  %s6497_s15 = smov (!%p29_p0, %s31_s15), %s5355_s12 }
   0x7   : > { %p306_p3 = pnand %p4741_p1, %p305_p2  ;;  %p33_p4 = scmp.ge.s32.totalorder %s6497_s15, 2 }
   0x8   : > { %p345_p5 = scmp.lt.s32.totalorder (!%p306_p3), %s5347_s10, 1  ;;  %p347_p6 = scmp.lt.s32.totalorder (!%p306_p3), %s5343_s30, 7 }
   0x9   : > { %s6499_s15 = smov (%p33_p4, %s6497_s15), 0  ;;  %309 = sbr.rel (%p306_p3) target bundleno = 2429 (0x97d), region = 56 }
   0xa   : > { %p4747_p7 = scmp.ne.s32.totalorder (!%p306_p3), %s5343_s30, 0 }
  0x10   : > { %s6501_s10 = smov (!%p345_p5, %s5347_s10), 1  ;;  %363 = sbr.rel (%p4747_p7) target bundleno = 23 (0x17), region = 60 }
  0x11   : > { %s348_s16 = scalar_select %p347_p6, %s5343_s30, 7 }
  0x12   : > { %s4743_s17 = sshll.u32 %s6501_s10, 4  ;;  %v5361_v0 = vmov (!%p4747_p7), 0.0  }
  0x13   : > { %s4742_s18 = sshll.u32 %s348_s16, 1  ;;  %s5472_s21 = scalar_lea.vmem %s6480_s9, %s4743_s17  ;;  %364 = vst [vmem:[#allocation2] sm:$0xff] (!%p4747_p7), %v5361_v0  ;;  %365 = vst [vmem:[#allocation2 + $0x8] sm:$0xff] (!%p4747_p7), %v5361_v0 }
  0x14   : > { %s351_s22 = sadd.s32 %s4743_s17, %s4742_s18  ;;  %366 = vst [vmem:[#allocation3] sm:$0xff] (!%p4747_p7), %v5361_v0  ;;  %367 = vst [vmem:[#allocation3 + $0x8] sm:$0xff] (!%p4747_p7), %v5361_v0 }
  0x15   : > { %s4744_s23 = sshll.u32 %s351_s22, 2  ;;  %368 = vst [vmem:[#allocation4] sm:$0xff] (!%p4747_p7), %v5361_v0  ;;  %369 = vst [vmem:[#allocation4 + $0x18] sm:$0xff] (!%p4747_p7), %v5361_v0 }
  0x16   : > { %s5477_s26 = scalar_lea.vmem %s6471_s0, %s4744_s23 }
  0x17 PF: > { %v464_v3 = vld [vmem:[%s6475_s4] sm:$0xff]  ;;  %vm469_vm0 = vcmask 64512   ;;  %v566_v4 = vlaneseq  ;;  %v5362_v5 = vmov 0.0   ;;  %v5363_v7 = vmov 5   ;;  %s5364_s18 = smov 94   ;;  %s5365_s22 = smov 34  }
  0x18   : > { %537 = vmatprep.mubr.f32.mxu1 %v5362_v5  ;;  %v5487_v6 = vld [vmem:[%s6477_s6] sm:$0xff]  ;;  %5258 = vset.pattern.permute.xlu0 %v5363_v7  ;;  %vm584_vm1 = vcmask 769024   ;;  %s5366_s25 = smov 95   ;;  %s5367_s27 = smov 96   ;;  %vm384_vm2 = vcmask 1042432   ;;  %vm615_vm3 = vcmask 1043456  }
  0x19   : > { %v5490_v8 = vshrl.u32 %v566_v4, 7  ;;  %466 = vperm.xlu0 %5258, %v5487_v6   ;;  %v564_v9 = vld [vmem:[%s6479_s8] ss:$8 sm:$0x7]  ;;  %453 = vmatprep.mubr.f32.mxu0 %v5362_v5  ;;  %vm617_vm4 = vcmask 277504   ;;  %vm623_vm5 = vcmask 519168  }
  0x1a   : > { %v4771_v44 = vld [vmem:[%s6479_s8 + $0x1] ss:$8 sm:$0x7]  ;;  %v4794_v49 = vld [vmem:[%s6479_s8 + $0x2] ss:$8 sm:$0x7] }
  0x1b   : > { %v463_v1 = vld [vmem:[#allocation3 + $0x8] sm:$0xff]  ;;  %v462_v2 = vld [vmem:[#allocation3] sm:$0xff]  ;;  %v5498_v10 = vsub.s32 1, %v5490_v8  ;;  %v5501_v11 = vsub.s32 2, %v5490_v8  ;;  %v5504_v12 = vsub.s32 0, %v5490_v8  ;;  %vm962_vm6 = vcmask 777216  }
  0x1c   : > { %473 = vmatprep.subr.mxu1 %v463_v1  ;;  %v5514_v30 = vld [vmem:[#allocation4] sm:$0xff]  ;;  %v5516_v31 = vld [vmem:[#allocation4 + $0x18] sm:$0xff]  ;;  %vm380_vm7 = vcmask 23552   ;;  %s5368_s29 = smov 112   ;;  %s5370_s10 = smov 33   ;;  %vm756_vm8 = vcmask 785408  }
  0x1d   : > { %474 = vmatpush1.msra.mxu1 %v462_v2  ;;  %v573_v13 = vrot.slane %v564_v9, %v5498_v10  ;;  %v569_v14 = vrot.slane %v564_v9, %v5504_v12  ;;  %v577_v15 = vrot.slane %v564_v9, %v5501_v11  ;;  %v947_v47 = vrot.slane %v4771_v44, %v5504_v12  ;;  %v372_v54 = vld [vmem:[%s5477_s26] sm:$0x77]  ;;  %s5371_s16 = smov 80   ;;  %s5372_s17 = smov 64  }
  0x1e   : > { %4751 = vmatmul.mubr.msk.f32.vlgmr.msra.gmra.mrb[0].mxu1 %vm469_vm0, %v464_v3  ;;  %v951_v48 = vrot.slane %v4771_v44, %v5498_v10  ;;  %v955_v50 = vrot.slane %v4771_v44, %v5501_v11  ;;  %v1329_v51 = vrot.slane %v4794_v49, %v5504_v12  ;;  %v1333_v52 = vrot.slane %v4794_v49, %v5498_v10  ;;  %s5373_s23 = smov 97   ;;  %s5374_s24 = smov 32  }
  0x1f   : > { %2597 = vmatprep.mubr.f32.mxu1 %v5362_v5  ;;  %580 = vrot.lane.b32.xlu1 %v573_v13, %s5364_s18  ;;  %v1337_v53 = vrot.slane %v4794_v49, %v5501_v11  ;;  %v379_v55 = vcombine.high %v372_v54, %v372_v54  ;;  %vm644_vm9 = vcmask 916480   ;;  %vm994_vm10 = vcmask 269312   ;;  %s6485_s26 = smov 98   ;;  %s6481_s20 = smov 31  }
  0x20   : > { %578 = vrot.lane.b32.xlu0 %v569_v14, %s5364_s18  ;;  %v5369_v14 = vmov 0   ;;  %vm819_vm11 = vcmask 654336   ;;  %vm1726_vm12 = vcmask 793600   ;;  %vm882_vm13 = vcmask 523264   ;;  %s6483_s28 = smov 30   ;;  %s6487_s19 = smov 98  }
  0x21   : > { %4748 = vmatprep.subr.msk.mxu0 %vm384_vm2, %v379_v55  ;;  %5259 = vset.pattern.permute.xlu0 %v5369_v14  ;;  %vm1376_vm14 = vcmask 261120   ;;  %vm2108_vm15 = vcmask 801792  }
  0x22   : > { %4749 = vmatpush1.msk.msra.mxu0 %vm384_vm2, %v372_v54  ;;  %vm1758_vm2 = vcmask 252928  }
  0x23   : > { %582 = vrot.lane.b32.xlu1 %v577_v15, %s5364_s18 }
  0x91   : > { %v581_v29 = vpop.permute.xlu1 %580 }
  0x95   : > { %v583_v34 = vpop.permute.xlu1 %582 }
  0x96   : > { %v594_v39 = vmul.f32 %v583_v34, %v5516_v31  ;;  %v586_v41 = vsel %vm584_vm1, %v581_v29, %v583_v34 }
  0x98   : > { %v467_v16 = vpop.permute.xlu0 %466 }
  0x9c   : > { %v579_v32 = vpop.permute.xlu0 %578 }
  0x9d   : > { %v591_v37 = vmul.f32 %v579_v32, %v5514_v30  ;;  %v585_v40 = vsel %vm584_vm1, %v579_v32, %v581_v29 }
  0xf1   : > { %v539_v17 = vpop.f32.mrb[0].mxu1 }
  0xf2   : > { %v540_v18 = vadd.f32 %v539_v17, %v467_v16  ;;  %v541_v19 = vpop.f32.mrb[1].mxu1 }
  0xf3   : > { %v542_v20 = vadd.f32 %v541_v19, %v467_v16 }
  0xf4   : > { %v544_v21 = vsub.f32 0.0, %v540_v18 }
  0xf5   : > { %v545_v22 = vsub.f32 0.0, %v542_v20 }
  0xf6   : > { %v546_v23 = vmul.f32 1.442695, %v544_v21 }
  0xf7   : > { %v548_v24 = vmul.f32 1.442695, %v545_v22 }
  0xf8   : > { %5278 = vpow2.f32 %v546_v23  ;;  %v4817_v23 = vld [vmem:[%s6479_s8 + $0x3] ss:$8 sm:$0x7] }
  0xf9   : > { %5280 = vpow2.f32 %v548_v24  ;;  %v1711_v32 = vrot.slane %v4817_v23, %v5504_v12 }
 0x102   : > { %v5279_v25 = vpop.eup %5278 }
 0x103   : > { %v5281_v26 = vpop.eup %5280  ;;  %v550_v27 = vadd.f32 1.0, %v5279_v25 }
 0x104   : > { %v551_v28 = vadd.f32 1.0, %v5281_v26  ;;  %v1715_v26 = vrot.slane %v4817_v23, %v5498_v10 }
 0x105   : > { %5282 = vrcp.f32 %v550_v27 }
 0x106   : > { %5284 = vrcp.f32 %v551_v28 }
 0x10f   : > { %v5518_v33 = vpop.eup %5282 }
 0x110   : > { %v5520_v35 = vpop.eup %5284  ;;  %v5523_v36 = vmul.f32 %v5518_v33, %v462_v2  ;;  %v371_v2 = vld [vmem:[%s6472_s1] sm:$0xff] }
 0x111   : > { %v5527_v38 = vmul.f32 %v5520_v35, %v463_v1  ;;  %4750 = vmatmul.mubr.msk.f32.vlgmr.msra.gmra.mrb[0].mxu0 %vm380_vm7, %v371_v2  ;;  %vm2140_vm7 = vcmask 244736  }
 0x112   : > { %v592_v42 = vmul.f32 %v585_v40, %v5523_v36  ;;  %689 = vmatprep.mubr.bf16.mxu0 %v5369_v14 }
 0x113   : > { %v593_v43 = vmul.f32 %v586_v41, %v5527_v38 }
 0x114   : > { %v4981_v45 = vpack.c.bf16 %v592_v42, %v591_v37 }
 0x115   : > { %v4982_v46 = vpack.c.bf16 %v594_v39, %v593_v43  ;;  %v1719_v39 = vrot.slane %v4817_v23, %v5501_v11 }
 0x116   : > { %609 = vrot.lane.b32.xlu0 %v4981_v45, %s5365_s22 }
 0x117   : > { %611 = vrot.lane.b32.xlu1 %v4982_v46, %s5365_s22 }
 0x11a   : > { %956 = vrot.lane.b32.xlu0 %v947_v47, %s5366_s25 }
 0x11b   : > { %958 = vrot.lane.b32.xlu1 %v951_v48, %s5366_s25 }
 0x11e   : > { %960 = vrot.lane.b32.xlu0 %v955_v50, %s5366_s25 }
 0x11f   : > { %1338 = vrot.lane.b32.xlu1 %v1329_v51, %s5367_s27 }
 0x122   : > { %1340 = vrot.lane.b32.xlu0 %v1333_v52, %s5367_s27  ;;  %v4754_v52 = vld [vmem:[%s6473_s2 + $0x14] sm:$0xf] }
 0x123   : > { %1342 = vrot.lane.b32.xlu1 %v1337_v53, %s5367_s27 }
 0x188   : > { %v610_v56 = vpop.permute.xlu0 %609 }
 0x189   : > { %v613_v57 = vrot.slane %v610_v56, 4  ;;  %v612_v58 = vpop.permute.xlu1 %611 }
 0x18a   : > { %v614_v59 = vrot.slane %v612_v58, 4 }
 0x18c   : > { %v616_v60 = vsel %vm615_vm3, %v613_v57, %v614_v59  ;;  %v619_v61 = vsel %vm617_vm4, %v612_v58, %v614_v59  ;;  %v957_v62 = vpop.permute.xlu0 %956 }
 0x18d   : > { %v618_v63 = vsel %vm617_vm4, %v610_v56, %v616_v60  ;;  %624 = vst.msk [vmem:[#allocation5 + $0x8] sm:$0xf] %vm623_vm5, %v619_v61  ;;  %v969_v0 = vmul.f32 %v957_v62, %v5514_v30  ;;  %v959_v1 = vpop.permute.xlu1 %958 }
 0x18e   : > { %v963_v3 = vsel %vm962_vm6, %v957_v62, %v959_v1  ;;  %v5564_v7 = vcombine.high %v618_v63, %v618_v63  ;;  %v4755_v18 = vcombine.low %v618_v63, %v618_v63 }
 0x18f   : > { %v970_v9 = vmul.f32 %v963_v3, %v5523_v36 }
 0x190   : > { %640 = vrot.lane.b32.xlu1 %v5564_v7, %s5368_s29  ;;  %v961_v15 = vpop.permute.xlu0 %960  ;;  %v702_v56 = vsel %vm615_vm3, %v4755_v18, 0 }
 0x191   : > { %v4983_v13 = vpack.c.bf16 %v970_v9, %v969_v0  ;;  %v964_v17 = vsel %vm962_vm6, %v959_v1, %v961_v15  ;;  %v972_v20 = vmul.f32 %v961_v15, %v5516_v31  ;;  %v1339_v24 = vpop.permute.xlu1 %1338 }
 0x192   : > { %v971_v19 = vmul.f32 %v964_v17, %v5527_v38  ;;  %v1351_v27 = vmul.f32 %v1339_v24, %v5514_v30 }
 0x194   : > { %v5267_v16 = vld [vmem:[#allocation5 + $0x8] ss:$0 sps:$4 sm:$0xff]   ;;  %987 = vrot.lane.b32.xlu1 %v4983_v13, %s5370_s10  ;;  %v4984_v21 = vpack.c.bf16 %v972_v20, %v971_v19  ;;  %v1341_v22 = vpop.permute.xlu0 %1340 }
 0x195   : > { %642 = vrot.lane.b32.xlu0 %v5267_v16, %s5368_s29  ;;  %v1345_v25 = vsel %vm756_vm8, %v1339_v24, %v1341_v22  ;;  %v1343_v29 = vpop.permute.xlu1 %1342  ;;  %v4840_v24 = vld [vmem:[%s6479_s8 + $0x4] ss:$8 sm:$0x7] }
 0x196   : > { %v1352_v28 = vmul.f32 %v1345_v25, %v5523_v36  ;;  %v1346_v37 = vsel %vm756_vm8, %v1341_v22, %v1343_v29  ;;  %v1354_v41 = vmul.f32 %v1343_v29, %v5516_v31  ;;  %v4762_v22 = vld [vmem:[%s6473_s2 + $0x28] sm:$0xf]  ;;  %v2097_v29 = vrot.slane %v4840_v24, %v5498_v10 }
 0x197   : > { %v1353_v40 = vmul.f32 %v1346_v37, %v5527_v38 }
 0x198   : > { %750 = vrot.lane.b32.xlu1 %v4755_v18, %s5367_s27  ;;  %v4985_v34 = vpack.c.bf16 %v1352_v28, %v1351_v27 }
 0x199   : > { %638 = vrot.lane.b32.xlu0 %v4755_v18, %s5368_s29  ;;  %v4986_v42 = vpack.c.bf16 %v1354_v41, %v1353_v40 }
 0x19c   : > { %754 = vrot.lane.b32.xlu1 %v5267_v16, %s5367_s27 }
 0x19d   : > { %989 = vrot.lane.b32.xlu0 %v4984_v21, %s5370_s10 }
 0x1a0   : > { %815 = vrot.lane.b32.xlu1 %v5564_v7, %s5371_s16 }
 0x1a1   : > { %752 = vrot.lane.b32.xlu0 %v5564_v7, %s5367_s27 }
 0x1a4   : > { %876 = vrot.lane.b32.xlu1 %v4755_v18, %s5372_s17 }
 0x1a5   : > { %813 = vrot.lane.b32.xlu0 %v4755_v18, %s5371_s16 }
 0x1a8   : > { %880 = vrot.lane.b32.xlu1 %v5267_v16, %s5372_s17 }
 0x1a9   : > { %817 = vrot.lane.b32.xlu0 %v5267_v16, %s5371_s16 }
 0x1ac   : > { %1722 = vrot.lane.b32.xlu1 %v1715_v26, %s5373_s23 }
 0x1ad   : > { %878 = vrot.lane.b32.xlu0 %v5564_v7, %s5372_s17 }
 0x1b0   : > { %1369 = vrot.lane.b32.xlu1 %v4985_v34, %s5374_s24  ;;  %v2093_v34 = vrot.slane %v4840_v24, %v5504_v12 }
 0x1b1   : > { %1720 = vrot.lane.b32.xlu0 %v1711_v32, %s5373_s23 }
 0x1b5   : > { %1724 = vrot.lane.b32.xlu0 %v1719_v39, %s5373_s23 }
 0x1b9   : > { %1371 = vrot.lane.b32.xlu0 %v4986_v42, %s5374_s24 }
 0x202   : > { %v641_v43 = vpop.permute.xlu1 %640 }
 0x206   : > { %v988_v44 = vpop.permute.xlu1 %987 }
 0x207   : > { %v643_v45 = vpop.permute.xlu0 %642  ;;  %v991_v54 = vrot.slane %v988_v44, 4 }
 0x208   : > { %v646_v46 = vsel %vm644_vm9, %v641_v43, %v643_v45  ;;  %v2101_v45 = vrot.slane %v4840_v24, %v5501_v11  ;;  %v4785_v24 = vld [vmem:[%s6473_s2 + $0x2c] sm:$0xf] }
 0x209   : > { %4758 = vmatprep.subr.msk.bf16.mxu0 %vm615_vm3, %v646_v46 }
 0x20a   : > { %v751_v47 = vpop.permute.xlu1 %750 }
 0x20b   : > { %v639_v48 = vpop.permute.xlu0 %638 }
 0x20c   : > { %v645_v49 = vsel %vm644_vm9, %v639_v48, %v641_v43 }
 0x20d   : > { %v652_v50 = vsel %vm615_vm3, %v645_v49, 0 }
 0x20e   : > { %v755_v51 = vpop.permute.xlu1 %754  ;;  %658 = vmatpush1.bf16.msra.mxu0 %v652_v50 }
 0x20f   : > { %4760 = vmatprep.subr.msk.bf16.mxu0 %vm615_vm3, %v5564_v7  ;;  %v990_v53 = vpop.permute.xlu0 %989  ;;  %v625_v7 = vld [vmem:[%s6473_s2] sm:$0xf] }
 0x210   : > { %v992_v55 = vrot.slane %v990_v53, 4 }
 0x211   : > { %4759 = vmatmul.mubr.msk.bf16.vlgmr.msra.gmra.mrb[4].mxu0 %vm469_vm0, %v4754_v52 }
 0x212   : > { %v816_v57 = vpop.permute.xlu1 %815  ;;  %v993_v58 = vsel %vm615_vm3, %v991_v54, %v992_v55  ;;  %v996_v59 = vsel %vm994_vm10, %v990_v53, %v992_v55  ;;  %708 = vmatpush1.bf16.msra.mxu0 %v702_v56  ;;  %739 = vmatprep.mubr.bf16.mxu0 %v5369_v14 }
 0x213   : > { %v995_v60 = vsel %vm994_vm10, %v988_v44, %v993_v58  ;;  %1000 = vst.msk [vmem:[#allocation5 + $0x8] sm:$0xf] %vm623_vm5, %v996_v59  ;;  %v753_v61 = vpop.permute.xlu0 %752  ;;  %v4774_v59 = vld [vmem:[%s6473_s2 + $0x4] sm:$0xf] }
 0x214   : > { %v758_v62 = vsel %vm756_vm8, %v753_v61, %v755_v51  ;;  %v5624_v63 = vcombine.high %v995_v60, %v995_v60  ;;  %v5626_v0 = vcombine.low %v995_v60, %v995_v60  ;;  %v757_v3 = vsel %vm756_vm8, %v751_v47, %v753_v61  ;;  %v4765_v51 = vld [vmem:[%s6473_s2 + $0x3c] sm:$0xf] }
 0x215   : > { %4763 = vmatprep.subr.msk.bf16.mxu0 %vm615_vm3, %v758_v62  ;;  %v763_v16 = vsel %vm615_vm3, %v757_v3, 0 }
 0x216   : > { %1075 = vrot.lane.b32.xlu0 %v5624_v63, %s5368_s29  ;;  %1073 = vrot.lane.b32.xlu1 %v5626_v0, %s5368_s29  ;;  %v877_v2 = vpop.permute.xlu1 %876  ;;  %v1013_v58 = vsel %vm615_vm3, %v5626_v0, 0 }
 0x217   : > { %v814_v1 = vpop.permute.xlu0 %813 }
 0x218   : > { %v820_v21 = vsel %vm819_vm11, %v814_v1, %v816_v57 }
 0x219   : > { %v826_v27 = vsel %vm615_vm3, %v820_v21, 0 }
 0x21a   : > { %1135 = vrot.lane.b32.xlu0 %v5626_v0, %s5367_s27  ;;  %v5269_v9 = vld [vmem:[#allocation5 + $0x8] ss:$0 sps:$4 sm:$0xff]   ;;  %v881_v17 = vpop.permute.xlu1 %880 }
 0x21b   : > { %v818_v13 = vpop.permute.xlu0 %817  ;;  %1077 = vrot.lane.b32.xlu1 %v5269_v9, %s5368_s29 }
 0x21c   : > { %v821_v15 = vsel %vm819_vm11, %v816_v57, %v818_v13  ;;  %v4768_v57 = vld [vmem:[%s6473_s2 + $0x50] sm:$0xf] }
 0x21d   : > { %4761 = vmatmul.mubr.msk.bf16.vlgmr.msra.gmra.mrb[4].mxu0 %vm469_vm0, %v625_v7  ;;  %v4779_v7 = vld [vmem:[%s6473_s2 + $0x18] sm:$0xf] }
 0x21e   : > { %769 = vmatpush1.bf16.msra.mxu0 %v763_v16  ;;  %1139 = vrot.lane.b32.xlu0 %v5269_v9, %s5367_s27  ;;  %v1723_v20 = vpop.permute.xlu1 %1722 }
 0x21f   : > { %4766 = vmatprep.subr.msk.bf16.mxu0 %vm615_vm3, %v821_v15  ;;  %v879_v18 = vpop.permute.xlu0 %878  ;;  %800 = vmatprep.mubr.bf16.mxu0 %v5369_v14 }
 0x220   : > { %1137 = vrot.lane.b32.xlu1 %v5624_v63, %s5367_s27  ;;  %v884_v28 = vsel %vm882_vm13, %v879_v18, %v881_v17  ;;  %v883_v48 = vsel %vm882_vm13, %v877_v2, %v879_v18 }
 0x221   : > { %v889_v53 = vsel %vm615_vm3, %v883_v48, 0 }
 0x222   : > { %1199 = vrot.lane.b32.xlu0 %v5624_v63, %s5371_s16  ;;  %v1370_v26 = vpop.permute.xlu1 %1369 }
 0x223   : > { %v1721_v19 = vpop.permute.xlu0 %1720  ;;  %v1373_v40 = vrot.slane %v1370_v26, 4 }
 0x224   : > { %1197 = vrot.lane.b32.xlu1 %v5626_v0, %s5371_s16  ;;  %v1727_v25 = vsel %vm1726_vm12, %v1721_v19, %v1723_v20  ;;  %v1733_v37 = vmul.f32 %v1721_v19, %v5514_v30 }
 0x225   : > { %v1734_v39 = vmul.f32 %v1727_v25, %v5523_v36 }
 0x226   : > { %1259 = vrot.lane.b32.xlu0 %v5626_v0, %s5372_s17 }
 0x227   : > { %v1725_v23 = vpop.permute.xlu0 %1724  ;;  %v4987_v46 = vpack.c.bf16 %v1734_v39, %v1733_v37 }
 0x228   : > { %1201 = vrot.lane.b32.xlu1 %v5269_v9, %s5371_s16  ;;  %v1728_v44 = vsel %vm1726_vm12, %v1723_v20, %v1725_v23  ;;  %v1736_v50 = vmul.f32 %v1725_v23, %v5516_v31 }
 0x229   : > { %4764 = vmatmul.mubr.msk.bf16.vlgmr.msra.gmra.mrb[4].mxu0 %vm469_vm0, %v4762_v22  ;;  %v1735_v49 = vmul.f32 %v1728_v44, %v5527_v38 }
 0x22a   : > { %832 = vmatpush1.bf16.msra.mxu0 %v826_v27  ;;  %1263 = vrot.lane.b32.xlu0 %v5269_v9, %s5372_s17 }
 0x22b   : > { %4769 = vmatprep.subr.msk.bf16.mxu0 %vm615_vm3, %v884_v28  ;;  %v1372_v32 = vpop.permute.xlu0 %1371  ;;  %863 = vmatprep.mubr.bf16.mxu0 %v5369_v14  ;;  %v4988_v54 = vpack.c.bf16 %v1736_v50, %v1735_v49 }
 0x22c   : > { %v1374_v41 = vrot.slane %v1372_v32, 4  ;;  %1261 = vrot.lane.b32.xlu1 %v5624_v63, %s5372_s17 }
 0x22e   : > { %v1375_v42 = vsel %vm615_vm3, %v1373_v40, %v1374_v41  ;;  %v1378_v43 = vsel %vm1376_vm14, %v1372_v32, %v1374_v41  ;;  %2104 = vrot.lane.b32.xlu0 %v2097_v29, %s6485_s26 }
 0x22f   : > { %1382 = vst.msk [vmem:[#allocation5 + $0x8] sm:$0xf] %vm623_vm5, %v1378_v43  ;;  %v1377_v47 = vsel %vm1376_vm14, %v1370_v26, %v1375_v42 }
 0x230   : > { %2102 = vrot.lane.b32.xlu1 %v2093_v34, %s6485_s26  ;;  %v5691_v52 = vcombine.low %v1377_v47, %v1377_v47  ;;  %v5701_v56 = vcombine.high %v1377_v47, %v1377_v47 }
 0x232   : > { %1751 = vrot.lane.b32.xlu0 %v4987_v46, %s6481_s20 }
 0x234   : > { %2106 = vrot.lane.b32.xlu1 %v2101_v45, %s6485_s26 }
 0x235   : > { %4767 = vmatmul.mubr.msk.bf16.vlgmr.msra.gmra.mrb[4].mxu0 %vm469_vm0, %v4765_v51 }
 0x236   : > { %895 = vmatpush1.bf16.msra.mxu0 %v889_v53  ;;  %1455 = vrot.lane.b32.xlu0 %v5691_v52, %s5368_s29  ;;  %v5270_v55 = vld [vmem:[#allocation5 + $0x8] ss:$0 sps:$4 sm:$0xff]  }
 0x237   : > { %4777 = vmatprep.subr.msk.bf16.mxu0 %vm615_vm3, %v5624_v63  ;;  %926 = vmatprep.mubr.bf16.mxu0 %v5369_v14 }
 0x238   : > { %1753 = vrot.lane.b32.xlu1 %v4988_v54, %s6481_s20 }
 0x23a   : > { %1459 = vrot.lane.b32.xlu0 %v5270_v55, %s5368_s29 }
 0x23c   : > { %1457 = vrot.lane.b32.xlu1 %v5701_v56, %s5368_s29 }
 0x23e   : > { %1519 = vrot.lane.b32.xlu0 %v5701_v56, %s5367_s27 }
 0x240   : > { %1517 = vrot.lane.b32.xlu1 %v5691_v52, %s5367_s27 }
 0x241   : > { %4770 = vmatmul.mubr.msk.bf16.vlgmr.msra.gmra.mrb[4].mxu0 %vm469_vm0, %v4768_v57 }
 0x242   : > { %1019 = vmatpush1.bf16.msra.mxu0 %v1013_v58  ;;  %1579 = vrot.lane.b32.xlu0 %v5691_v52, %s5371_s16 }
 0x243   : > { %1050 = vmatprep.mubr.bf16.mxu0 %v5369_v14 }
 0x244   : > { %1521 = vrot.lane.b32.xlu1 %v5270_v55, %s5367_s27 }
 0x246   : > { %1583 = vrot.lane.b32.xlu0 %v5270_v55, %s5371_s16 }
 0x248   : > { %1581 = vrot.lane.b32.xlu1 %v5701_v56, %s5371_s16 }
 0x24a   : > { %1643 = vrot.lane.b32.xlu0 %v5701_v56, %s5372_s17 }
 0x24c   : > { %1641 = vrot.lane.b32.xlu1 %v5691_v52, %s5372_s17 }
 0x24d   : > { %4778 = vmatmul.mubr.msk.bf16.vlgmr.msra.gmra.mrb[4].mxu0 %vm469_vm0, %v4774_v59  ;;  %v1395_v59 = vsel %vm615_vm3, %v5691_v52, 0 }
 0x24e   : > { %1122 = vmatprep.mubr.bf16.mxu0 %v5369_v14 }
 0x250   : > { %1645 = vrot.lane.b32.xlu1 %v5270_v55, %s5372_s17  ;;  %v4791_v55 = vld [vmem:[%s6473_s2 + $0x54] sm:$0xf] }
 0x288   : > { %v1076_v60 = vpop.permute.xlu0 %1075  ;;  %v1074_v61 = vpop.permute.xlu1 %1073 }
 0x289   : > { %v1079_v63 = vsel %vm644_vm9, %v1074_v61, %v1076_v60 }
 0x28a   : > { %v1085_v2 = vsel %vm615_vm3, %v1079_v63, 0  ;;  %v4797_v63 = vld [vmem:[%s6473_s2 + $0x8] sm:$0xf] }
 0x28c   : > { %v1136_v62 = vpop.permute.xlu0 %1135 }
 0x28d   : > { %v1078_v0 = vpop.permute.xlu1 %1077 }
 0x28e   : > { %v1080_v1 = vsel %vm644_vm9, %v1076_v60, %v1078_v0 }
 0x28f   : > { %4783 = vmatprep.subr.msk.bf16.mxu0 %vm615_vm3, %v1080_v1 }
 0x290   : > { %v1140_v3 = vpop.permute.xlu0 %1139  ;;  %1091 = vmatpush1.bf16.msra.mxu0 %v1085_v2 }
 0x292   : > { %v1138_v9 = vpop.permute.xlu1 %1137 }
 0x293   : > { %v1141_v13 = vsel %vm756_vm8, %v1136_v62, %v1138_v9  ;;  %v1142_v15 = vsel %vm756_vm8, %v1138_v9, %v1140_v3  ;;  %4784 = vmatmul.mubr.msk.bf16.vlgmr.msra.gmra.mrb[4].mxu0 %vm469_vm0, %v4779_v7  ;;  %v5378_v62 = vmov 1  }
 0x294   : > { %4786 = vmatprep.subr.msk.bf16.mxu0 %vm615_vm3, %v1142_v15  ;;  %v1147_v16 = vsel %vm615_vm3, %v1141_v13, 0  ;;  %v1200_v17 = vpop.permute.xlu0 %1199  ;;  %1184 = vmatprep.mubr.bf16.mxu0 %v5369_v14  ;;  %v4802_v13 = vld [vmem:[%s6473_s2 + $0x1c] sm:$0xf] }
 0x295   : > { %1153 = vmatpush1.bf16.msra.mxu0 %v1147_v16  ;;  %5260 = vset.pattern.permute.xlu1 %v5378_v62 }
 0x296   : > { %v1198_v18 = vpop.permute.xlu1 %1197 }
 0x297   : > { %v1203_v23 = vsel %vm819_vm11, %v1198_v18, %v1200_v17 }
 0x298   : > { %v1260_v19 = vpop.permute.xlu0 %1259  ;;  %v1209_v27 = vsel %vm615_vm3, %v1203_v23, 0  ;;  %v4808_v23 = vld [vmem:[%s6473_s2 + $0x30] sm:$0xf] }
 0x29a   : > { %v1202_v20 = vpop.permute.xlu1 %1201 }
 0x29b   : > { %v1204_v21 = vsel %vm819_vm11, %v1200_v17, %v1202_v20  ;;  %v5829_v20 = vpop.f32.mrb[0].mxu0 }
 0x29c   : > { %4789 = vmatprep.subr.msk.bf16.mxu0 %vm615_vm3, %v1204_v21  ;;  %v1264_v22 = vpop.permute.xlu0 %1263  ;;  %v5831_v21 = vpop.f32.mrb[1].mxu0 }
 0x29e   : > { %v1262_v25 = vpop.permute.xlu1 %1261 }
 0x29f   : > { %v1266_v26 = vsel %vm882_vm13, %v1262_v25, %v1264_v22  ;;  %4787 = vmatmul.mubr.msk.bf16.vlgmr.msra.gmra.mrb[4].mxu0 %vm469_vm0, %v4785_v24  ;;  %v1265_v45 = vsel %vm882_vm13, %v1260_v19, %v1262_v25 }
 0x2a0   : > { %1215 = vmatpush1.bf16.msra.mxu0 %v1209_v27  ;;  %1246 = vmatprep.mubr.bf16.mxu0 %v5369_v14  ;;  %v2105_v29 = vpop.permute.xlu0 %2104 }
 0x2a1   : > { %4792 = vmatprep.subr.msk.bf16.mxu0 %vm615_vm3, %v1266_v26 }
 0x2a2   : > { %v2103_v28 = vpop.permute.xlu1 %2102 }
 0x2a3   : > { %v2115_v32 = vmul.f32 %v2103_v28, %v5514_v30  ;;  %v2109_v34 = vsel %vm2108_vm15, %v2103_v28, %v2105_v29  ;;  %v4788_v30 = vld [vmem:[%s6473_s2 + $0x40] sm:$0xf] }
 0x2a4   : > { %v2116_v37 = vmul.f32 %v2109_v34, %v5523_v36  ;;  %v1752_v44 = vpop.permute.xlu0 %1751  ;;  %v4814_v34 = vld [vmem:[%s6473_s2 + $0x58] sm:$0xf] }
 0x2a5   : > { %v1755_v47 = vrot.slane %v1752_v44, 4 }
 0x2a6   : > { %v2107_v39 = vpop.permute.xlu1 %2106  ;;  %v4989_v40 = vpack.c.bf16 %v2116_v37, %v2115_v32 }
 0x2a7   : > { %v2110_v41 = vsel %vm2108_vm15, %v2105_v29, %v2107_v39  ;;  %v2118_v42 = vmul.f32 %v2107_v39, %v5516_v31  ;;  %v1271_v31 = vsel %vm615_vm3, %v1265_v45, 0  ;;  %v4811_v29 = vld [vmem:[%s6473_s2 + $0x44] sm:$0xf]  ;;  %v4820_v39 = vld [vmem:[%s6473_s2 + $0xc] sm:$0xf] }
 0x2a8   : > { %v2117_v43 = vmul.f32 %v2110_v41, %v5527_v38  ;;  %2133 = vrot.lane.b32.xlu0 %v4989_v40, %s6483_s28  ;;  %v1456_v54 = vpop.permute.xlu0 %1455 }
 0x2aa   : > { %v1754_v36 = vpop.permute.xlu1 %1753  ;;  %v4990_v46 = vpack.c.bf16 %v2118_v42, %v2117_v43 }
 0x2ab   : > { %v1756_v48 = vrot.slane %v1754_v36, 4  ;;  %4790 = vmatmul.mubr.msk.bf16.vlgmr.msra.gmra.mrb[4].mxu0 %vm469_vm0, %v4788_v30 }
 0x2ac   : > { %2135 = vrot.lane.b32.xlu1 %v4990_v46, %s6483_s28  ;;  %1277 = vmatpush1.bf16.msra.mxu0 %v1271_v31  ;;  %v1460_v58 = vpop.permute.xlu0 %1459 }
 0x2ad   : > { %v1757_v38 = vsel %vm615_vm3, %v1755_v47, %v1756_v48  ;;  %v1760_v49 = vsel %vm1758_vm2, %v1754_v36, %v1756_v48  ;;  %1308 = vmatprep.mubr.bf16.mxu0 %v5369_v14  ;;  %4800 = vmatprep.subr.msk.bf16.mxu0 %vm615_vm3, %v5701_v56 }
 0x2ae   : > { %v1759_v50 = vsel %vm1758_vm2, %v1752_v44, %v1757_v38  ;;  %1764 = vst.msk [vmem:[#allocation5 + $0x8] sm:$0xf] %vm623_vm5, %v1760_v49  ;;  %v1458_v56 = vpop.permute.xlu1 %1457 }
 0x2af   : > { %v5778_v51 = vcombine.high %v1759_v50, %v1759_v50  ;;  %v5780_v53 = vcombine.low %v1759_v50, %v1759_v50  ;;  %v1462_v60 = vsel %vm644_vm9, %v1458_v56, %v1460_v58  ;;  %v1461_v52 = vsel %vm644_vm9, %v1456_v54, %v1458_v56 }
 0x2b0   : > { %v1520_v1 = vpop.permute.xlu0 %1519  ;;  %v1467_v2 = vsel %vm615_vm3, %v1461_v52, 0 }
 0x2b1   : > { %1839 = vrot.lane.b32.xlu1 %v5778_v51, %s5368_s29  ;;  %1837 = vrot.lane.b32.xlu0 %v5780_v53, %s5368_s29  ;;  %v1777_v37 = vsel %vm615_vm3, %v5780_v53, 0 }
 0x2b2   : > { %v1518_v61 = vpop.permute.xlu1 %1517 }
 0x2b3   : > { %v1523_v9 = vsel %vm756_vm8, %v1518_v61, %v1520_v1 }
 0x2b4   : > { %v1580_v7 = vpop.permute.xlu0 %1579  ;;  %v1529_v17 = vsel %vm615_vm3, %v1523_v9, 0 }
 0x2b5   : > { %1899 = vrot.lane.b32.xlu1 %v5780_v53, %s5367_s27  ;;  %v5271_v57 = vld [vmem:[#allocation5 + $0x8] ss:$0 sps:$4 sm:$0xff]  }
 0x2b6   : > { %1841 = vrot.lane.b32.xlu0 %v5271_v57, %s5368_s29  ;;  %v1522_v0 = vpop.permute.xlu1 %1521 }
 0x2b7   : > { %4793 = vmatmul.mubr.msk.bf16.vlgmr.msra.gmra.mrb[4].mxu0 %vm469_vm0, %v4791_v55  ;;  %v1524_v3 = vsel %vm756_vm8, %v1520_v1, %v1522_v0  ;;  %v4825_v55 = vld [vmem:[%s6473_s2 + $0x20] sm:$0xf]  ;;  %v4831_v1 = vld [vmem:[%s6473_s2 + $0x34] sm:$0xf] }
 0x2b8   : > { %1401 = vmatpush1.bf16.msra.mxu0 %v1395_v59  ;;  %1432 = vmatprep.mubr.bf16.mxu0 %v5369_v14  ;;  %v1584_v16 = vpop.permute.xlu0 %1583 }
 0x2b9   : > { %1903 = vrot.lane.b32.xlu1 %v5271_v57, %s5367_s27  ;;  %4806 = vmatprep.subr.msk.bf16.mxu0 %vm615_vm3, %v1462_v60 }
 0x2ba   : > { %1901 = vrot.lane.b32.xlu0 %v5778_v51, %s5367_s27  ;;  %v1582_v15 = vpop.permute.xlu1 %1581 }
 0x2bb   : > { %v1586_v18 = vsel %vm819_vm11, %v1582_v15, %v1584_v16  ;;  %v1585_v22 = vsel %vm819_vm11, %v1580_v7, %v1582_v15  ;;  %v4834_v16 = vld [vmem:[%s6473_s2 + $0x48] sm:$0xf] }
 0x2bc   : > { %v1644_v25 = vpop.permute.xlu0 %1643  ;;  %v1591_v26 = vsel %vm615_vm3, %v1585_v22, 0 }
 0x2bd   : > { %1963 = vrot.lane.b32.xlu1 %v5778_v51, %s5371_s16 }
 0x2be   : > { %1961 = vrot.lane.b32.xlu0 %v5780_v53, %s5371_s16  ;;  %v1642_v19 = vpop.permute.xlu1 %1641 }
 0x2bf   : > { %v1647_v28 = vsel %vm882_vm13, %v1642_v19, %v1644_v25 }
 0x2c0   : > { %v1653_v32 = vsel %vm615_vm3, %v1647_v28, 0 }
 0x2c1   : > { %2023 = vrot.lane.b32.xlu1 %v5780_v53, %s5372_s17 }
 0x2c2   : > { %1965 = vrot.lane.b32.xlu0 %v5271_v57, %s5371_s16  ;;  %v1646_v24 = vpop.permute.xlu1 %1645 }
 0x2c3   : > { %4801 = vmatmul.mubr.msk.bf16.vlgmr.msra.gmra.mrb[4].mxu0 %vm469_vm0, %v4797_v63  ;;  %v1648_v27 = vsel %vm882_vm13, %v1644_v25, %v1646_v24  ;;  %v4843_v25 = vld [vmem:[%s6473_s2 + $0x10] sm:$0xf] }
 0x2c4   : > { %1473 = vmatpush1.bf16.msra.mxu0 %v1467_v2  ;;  %1504 = vmatprep.mubr.bf16.mxu0 %v5369_v14 }
 0x2c5   : > { %2027 = vrot.lane.b32.xlu1 %v5271_v57, %s5372_s17  ;;  %4809 = vmatprep.subr.msk.bf16.mxu0 %vm615_vm3, %v1524_v3 }
 0x2c6   : > { %2025 = vrot.lane.b32.xlu0 %v5778_v51, %s5372_s17 }
 0x2cf   : > { %4807 = vmatmul.mubr.msk.bf16.vlgmr.msra.gmra.mrb[4].mxu0 %vm469_vm0, %v4802_v13  ;;  %v5379_v13 = vmov 7  }
 0x2d0   : > { %1535 = vmatpush1.bf16.msra.mxu0 %v1529_v17  ;;  %1566 = vmatprep.mubr.bf16.mxu0 %v5369_v14 }
 0x2d1   : > { %4812 = vmatprep.subr.msk.bf16.mxu0 %vm615_vm3, %v1586_v18  ;;  %v2622_v18 = vld [vmem:[%s6479_s8] ss:$8 sm:$0x7] }
 0x2d2   : > { %v2631_v19 = vrot.slane %v2622_v18, %v5498_v10  ;;  %v2635_v22 = vrot.slane %v2622_v18, %v5501_v11 }
 0x2db   : > { %4810 = vmatmul.mubr.msk.bf16.vlgmr.msra.gmra.mrb[4].mxu0 %vm469_vm0, %v4808_v23  ;;  %v4837_v23 = vld [vmem:[%s6473_s2 + $0x5c] sm:$0xf] }
 0x2dc   : > { %1597 = vmatpush1.bf16.msra.mxu0 %v1591_v26  ;;  %1628 = vmatprep.mubr.bf16.mxu0 %v5369_v14 }
 0x2dd   : > { %4815 = vmatprep.subr.msk.bf16.mxu0 %vm615_vm3, %v1648_v27 }
 0x2e7   : > { %4813 = vmatmul.mubr.msk.bf16.vlgmr.msra.gmra.mrb[4].mxu0 %vm469_vm0, %v4811_v29 }
 0x2e8   : > { %1659 = vmatpush1.bf16.msra.mxu0 %v1653_v32  ;;  %1690 = vmatprep.mubr.bf16.mxu0 %v5369_v14 }
 0x2e9   : > { %4823 = vmatprep.subr.msk.bf16.mxu0 %vm615_vm3, %v5778_v51 }
 0x2f3   : > { %4816 = vmatmul.mubr.msk.bf16.vlgmr.msra.gmra.mrb[4].mxu0 %vm469_vm0, %v4814_v34 }
 0x2f4   : > { %1783 = vmatpush1.bf16.msra.mxu0 %v1777_v37  ;;  %1814 = vmatprep.mubr.bf16.mxu0 %v5369_v14 }
 0x2ff   : > { %4824 = vmatmul.mubr.msk.bf16.vlgmr.msra.gmra.mrb[4].mxu0 %vm469_vm0, %v4820_v39 }
 0x300   : > { %1886 = vmatprep.mubr.bf16.mxu0 %v5369_v14 }
 0x31a   : > { %v2134_v40 = vpop.permute.xlu0 %2133 }
 0x31b   : > { %v2137_v42 = vrot.slane %v2134_v40, 4 }
 0x31e   : > { %v2136_v41 = vpop.permute.xlu1 %2135 }
 0x31f   : > { %v2138_v43 = vrot.slane %v2136_v41, 4 }
 0x321   : > { %v2139_v44 = vsel %vm615_vm3, %v2137_v42, %v2138_v43  ;;  %v2142_v45 = vsel %vm2140_vm7, %v2136_v41, %v2138_v43 }
 0x322   : > { %v2141_v30 = vsel %vm2140_vm7, %v2134_v40, %v2139_v44  ;;  %2146 = vst.msk [vmem:[#allocation5 + $0x8] sm:$0xf] %vm623_vm5, %v2142_v45  ;;  %v4848_v40 = vld [vmem:[%s6473_s2 + $0x24] sm:$0xf] }
 0x323   : > { %v1840_v36 = vpop.permute.xlu1 %1839  ;;  %v5867_v46 = vcombine.high %v2141_v30, %v2141_v30  ;;  %v5869_v47 = vcombine.low %v2141_v30, %v2141_v30  ;;  %v1838_v48 = vpop.permute.xlu0 %1837 }
 0x324   : > { %v1843_v38 = vsel %vm644_vm9, %v1838_v48, %v1840_v36 }
 0x325   : > { %2221 = vrot.lane.b32.xlu1 %v5867_v46, %s5368_s29  ;;  %2219 = vrot.lane.b32.xlu0 %v5869_v47, %s5368_s29  ;;  %v1849_v53 = vsel %vm615_vm3, %v1843_v38, 0  ;;  %v2159_v24 = vsel %vm615_vm3, %v5869_v47, 0 }
 0x327   : > { %v1900_v31 = vpop.permute.xlu1 %1899 }
 0x328   : > { %v1842_v49 = vpop.permute.xlu0 %1841 }
 0x329   : > { %2281 = vrot.lane.b32.xlu1 %v5869_v47, %s5367_s27  ;;  %v5272_v50 = vld [vmem:[#allocation5 + $0x8] ss:$0 sps:$4 sm:$0xff]   ;;  %v1844_v51 = vsel %vm644_vm9, %v1840_v36, %v1842_v49 }
 0x32a   : > { %2223 = vrot.lane.b32.xlu0 %v5272_v50, %s5368_s29  ;;  %4829 = vmatprep.subr.msk.bf16.mxu0 %vm615_vm3, %v1844_v51 }
 0x32b   : > { %v1904_v54 = vpop.permute.xlu1 %1903  ;;  %1855 = vmatpush1.bf16.msra.mxu0 %v1849_v53 }
 0x32c   : > { %v1902_v57 = vpop.permute.xlu0 %1901 }
 0x32d   : > { %2285 = vrot.lane.b32.xlu1 %v5272_v50, %s5367_s27  ;;  %v1905_v56 = vsel %vm756_vm8, %v1900_v31, %v1902_v57  ;;  %v1906_v58 = vsel %vm756_vm8, %v1902_v57, %v1904_v54  ;;  %v4854_v31 = vld [vmem:[%s6473_s2 + $0x38] sm:$0xf]  ;;  %v4857_v54 = vld [vmem:[%s6473_s2 + $0x4c] sm:$0xf]  ;;  %v4860_v57 = vld [vmem:[%s6473_s2 + $0x60] sm:$0xf] }
 0x32e   : > { %2283 = vrot.lane.b32.xlu0 %v5867_v46, %s5367_s27  ;;  %4830 = vmatmul.mubr.msk.bf16.vlgmr.msra.gmra.mrb[4].mxu0 %vm469_vm0, %v4825_v55  ;;  %v1911_v59 = vsel %vm615_vm3, %v1905_v56, 0  ;;  %v5984_v56 = vld [vmem:[#allocation2] sm:$0xff] }
 0x32f   : > { %v1964_v60 = vpop.permute.xlu1 %1963  ;;  %4832 = vmatprep.subr.msk.bf16.mxu0 %vm615_vm3, %v1906_v58  ;;  %1948 = vmatprep.mubr.bf16.mxu0 %v5369_v14 }
 0x330   : > { %1917 = vmatpush1.bf16.msra.mxu0 %v1911_v59  ;;  %v1962_v61 = vpop.permute.xlu0 %1961  ;;  %v5986_v59 = vld [vmem:[#allocation2 + $0x8] sm:$0xff] }
 0x331   : > { %2345 = vrot.lane.b32.xlu1 %v5867_v46, %s5371_s16  ;;  %v1967_v0 = vsel %vm819_vm11, %v1962_v61, %v1964_v60 }
 0x332   : > { %2343 = vrot.lane.b32.xlu0 %v5869_v47, %s5371_s16  ;;  %v1973_v9 = vsel %vm615_vm3, %v1967_v0, 0 }
 0x333   : > { %v2024_v62 = vpop.permute.xlu1 %2023 }
 0x334   : > { %v1966_v52 = vpop.permute.xlu0 %1965 }
 0x335   : > { %2405 = vrot.lane.b32.xlu1 %v5869_v47, %s5372_s17  ;;  %v1968_v63 = vsel %vm819_vm11, %v1964_v60, %v1966_v52 }
 0x336   : > { %2347 = vrot.lane.b32.xlu0 %v5272_v50, %s5371_s16  ;;  %4835 = vmatprep.subr.msk.bf16.mxu0 %vm615_vm3, %v1968_v63 }
 0x337   : > { %v2028_v2 = vpop.permute.xlu1 %2027 }
 0x338   : > { %v2026_v3 = vpop.permute.xlu0 %2025 }
 0x339   : > { %2409 = vrot.lane.b32.xlu1 %v5272_v50, %s5372_s17  ;;  %v2030_v7 = vsel %vm882_vm13, %v2026_v3, %v2028_v2  ;;  %v2029_v15 = vsel %vm882_vm13, %v2024_v62, %v2026_v3 }
 0x33a   : > { %2407 = vrot.lane.b32.xlu0 %v5867_v46, %s5372_s17  ;;  %4833 = vmatmul.mubr.msk.bf16.vlgmr.msra.gmra.mrb[4].mxu0 %vm469_vm0, %v4831_v1  ;;  %v2035_v17 = vsel %vm615_vm3, %v2029_v15, 0 }
 0x33b   : > { %1979 = vmatpush1.bf16.msra.mxu0 %v1973_v9  ;;  %2010 = vmatprep.mubr.bf16.mxu0 %v5369_v14 }
 0x33c   : > { %4838 = vmatprep.subr.msk.bf16.mxu0 %vm615_vm3, %v2030_v7 }
 0x33d   : > { %2472 = vperm.xlu1 %5260, %v5487_v6  }
 0x33e   : > { %2466 = vperm.xlu0 %5259, %v5487_v6  }
 0x341   : > { %5261 = vset.pattern.permute.xlu1 %v5379_v13 }
 0x342   : > { %375 = vperm.xlu1 %5261, %v5487_v6   ;;  %v2627_v6 = vrot.slane %v2622_v18, %v5504_v12 }
 0x344   : > { %2636 = vrot.lane.b32.xlu0 %v2627_v6, %s5364_s18 }
 0x346   : > { %4836 = vmatmul.mubr.msk.bf16.vlgmr.msra.gmra.mrb[4].mxu0 %vm469_vm0, %v4834_v16  ;;  %2638 = vrot.lane.b32.xlu1 %v2631_v19, %s5364_s18 }
 0x347   : > { %2041 = vmatpush1.bf16.msra.mxu0 %v2035_v17  ;;  %2072 = vmatprep.mubr.bf16.mxu0 %v5369_v14 }
 0x348   : > { %4846 = vmatprep.subr.msk.bf16.mxu0 %vm615_vm3, %v5867_v46  ;;  %2640 = vrot.lane.b32.xlu0 %v2635_v22, %s5364_s18 }
 0x352   : > { %4839 = vmatmul.mubr.msk.bf16.vlgmr.msra.gmra.mrb[4].mxu0 %vm469_vm0, %v4837_v23 }
 0x353   : > { %2165 = vmatpush1.bf16.msra.mxu0 %v2159_v24  ;;  %2196 = vmatprep.mubr.bf16.mxu0 %v5369_v14 }
 0x35e   : > { %4847 = vmatmul.mubr.msk.bf16.vlgmr.msra.gmra.mrb[4].mxu0 %vm469_vm0, %v4843_v25 }
 0x35f   : > { %2268 = vmatprep.mubr.bf16.mxu0 %v5369_v14 }
 0x397   : > { %v2222_v26 = vpop.permute.xlu1 %2221  ;;  %v2220_v27 = vpop.permute.xlu0 %2219 }
 0x398   : > { %v2225_v29 = vsel %vm644_vm9, %v2220_v27, %v2222_v26 }
 0x399   : > { %v2231_v37 = vsel %vm615_vm3, %v2225_v29, 0 }
 0x39b   : > { %v2282_v28 = vpop.permute.xlu1 %2281 }
 0x39c   : > { %v2224_v32 = vpop.permute.xlu0 %2223 }
 0x39d   : > { %v2226_v34 = vsel %vm644_vm9, %v2222_v26, %v2224_v32 }
 0x39e   : > { %4852 = vmatprep.subr.msk.bf16.mxu0 %vm615_vm3, %v2226_v34 }
 0x39f   : > { %v2286_v39 = vpop.permute.xlu1 %2285  ;;  %2237 = vmatpush1.bf16.msra.mxu0 %v2231_v37 }
 0x3a0   : > { %v2284_v41 = vpop.permute.xlu0 %2283 }
 0x3a1   : > { %v2287_v42 = vsel %vm756_vm8, %v2282_v28, %v2284_v41  ;;  %v2288_v43 = vsel %vm756_vm8, %v2284_v41, %v2286_v39 }
 0x3a2   : > { %v2293_v44 = vsel %vm615_vm3, %v2287_v42, 0  ;;  %4853 = vmatmul.mubr.msk.bf16.vlgmr.msra.gmra.mrb[4].mxu0 %vm469_vm0, %v4848_v40  ;;  %4855 = vmatprep.subr.msk.bf16.mxu0 %vm615_vm3, %v2288_v43 }
 0x3a3   : > { %v2346_v45 = vpop.permute.xlu1 %2345  ;;  %2299 = vmatpush1.bf16.msra.mxu0 %v2293_v44  ;;  %2330 = vmatprep.mubr.bf16.mxu0 %v5369_v14 }
 0x3a4   : > { %v2344_v30 = vpop.permute.xlu0 %2343 }
 0x3a5   : > { %v2349_v48 = vsel %vm819_vm11, %v2344_v30, %v2346_v45 }
 0x3a6   : > { %v2355_v51 = vsel %vm615_vm3, %v2349_v48, 0 }
 0x3a7   : > { %v2406_v36 = vpop.permute.xlu1 %2405 }
 0x3a8   : > { %v2348_v46 = vpop.permute.xlu0 %2347 }
 0x3a9   : > { %v2350_v47 = vsel %vm819_vm11, %v2346_v45, %v2348_v46 }
 0x3aa   : > { %4858 = vmatprep.subr.msk.bf16.mxu0 %vm615_vm3, %v2350_v47 }
 0x3ab   : > { %v2410_v38 = vpop.permute.xlu1 %2409 }
 0x3ac   : > { %v2408_v49 = vpop.permute.xlu0 %2407 }
 0x3ad   : > { %v2412_v50 = vsel %vm882_vm13, %v2408_v49, %v2410_v38  ;;  %v2411_v53 = vsel %vm882_vm13, %v2406_v36, %v2408_v49 }
 0x3ae   : > { %4856 = vmatmul.mubr.msk.bf16.vlgmr.msra.gmra.mrb[4].mxu0 %vm469_vm0, %v4854_v31  ;;  %v2417_v55 = vsel %vm615_vm3, %v2411_v53, 0 }
 0x3af   : > { %2361 = vmatpush1.bf16.msra.mxu0 %v2355_v51  ;;  %2392 = vmatprep.mubr.bf16.mxu0 %v5369_v14 }
 0x3b0   : > { %4861 = vmatprep.subr.msk.bf16.mxu0 %vm615_vm3, %v2412_v50 }
 0x3ba   : > { %4859 = vmatmul.mubr.msk.bf16.vlgmr.msra.gmra.mrb[4].mxu0 %vm469_vm0, %v4857_v54 }
 0x3bb   : > { %2423 = vmatpush1.bf16.msra.mxu0 %v2417_v55  ;;  %2454 = vmatprep.mubr.bf16.mxu0 %v5369_v14 }
 0x3bc   : > { %v2473_v62 = vpop.permute.xlu1 %2472 }
 0x3bd   : > { %v2467_v58 = vpop.permute.xlu0 %2466 }
 0x3be   : > { %v2469_v60 = vmul.f32 %v2467_v58, %v5984_v56  ;;  %v2470_v61 = vmul.f32 %v2467_v58, %v5986_v59 }
 0x3c0   : > { %v2475_v52 = vadd.f32 %v2473_v62, %v2469_v60  ;;  %v2476_v63 = vadd.f32 %v2473_v62, %v2470_v61 }
 0x3c1   : > { %v376_v25 = vpop.permute.xlu1 %375  ;;  %v2637_v49 = vpop.permute.xlu0 %2636 }
 0x3c2   : > { %v456_v34 = vadd.f32 %v5829_v20, %v376_v25  ;;  %v458_v39 = vadd.f32 %v5831_v21, %v376_v25 }
 0x3c5   : > { %v2641_v61 = vpop.permute.xlu0 %2640 }
 0x3c6   : > { %4862 = vmatmul.mubr.msk.bf16.vlgmr.msra.gmra.mrb[4].mxu0 %vm469_vm0, %v4860_v57 }
 0x3c7   : > { %4620 = vmatprep.mubr.f32.mxu0 %v5362_v5 }
 0x499   : > { %v2456_v0 = vpop.f32.mrb[4].mxu0 }
 0x49a   : > { %v2477_v1 = vmul.f32 %v2475_v52, %v2456_v0  ;;  %v2458_v2 = vpop.f32.mrb[5].mxu0  ;;  %v2639_v52 = vpop.permute.xlu1 %2638 }
 0x49b   : > { %v2478_v3 = vmul.f32 %v2476_v63, %v2458_v2  ;;  %v2460_v7 = vpop.f32.mrb[6].mxu0  ;;  %v5995_v63 = vld [vmem:[#allocation4 + $0x18] sm:$0xff] }
 0x49c   : > { %v2481_v9 = vand.u32 2147483647, %v2477_v1  ;;  %v2461_v13 = vpop.f32.mrb[7].mxu0  ;;  %v2479_v27 = vmax.f32 %v2477_v1, 0.0  ;;  %v5998_v1 = vld [vmem:[#allocation4] sm:$0xff] }
 0x49d   : > { %v2482_v5 = vand.u32 2147483647, %v2478_v3  ;;  %v2480_v29 = vmax.f32 %v2478_v3, 0.0  ;;  %v2643_v3 = vsel %vm584_vm1, %v2639_v52, %v2641_v61  ;;  %v2651_v13 = vmul.f32 %v2641_v61, %v5995_v63 }
 0x49e   : > { %v2483_v15 = vsub.f32 0.0, %v2481_v9  ;;  %v2642_v9 = vsel %vm584_vm1, %v2637_v49, %v2639_v52  ;;  %vm4647_vm1 = vcmp.lt.s32.totalorder %v566_v4, 256 }
 0x49f   : > { %v2484_v16 = vsub.f32 0.0, %v2482_v5 }
 0x4a0   : > { %v2485_v17 = vmul.f32 1.442695, %v2483_v15 }
 0x4a1   : > { %v2487_v18 = vmul.f32 1.442695, %v2484_v16 }
 0x4a2   : > { %5286 = vpow2.f32 %v2485_v17 }
 0x4a3   : > { %5288 = vpow2.f32 %v2487_v18  ;;  %v4906_v18 = vld [vmem:[%s6479_s8 + $0x2] ss:$8 sm:$0x7] }
 0x4ac   : > { %v5287_v19 = vpop.eup %5286 }
 0x4ad   : > { %v5289_v6 = vpop.eup %5288  ;;  %v2489_v22 = vadd.f32 1.0, %v5287_v19 }
 0x4ae   : > { %v2490_v23 = vadd.f32 1.0, %v5289_v6  ;;  %v3374_v6 = vrot.slane %v4906_v18, %v5504_v12 }
 0x4af   : > { %5290 = vlog2.f32 %v2489_v22  ;;  %v3378_v22 = vrot.slane %v4906_v18, %v5498_v10 }
 0x4b0   : > { %5292 = vlog2.f32 %v2490_v23  ;;  %v3382_v23 = vrot.slane %v4906_v18, %v5501_v11 }
 0x4b9   : > { %v5291_v24 = vpop.eup %5290 }
 0x4ba   : > { %v5293_v26 = vpop.eup %5292  ;;  %v2492_v28 = vmul.f32 0.6931472, %v5291_v24 }
 0x4bb   : > { %v2494_v32 = vmul.f32 0.6931472, %v5293_v26 }
 0x4bc   : > { %v2495_v37 = vadd.f32 %v2492_v28, %v2479_v27 }
 0x4bd   : > { %v2496_v40 = vadd.f32 %v2494_v32, %v2480_v29 }
 0x4be   : > { %v2497_v41 = vsub.f32 %v456_v34, %v2495_v37 }
 0x4bf   : > { %v2498_v42 = vsub.f32 %v458_v39, %v2496_v40 }
 0x4c0   : > { %v2501_v43 = vand.u32 2147483647, %v2497_v41  ;;  %v2499_v50 = vmax.f32 %v2497_v41, 0.0 }
 0x4c1   : > { %v2502_v44 = vand.u32 2147483647, %v2498_v42  ;;  %v2500_v53 = vmax.f32 %v2498_v42, 0.0  ;;  %v2525_v42 = vld [vmem:[%s6476_s5] sm:$0xff] }
 0x4c2   : > { %v2503_v45 = vsub.f32 0.0, %v2501_v43 }
 0x4c3   : > { %v2504_v30 = vsub.f32 0.0, %v2502_v44 }
 0x4c4   : > { %v2505_v36 = vmul.f32 1.442695, %v2503_v45 }
 0x4c5   : > { %v2507_v46 = vmul.f32 1.442695, %v2504_v30 }
 0x4c6   : > { %5294 = vpow2.f32 %v2505_v36 }
 0x4c7   : > { %5296 = vpow2.f32 %v2507_v46 }
 0x4d0   : > { %v5295_v47 = vpop.eup %5294 }
 0x4d1   : > { %v5297_v48 = vpop.eup %5296  ;;  %v2509_v31 = vadd.f32 1.0, %v5295_v47 }
 0x4d2   : > { %v2510_v38 = vadd.f32 1.0, %v5297_v48 }
 0x4d3   : > { %5298 = vlog2.f32 %v2509_v31 }
 0x4d4   : > { %5300 = vlog2.f32 %v2510_v38 }
 0x4dd   : > { %v5299_v20 = vpop.eup %5298 }
 0x4de   : > { %v5301_v21 = vpop.eup %5300  ;;  %v2512_v51 = vmul.f32 0.6931472, %v5299_v20  ;;  %v4929_v20 = vld [vmem:[%s6479_s8 + $0x3] ss:$8 sm:$0x7] }
 0x4df   : > { %v2514_v54 = vmul.f32 0.6931472, %v5301_v21 }
 0x4e0   : > { %v2515_v55 = vadd.f32 %v2512_v51, %v2499_v50  ;;  %v3757_v50 = vrot.slane %v4929_v20, %v5498_v10 }
 0x4e1   : > { %v2516_v57 = vadd.f32 %v2514_v54, %v2500_v53 }
 0x4e2   : > { %v2517_v58 = vsub.f32 %v2515_v55, %v5984_v56 }
 0x4e3   : > { %v2518_v60 = vsub.f32 %v2516_v57, %v5986_v59  ;;  %v3753_v57 = vrot.slane %v4929_v20, %v5504_v12 }
 0x4e4   : > { %v2519_v62 = vmul.f32 %v5518_v33, %v2517_v58  ;;  %v2648_v33 = vmul.f32 %v2637_v49, %v5998_v1 }
 0x4e5   : > { %v2520_v0 = vmul.f32 %v5520_v35, %v2518_v60  ;;  %v3761_v60 = vrot.slane %v4929_v20, %v5501_v11 }
 0x4e6   : > { %v6001_v2 = vadd.f32 %v2519_v62, %v5984_v56 }
 0x4e7   : > { %v6005_v7 = vadd.f32 %v2520_v0, %v5986_v59  ;;  %v4883_v59 = vld [vmem:[%s6479_s8 + $0x1] ss:$8 sm:$0x7] }
 0x4e8   : > { %2523 = vst [vmem:[#allocation2] sm:$0xff] %v6001_v2  ;;  %v2649_v35 = vmul.f32 %v2642_v9, %v6001_v2  ;;  %v2995_v16 = vrot.slane %v4883_v59, %v5504_v12  ;;  %v2999_v17 = vrot.slane %v4883_v59, %v5498_v10  ;;  %v3003_v19 = vrot.slane %v4883_v59, %v5501_v11 }
 0x4e9   : > { %2524 = vst [vmem:[#allocation2 + $0x8] sm:$0xff] %v6005_v7  ;;  %2533 = vmatprep.subr.mxu1 %v6005_v7  ;;  %v2650_v56 = vmul.f32 %v2643_v3, %v6005_v7 }
 0x4ea   : > { %2534 = vmatpush1.msra.mxu1 %v6001_v2  ;;  %v4991_v5 = vpack.c.bf16 %v2649_v35, %v2648_v33 }
 0x4eb   : > { %v4992_v15 = vpack.c.bf16 %v2651_v13, %v2650_v56  ;;  %4863 = vmatmul.mubr.msk.f32.vlgmr.msra.gmra.mrb[2].mxu1 %vm469_vm0, %v2525_v42 }
 0x4ec   : > { %2666 = vrot.lane.b32.xlu1 %v4991_v5, %s5365_s22  ;;  %2741 = vmatprep.mubr.bf16.mxu1 %v5369_v14 }
 0x4ed   : > { %2668 = vrot.lane.b32.xlu0 %v4992_v15, %s5365_s22  ;;  %v4866_v15 = vld [vmem:[%s6474_s3 + $0x14] sm:$0xf] }
 0x4f0   : > { %3004 = vrot.lane.b32.xlu1 %v2995_v16, %s5366_s25 }
 0x4f1   : > { %3006 = vrot.lane.b32.xlu0 %v2999_v17, %s5366_s25 }
 0x4f4   : > { %3008 = vrot.lane.b32.xlu1 %v3003_v19, %s5366_s25 }
 0x4f5   : > { %3383 = vrot.lane.b32.xlu0 %v3374_v6, %s5367_s27 }
 0x4f8   : > { %3385 = vrot.lane.b32.xlu1 %v3378_v22, %s5367_s27 }
 0x4f9   : > { %3387 = vrot.lane.b32.xlu0 %v3382_v23, %s5367_s27 }
 0x55e   : > { %v2667_v24 = vpop.permute.xlu1 %2666 }
 0x55f   : > { %v2670_v25 = vrot.slane %v2667_v24, 4  ;;  %v2669_v26 = vpop.permute.xlu0 %2668 }
 0x560   : > { %v2671_v27 = vrot.slane %v2669_v26, 4 }
 0x562   : > { %v2672_v28 = vsel %vm615_vm3, %v2670_v25, %v2671_v27  ;;  %v2674_v29 = vsel %vm617_vm4, %v2669_v26, %v2671_v27  ;;  %v3005_v32 = vpop.permute.xlu1 %3004 }
 0x563   : > { %v2673_v34 = vsel %vm617_vm4, %v2667_v24, %v2672_v28  ;;  %2678 = vst.msk [vmem:[#allocation5 + $0x8] sm:$0xf] %vm623_vm5, %v2674_v29  ;;  %v3016_v37 = vmul.f32 %v3005_v32, %v5998_v1  ;;  %v3007_v39 = vpop.permute.xlu0 %3006 }
 0x564   : > { %v3010_v40 = vsel %vm962_vm6, %v3005_v32, %v3007_v39  ;;  %v4868_v41 = vcombine.high %v2673_v34, %v2673_v34  ;;  %v4867_v46 = vcombine.low %v2673_v34, %v2673_v34 }
 0x565   : > { %v3017_v43 = vmul.f32 %v3010_v40, %v6001_v2 }
 0x566   : > { %2694 = vrot.lane.b32.xlu0 %v4868_v41, %s5368_s29  ;;  %v3009_v45 = vpop.permute.xlu1 %3008  ;;  %v2754_v19 = vsel %vm615_vm3, %v4867_v46, 0 }
 0x567   : > { %v4993_v44 = vpack.c.bf16 %v3017_v43, %v3016_v37  ;;  %v3011_v36 = vsel %vm962_vm6, %v3007_v39, %v3009_v45  ;;  %v3019_v48 = vmul.f32 %v3009_v45, %v5995_v63  ;;  %v3384_v49 = vpop.permute.xlu0 %3383  ;;  %v2679_v37 = vld [vmem:[%s6474_s3] sm:$0xf] }
 0x568   : > { %v3018_v47 = vmul.f32 %v3011_v36, %v6005_v7  ;;  %v3395_v51 = vmul.f32 %v3384_v49, %v5998_v1 }
 0x56a   : > { %v5273_v30 = vld [vmem:[#allocation5 + $0x8] ss:$0 sps:$4 sm:$0xff]   ;;  %3034 = vrot.lane.b32.xlu0 %v4993_v44, %s5370_s10  ;;  %v4994_v31 = vpack.c.bf16 %v3019_v48, %v3018_v47  ;;  %v3386_v38 = vpop.permute.xlu1 %3385  ;;  %v4952_v48 = vld [vmem:[%s6479_s8 + $0x4] ss:$8 sm:$0x7] }
 0x56b   : > { %2696 = vrot.lane.b32.xlu1 %v5273_v30, %s5368_s29  ;;  %v3389_v21 = vsel %vm756_vm8, %v3384_v49, %v3386_v38  ;;  %v3388_v55 = vpop.permute.xlu0 %3387 }
 0x56c   : > { %v3396_v53 = vmul.f32 %v3389_v21, %v6001_v2  ;;  %v3390_v58 = vsel %vm756_vm8, %v3386_v38, %v3388_v55  ;;  %v3398_v62 = vmul.f32 %v3388_v55, %v5995_v63  ;;  %v4136_v21 = vrot.slane %v4952_v48, %v5498_v10 }
 0x56d   : > { %v3397_v61 = vmul.f32 %v3390_v58, %v6005_v7 }
 0x56e   : > { %2802 = vrot.lane.b32.xlu0 %v4867_v46, %s5367_s27  ;;  %v4995_v54 = vpack.c.bf16 %v3396_v53, %v3395_v51  ;;  %v4132_v51 = vrot.slane %v4952_v48, %v5504_v12 }
 0x56f   : > { %2692 = vrot.lane.b32.xlu1 %v4867_v46, %s5368_s29  ;;  %v4996_v52 = vpack.c.bf16 %v3398_v62, %v3397_v61  ;;  %v4140_v61 = vrot.slane %v4952_v48, %v5501_v11 }
 0x572   : > { %2806 = vrot.lane.b32.xlu0 %v5273_v30, %s5367_s27 }
 0x573   : > { %3036 = vrot.lane.b32.xlu1 %v4994_v31, %s5370_s10  ;;  %s6489_s10 = smov 30  }
 0x576   : > { %2866 = vrot.lane.b32.xlu0 %v4868_v41, %s5371_s16 }
 0x577   : > { %2804 = vrot.lane.b32.xlu1 %v4868_v41, %s5367_s27 }
 0x57a   : > { %2926 = vrot.lane.b32.xlu0 %v4867_v46, %s5372_s17 }
 0x57b   : > { %2864 = vrot.lane.b32.xlu1 %v4867_v46, %s5371_s16  ;;  %v4874_v46 = vld [vmem:[%s6474_s3 + $0x28] sm:$0xf] }
 0x57e   : > { %2930 = vrot.lane.b32.xlu0 %v5273_v30, %s5372_s17 }
 0x57f   : > { %2868 = vrot.lane.b32.xlu1 %v5273_v30, %s5371_s16 }
 0x582   : > { %3764 = vrot.lane.b32.xlu0 %v3757_v50, %s5373_s23 }
 0x583   : > { %2928 = vrot.lane.b32.xlu1 %v4868_v41, %s5372_s17 }
 0x586   : > { %3413 = vrot.lane.b32.xlu0 %v4995_v54, %s5374_s24 }
 0x587   : > { %3762 = vrot.lane.b32.xlu1 %v3753_v57, %s5373_s23 }
 0x58b   : > { %3766 = vrot.lane.b32.xlu1 %v3761_v60, %s5373_s23  ;;  %s6488_s23 = smov 31  }
 0x58f   : > { %3415 = vrot.lane.b32.xlu1 %v4996_v52, %s5374_s24  ;;  %s4652_s24 = sand.u32 7, %s5343_s30 }
 0x5d8   : > { %v2695_v0 = vpop.permute.xlu0 %2694 }
 0x5dc   : > { %v3035_v3 = vpop.permute.xlu0 %3034 }
 0x5dd   : > { %v2697_v9 = vpop.permute.xlu1 %2696  ;;  %v3038_v17 = vrot.slane %v3035_v3, 4 }
 0x5de   : > { %v2699_v13 = vsel %vm644_vm9, %v2695_v0, %v2697_v9  ;;  %v4877_v9 = vld [vmem:[%s6474_s3 + $0x3c] sm:$0xf] }
 0x5df   : > { %4870 = vmatprep.subr.msk.bf16.mxu1 %vm615_vm3, %v2699_v13 }
 0x5e0   : > { %v2803_v33 = vpop.permute.xlu0 %2802 }
 0x5e1   : > { %v2693_v35 = vpop.permute.xlu1 %2692 }
 0x5e2   : > { %v2698_v56 = vsel %vm644_vm9, %v2693_v35, %v2695_v0 }
 0x5e3   : > { %v2704_v59 = vsel %vm615_vm3, %v2698_v56, 0 }
 0x5e4   : > { %v2807_v5 = vpop.permute.xlu0 %2806  ;;  %2710 = vmatpush1.bf16.msra.mxu1 %v2704_v59  ;;  %v4880_v59 = vld [vmem:[%s6474_s3 + $0x50] sm:$0xf] }
 0x5e5   : > { %v3037_v16 = vpop.permute.xlu1 %3036  ;;  %4872 = vmatprep.subr.msk.bf16.mxu1 %vm615_vm3, %v4868_v41 }
 0x5e6   : > { %v3039_v18 = vrot.slane %v3037_v16, 4 }
 0x5e7   : > { %4871 = vmatmul.mubr.msk.bf16.vlgmr.msra.gmra.mrb[4].mxu1 %vm469_vm0, %v4866_v15  ;;  %v4886_v15 = vld [vmem:[%s6474_s3 + $0x4] sm:$0xf] }
 0x5e8   : > { %v2867_v6 = vpop.permute.xlu0 %2866  ;;  %v3040_v22 = vsel %vm615_vm3, %v3038_v17, %v3039_v18  ;;  %v3042_v23 = vsel %vm994_vm10, %v3037_v16, %v3039_v18  ;;  %2760 = vmatpush1.bf16.msra.mxu1 %v2754_v19  ;;  %2791 = vmatprep.mubr.bf16.mxu1 %v5369_v14 }
 0x5e9   : > { %v3041_v24 = vsel %vm994_vm10, %v3035_v3, %v3040_v22  ;;  %3046 = vst.msk [vmem:[#allocation5 + $0x8] sm:$0xf] %vm623_vm5, %v3042_v23  ;;  %v2805_v25 = vpop.permute.xlu1 %2804 }
 0x5ea   : > { %v2809_v26 = vsel %vm756_vm8, %v2805_v25, %v2807_v5  ;;  %v6098_v27 = vcombine.high %v3041_v24, %v3041_v24  ;;  %v6100_v28 = vcombine.low %v3041_v24, %v3041_v24  ;;  %v2808_v34 = vsel %vm756_vm8, %v2803_v33, %v2805_v25  ;;  %v4891_v25 = vld [vmem:[%s6474_s3 + $0x18] sm:$0xf] }
 0x5eb   : > { %4875 = vmatprep.subr.msk.bf16.mxu1 %vm615_vm3, %v2809_v26  ;;  %v2814_v42 = vsel %vm615_vm3, %v2808_v34, 0 }
 0x5ec   : > { %3121 = vrot.lane.b32.xlu1 %v6098_v27, %s5368_s29  ;;  %3119 = vrot.lane.b32.xlu0 %v6100_v28, %s5368_s29  ;;  %v2927_v32 = vpop.permute.xlu0 %2926  ;;  %v3059_v5 = vsel %vm615_vm3, %v6100_v28, 0 }
 0x5ed   : > { %v2865_v29 = vpop.permute.xlu1 %2864 }
 0x5ee   : > { %v2870_v36 = vsel %vm819_vm11, %v2865_v29, %v2867_v6 }
 0x5ef   : > { %v2876_v31 = vsel %vm615_vm3, %v2870_v36, 0 }
 0x5f0   : > { %3181 = vrot.lane.b32.xlu1 %v6100_v28, %s5367_s27  ;;  %v5274_v39 = vld [vmem:[#allocation5 + $0x8] ss:$0 sps:$4 sm:$0xff]   ;;  %v2931_v43 = vpop.permute.xlu0 %2930 }
 0x5f1   : > { %v2869_v40 = vpop.permute.xlu1 %2868  ;;  %3123 = vrot.lane.b32.xlu0 %v5274_v39, %s5368_s29 }
 0x5f2   : > { %v2871_v41 = vsel %vm819_vm11, %v2867_v6, %v2869_v40 }
 0x5f3   : > { %4873 = vmatmul.mubr.msk.bf16.vlgmr.msra.gmra.mrb[4].mxu1 %vm469_vm0, %v2679_v37 }
 0x5f4   : > { %2820 = vmatpush1.bf16.msra.mxu1 %v2814_v42  ;;  %3185 = vrot.lane.b32.xlu1 %v5274_v39, %s5367_s27  ;;  %v3765_v30 = vpop.permute.xlu0 %3764 }
 0x5f5   : > { %4878 = vmatprep.subr.msk.bf16.mxu1 %vm615_vm3, %v2871_v41  ;;  %v2929_v44 = vpop.permute.xlu1 %2928  ;;  %2851 = vmatprep.mubr.bf16.mxu1 %v5369_v14 }
 0x5f6   : > { %3183 = vrot.lane.b32.xlu0 %v6098_v27, %s5367_s27  ;;  %v2933_v49 = vsel %vm882_vm13, %v2929_v44, %v2931_v43  ;;  %v2932_v52 = vsel %vm882_vm13, %v2927_v32, %v2929_v44  ;;  %v4897_v43 = vld [vmem:[%s6474_s3 + $0x2c] sm:$0xf] }
 0x5f7   : > { %v2938_v11 = vsel %vm615_vm3, %v2932_v52, 0 }
 0x5f8   : > { %3245 = vrot.lane.b32.xlu1 %v6098_v27, %s5371_s16  ;;  %v3414_v20 = vpop.permute.xlu0 %3413 }
 0x5f9   : > { %v3763_v45 = vpop.permute.xlu1 %3762  ;;  %v3417_v55 = vrot.slane %v3414_v20, 4 }
 0x5fa   : > { %3243 = vrot.lane.b32.xlu0 %v6100_v28, %s5371_s16  ;;  %v3768_v38 = vsel %vm1726_vm12, %v3763_v45, %v3765_v30  ;;  %v3774_v53 = vmul.f32 %v3763_v45, %v5998_v1 }
 0x5fb   : > { %v3775_v54 = vmul.f32 %v3768_v38, %v6001_v2 }
 0x5fc   : > { %3305 = vrot.lane.b32.xlu1 %v6100_v28, %s5372_s17 }
 0x5fd   : > { %v3767_v47 = vpop.permute.xlu1 %3766  ;;  %v4997_v12 = vpack.c.bf16 %v3775_v54, %v3774_v53  ;;  %v4900_v54 = vld [vmem:[%s6474_s3 + $0x40] sm:$0xf] }
 0x5fe   : > { %3247 = vrot.lane.b32.xlu0 %v5274_v39, %s5371_s16  ;;  %v3769_v60 = vsel %vm1726_vm12, %v3765_v30, %v3767_v47  ;;  %v3777_v3 = vmul.f32 %v3767_v47, %v5995_v63 }
 0x5ff   : > { %4876 = vmatmul.mubr.msk.bf16.vlgmr.msra.gmra.mrb[4].mxu1 %vm469_vm0, %v4874_v46  ;;  %v3776_v0 = vmul.f32 %v3769_v60, %v6005_v7 }
 0x600   : > { %2882 = vmatpush1.bf16.msra.mxu1 %v2876_v31  ;;  %3309 = vrot.lane.b32.xlu1 %v5274_v39, %s5372_s17 }
 0x601   : > { %4881 = vmatprep.subr.msk.bf16.mxu1 %vm615_vm3, %v2933_v49  ;;  %v3416_v50 = vpop.permute.xlu1 %3415  ;;  %2913 = vmatprep.mubr.bf16.mxu1 %v5369_v14  ;;  %v4998_v33 = vpack.c.bf16 %v3777_v3, %v3776_v0  ;;  %v4903_v0 = vld [vmem:[%s6474_s3 + $0x54] sm:$0xf] }
 0x602   : > { %v3418_v57 = vrot.slane %v3416_v50, 4  ;;  %3307 = vrot.lane.b32.xlu0 %v6098_v27, %s5372_s17 }
 0x604   : > { %v3419_v58 = vsel %vm615_vm3, %v3417_v55, %v3418_v57  ;;  %v3421_v10 = vsel %vm1376_vm14, %v3416_v50, %v3418_v57  ;;  %4143 = vrot.lane.b32.xlu1 %v4136_v21, %s6487_s19 }
 0x605   : > { %3425 = vst.msk [vmem:[#allocation5 + $0x8] sm:$0xf] %vm623_vm5, %v3421_v10  ;;  %v3420_v62 = vsel %vm1376_vm14, %v3414_v20, %v3419_v58 }
 0x606   : > { %4141 = vrot.lane.b32.xlu0 %v4132_v51, %s6487_s19  ;;  %v6165_v13 = vcombine.low %v3420_v62, %v3420_v62  ;;  %v6175_v56 = vcombine.high %v3420_v62, %v3420_v62 }
 0x608   : > { %3792 = vrot.lane.b32.xlu1 %v4997_v12, %s6488_s23 }
 0x60a   : > { %4145 = vrot.lane.b32.xlu0 %v4140_v61, %s6487_s19 }
 0x60b   : > { %4879 = vmatmul.mubr.msk.bf16.vlgmr.msra.gmra.mrb[4].mxu1 %vm469_vm0, %v4877_v9 }
 0x60c   : > { %2944 = vmatpush1.bf16.msra.mxu1 %v2938_v11  ;;  %3498 = vrot.lane.b32.xlu1 %v6165_v13, %s5368_s29  ;;  %v5275_v35 = vld [vmem:[#allocation5 + $0x8] ss:$0 sps:$4 sm:$0xff]  }
 0x60d   : > { %4889 = vmatprep.subr.msk.bf16.mxu1 %vm615_vm3, %v6098_v27  ;;  %2975 = vmatprep.mubr.bf16.mxu1 %v5369_v14 }
 0x60e   : > { %3794 = vrot.lane.b32.xlu0 %v4998_v33, %s6488_s23  ;;  %v3438_v33 = vsel %vm615_vm3, %v6165_v13, 0 }
 0x610   : > { %3502 = vrot.lane.b32.xlu1 %v5275_v35, %s5368_s29 }
 0x612   : > { %3500 = vrot.lane.b32.xlu0 %v6175_v56, %s5368_s29 }
 0x614   : > { %3562 = vrot.lane.b32.xlu1 %v6175_v56, %s5367_s27 }
 0x616   : > { %3560 = vrot.lane.b32.xlu0 %v6165_v13, %s5367_s27 }
 0x617   : > { %4882 = vmatmul.mubr.msk.bf16.vlgmr.msra.gmra.mrb[4].mxu1 %vm469_vm0, %v4880_v59  ;;  %v5380_v59 = vmov 2  }
 0x618   : > { %3065 = vmatpush1.bf16.msra.mxu1 %v3059_v5  ;;  %3622 = vrot.lane.b32.xlu1 %v6165_v13, %s5371_s16  ;;  %v4909_v5 = vld [vmem:[%s6474_s3 + $0x8] sm:$0xf] }
 0x619   : > { %3096 = vmatprep.mubr.bf16.mxu1 %v5369_v14  ;;  %5262 = vset.pattern.permute.xlu1 %v5380_v59 }
 0x61a   : > { %3564 = vrot.lane.b32.xlu0 %v5275_v35, %s5367_s27 }
 0x61c   : > { %3626 = vrot.lane.b32.xlu1 %v5275_v35, %s5371_s16 }
 0x61e   : > { %3624 = vrot.lane.b32.xlu0 %v6175_v56, %s5371_s16 }
 0x620   : > { %3686 = vrot.lane.b32.xlu1 %v6175_v56, %s5372_s17 }
 0x622   : > { %3684 = vrot.lane.b32.xlu0 %v6165_v13, %s5372_s17 }
 0x623   : > { %4890 = vmatmul.mubr.msk.bf16.vlgmr.msra.gmra.mrb[4].mxu1 %vm469_vm0, %v4886_v15 }
 0x624   : > { %3168 = vmatprep.mubr.bf16.mxu1 %v5369_v14 }
 0x626   : > { %3688 = vrot.lane.b32.xlu0 %v5275_v35, %s5372_s17 }
 0x65e   : > { %v3122_v16 = vpop.permute.xlu1 %3121  ;;  %v3120_v17 = vpop.permute.xlu0 %3119 }
 0x65f   : > { %v3125_v19 = vsel %vm644_vm9, %v3120_v17, %v3122_v16 }
 0x660   : > { %v3131_v23 = vsel %vm615_vm3, %v3125_v19, 0 }
 0x662   : > { %v3182_v18 = vpop.permute.xlu1 %3181 }
 0x663   : > { %v3124_v6 = vpop.permute.xlu0 %3123 }
 0x664   : > { %v3126_v22 = vsel %vm644_vm9, %v3122_v16, %v3124_v6 }
 0x665   : > { %4895 = vmatprep.subr.msk.bf16.mxu1 %vm615_vm3, %v3126_v22  ;;  %v4914_v22 = vld [vmem:[%s6474_s3 + $0x1c] sm:$0xf] }
 0x666   : > { %v3186_v24 = vpop.permute.xlu1 %3185  ;;  %3137 = vmatpush1.bf16.msra.mxu1 %v3131_v23 }
 0x668   : > { %v3184_v26 = vpop.permute.xlu0 %3183 }
 0x669   : > { %v3187_v27 = vsel %vm756_vm8, %v3182_v18, %v3184_v26  ;;  %v3188_v28 = vsel %vm756_vm8, %v3184_v26, %v3186_v24  ;;  %4896 = vmatmul.mubr.msk.bf16.vlgmr.msra.gmra.mrb[4].mxu1 %vm469_vm0, %v4891_v25 }
 0x66a   : > { %v3193_v29 = vsel %vm615_vm3, %v3187_v27, 0  ;;  %4898 = vmatprep.subr.msk.bf16.mxu1 %vm615_vm3, %v3188_v28  ;;  %v3246_v32 = vpop.permute.xlu1 %3245  ;;  %3230 = vmatprep.mubr.bf16.mxu1 %v5369_v14  ;;  %v6303_v28 = vpop.f32.mrb[2].mxu1 }
 0x66b   : > { %3199 = vmatpush1.bf16.msra.mxu1 %v3193_v29  ;;  %v6305_v29 = vpop.f32.mrb[3].mxu1 }
 0x66c   : > { %v3244_v34 = vpop.permute.xlu0 %3243 }
 0x66d   : > { %v3249_v42 = vsel %vm819_vm11, %v3244_v34, %v3246_v32  ;;  %v4920_v34 = vld [vmem:[%s6474_s3 + $0x30] sm:$0xf] }
 0x66e   : > { %v3306_v37 = vpop.permute.xlu1 %3305  ;;  %v3255_v30 = vsel %vm615_vm3, %v3249_v42, 0 }
 0x670   : > { %v3248_v39 = vpop.permute.xlu0 %3247 }
 0x671   : > { %v3250_v40 = vsel %vm819_vm11, %v3246_v32, %v3248_v39 }
 0x672   : > { %4901 = vmatprep.subr.msk.bf16.mxu1 %vm615_vm3, %v3250_v40  ;;  %v3310_v41 = vpop.permute.xlu1 %3309 }
 0x674   : > { %v3308_v44 = vpop.permute.xlu0 %3307 }
 0x675   : > { %v3312_v45 = vsel %vm882_vm13, %v3308_v44, %v3310_v41  ;;  %4899 = vmatmul.mubr.msk.bf16.vlgmr.msra.gmra.mrb[4].mxu1 %vm469_vm0, %v4897_v43  ;;  %v3311_v53 = vsel %vm882_vm13, %v3306_v37, %v3308_v44  ;;  %v4923_v43 = vld [vmem:[%s6474_s3 + $0x44] sm:$0xf] }
 0x676   : > { %3261 = vmatpush1.bf16.msra.mxu1 %v3255_v30  ;;  %3292 = vmatprep.mubr.bf16.mxu1 %v5369_v14  ;;  %v4144_v36 = vpop.permute.xlu1 %4143  ;;  %v3317_v10 = vsel %vm615_vm3, %v3311_v53, 0 }
 0x677   : > { %4904 = vmatprep.subr.msk.bf16.mxu1 %vm615_vm3, %v3312_v45  ;;  %v4926_v45 = vld [vmem:[%s6474_s3 + $0x58] sm:$0xf] }
 0x678   : > { %v4142_v46 = vpop.permute.xlu0 %4141 }
 0x679   : > { %v4147_v47 = vsel %vm2108_vm15, %v4142_v46, %v4144_v36  ;;  %v4153_v48 = vmul.f32 %v4142_v46, %v5998_v1 }
 0x67a   : > { %v4154_v31 = vmul.f32 %v4147_v47, %v6001_v2  ;;  %v3793_v50 = vpop.permute.xlu1 %3792 }
 0x67b   : > { %v3796_v57 = vrot.slane %v3793_v50, 4 }
 0x67c   : > { %v4999_v38 = vpack.c.bf16 %v4154_v31, %v4153_v48  ;;  %v4146_v20 = vpop.permute.xlu0 %4145 }
 0x67d   : > { %v4148_v49 = vsel %vm2108_vm15, %v4144_v36, %v4146_v20  ;;  %v4156_v21 = vmul.f32 %v4146_v20, %v5995_v63  ;;  %v4932_v36 = vld [vmem:[%s6474_s3 + $0xc] sm:$0xf] }
 0x67e   : > { %v4155_v51 = vmul.f32 %v4148_v49, %v6005_v7  ;;  %4171 = vrot.lane.b32.xlu1 %v4999_v38, %s6489_s10  ;;  %v3499_v52 = vpop.permute.xlu1 %3498 }
 0x680   : > { %v5000_v1 = vpack.c.bf16 %v4156_v21, %v4155_v51  ;;  %v3795_v55 = vpop.permute.xlu0 %3794 }
 0x681   : > { %v3797_v58 = vrot.slane %v3795_v55, 4  ;;  %4902 = vmatmul.mubr.msk.bf16.vlgmr.msra.gmra.mrb[4].mxu1 %vm469_vm0, %v4900_v54 }
 0x682   : > { %4173 = vrot.lane.b32.xlu0 %v5000_v1, %s6489_s10  ;;  %3323 = vmatpush1.bf16.msra.mxu1 %v3317_v10  ;;  %v3503_v11 = vpop.permute.xlu1 %3502 }
 0x683   : > { %v3798_v63 = vsel %vm615_vm3, %v3796_v57, %v3797_v58  ;;  %v3800_v60 = vsel %vm1758_vm2, %v3795_v55, %v3797_v58  ;;  %3354 = vmatprep.mubr.bf16.mxu1 %v5369_v14  ;;  %4912 = vmatprep.subr.msk.bf16.mxu1 %vm615_vm3, %v6175_v56 }
 0x684   : > { %v3799_v12 = vsel %vm1758_vm2, %v3793_v50, %v3798_v63  ;;  %3804 = vst.msk [vmem:[#allocation5 + $0x8] sm:$0xf] %vm623_vm5, %v3800_v60  ;;  %v3501_v9 = vpop.permute.xlu0 %3500  ;;  %v4937_v60 = vld [vmem:[%s6474_s3 + $0x20] sm:$0xf] }
 0x685   : > { %v6252_v61 = vcombine.high %v3799_v12, %v3799_v12  ;;  %v6254_v62 = vcombine.low %v3799_v12, %v3799_v12  ;;  %v3505_v35 = vsel %vm644_vm9, %v3501_v9, %v3503_v11  ;;  %v3504_v13 = vsel %vm644_vm9, %v3499_v52, %v3501_v9 }
 0x686   : > { %v3510_v16 = vsel %vm615_vm3, %v3504_v13, 0  ;;  %v3563_v17 = vpop.permute.xlu1 %3562 }
 0x687   : > { %3879 = vrot.lane.b32.xlu0 %v6252_v61, %s5368_s29  ;;  %3877 = vrot.lane.b32.xlu1 %v6254_v62, %s5368_s29  ;;  %v3817_v30 = vsel %vm615_vm3, %v6254_v62, 0 }
 0x688   : > { %v3561_v56 = vpop.permute.xlu0 %3560 }
 0x689   : > { %v3566_v6 = vsel %vm756_vm8, %v3561_v56, %v3563_v17  ;;  %v4943_v56 = vld [vmem:[%s6474_s3 + $0x34] sm:$0xf] }
 0x68a   : > { %v3623_v19 = vpop.permute.xlu1 %3622  ;;  %v3572_v24 = vsel %vm615_vm3, %v3566_v6, 0 }
 0x68b   : > { %3939 = vrot.lane.b32.xlu0 %v6254_v62, %s5367_s27  ;;  %v5276_v3 = vld [vmem:[#allocation5 + $0x8] ss:$0 sps:$4 sm:$0xff]  }
 0x68c   : > { %3881 = vrot.lane.b32.xlu1 %v5276_v3, %s5368_s29  ;;  %v3565_v15 = vpop.permute.xlu0 %3564 }
 0x68d   : > { %4905 = vmatmul.mubr.msk.bf16.vlgmr.msra.gmra.mrb[4].mxu1 %vm469_vm0, %v4903_v0  ;;  %v3567_v18 = vsel %vm756_vm8, %v3563_v17, %v3565_v15  ;;  %v5381_v17 = vmov 4  }
 0x68e   : > { %3444 = vmatpush1.bf16.msra.mxu1 %v3438_v33  ;;  %3475 = vmatprep.mubr.bf16.mxu1 %v5369_v14  ;;  %v3627_v25 = vpop.permute.xlu1 %3626 }
 0x68f   : > { %3943 = vrot.lane.b32.xlu0 %v5276_v3, %s5367_s27  ;;  %4918 = vmatprep.subr.msk.bf16.mxu1 %vm615_vm3, %v3505_v35 }
 0x690   : > { %3941 = vrot.lane.b32.xlu1 %v6252_v61, %s5367_s27  ;;  %v3625_v23 = vpop.permute.xlu0 %3624 }
 0x691   : > { %v3629_v26 = vsel %vm819_vm11, %v3625_v23, %v3627_v25  ;;  %v3628_v32 = vsel %vm819_vm11, %v3623_v19, %v3625_v23  ;;  %v4946_v19 = vld [vmem:[%s6474_s3 + $0x48] sm:$0xf]  ;;  %v4949_v23 = vld [vmem:[%s6474_s3 + $0x5c] sm:$0xf]  ;;  %v4955_v25 = vld [vmem:[%s6474_s3 + $0x10] sm:$0xf] }
 0x692   : > { %v3634_v39 = vsel %vm615_vm3, %v3628_v32, 0  ;;  %v3687_v40 = vpop.permute.xlu1 %3686 }
 0x693   : > { %4003 = vrot.lane.b32.xlu0 %v6252_v61, %s5371_s16 }
 0x694   : > { %4001 = vrot.lane.b32.xlu1 %v6254_v62, %s5371_s16  ;;  %v3685_v27 = vpop.permute.xlu0 %3684 }
 0x695   : > { %v3690_v42 = vsel %vm882_vm13, %v3685_v27, %v3687_v40 }
 0x696   : > { %v3696_v44 = vsel %vm615_vm3, %v3690_v42, 0 }
 0x697   : > { %4063 = vrot.lane.b32.xlu0 %v6254_v62, %s5372_s17 }
 0x698   : > { %4005 = vrot.lane.b32.xlu1 %v5276_v3, %s5371_s16  ;;  %v3689_v37 = vpop.permute.xlu0 %3688 }
 0x699   : > { %4913 = vmatmul.mubr.msk.bf16.vlgmr.msra.gmra.mrb[4].mxu1 %vm469_vm0, %v4909_v5  ;;  %v3691_v41 = vsel %vm882_vm13, %v3687_v40, %v3689_v37 }
 0x69a   : > { %3516 = vmatpush1.bf16.msra.mxu1 %v3510_v16  ;;  %3547 = vmatprep.mubr.bf16.mxu1 %v5369_v14  ;;  %v5318_v16 = vld [vmem:[%s6477_s6] sm:$0xff] }
 0x69b   : > { %4067 = vrot.lane.b32.xlu0 %v5276_v3, %s5372_s17  ;;  %4921 = vmatprep.subr.msk.bf16.mxu1 %vm615_vm3, %v3567_v18 }
 0x69c   : > { %4065 = vrot.lane.b32.xlu1 %v6252_v61, %s5372_s17 }
 0x6a5   : > { %4919 = vmatmul.mubr.msk.bf16.vlgmr.msra.gmra.mrb[4].mxu1 %vm469_vm0, %v4914_v22  ;;  %v5382_v22 = vmov 6  }
 0x6a6   : > { %3578 = vmatpush1.bf16.msra.mxu1 %v3572_v24  ;;  %3609 = vmatprep.mubr.bf16.mxu1 %v5369_v14 }
 0x6a7   : > { %4924 = vmatprep.subr.msk.bf16.mxu1 %vm615_vm3, %v3629_v26  ;;  %v5383_v26 = vmov 3  }
 0x6a8   : > { %5263 = vset.pattern.permute.xlu0 %v5383_v26 }
 0x6b1   : > { %4922 = vmatmul.mubr.msk.bf16.vlgmr.msra.gmra.mrb[4].mxu1 %vm469_vm0, %v4920_v34 }
 0x6b2   : > { %3640 = vmatpush1.bf16.msra.mxu1 %v3634_v39  ;;  %3671 = vmatprep.mubr.bf16.mxu1 %v5369_v14 }
 0x6b3   : > { %4927 = vmatprep.subr.msk.bf16.mxu1 %vm615_vm3, %v3691_v41 }
 0x6bd   : > { %4925 = vmatmul.mubr.msk.bf16.vlgmr.msra.gmra.mrb[4].mxu1 %vm469_vm0, %v4923_v43  ;;  %v4960_v43 = vld [vmem:[%s6474_s3 + $0x24] sm:$0xf] }
 0x6be   : > { %3702 = vmatpush1.bf16.msra.mxu1 %v3696_v44  ;;  %3733 = vmatprep.mubr.bf16.mxu1 %v5369_v14 }
 0x6bf   : > { %4935 = vmatprep.subr.msk.bf16.mxu1 %vm615_vm3, %v6252_v61 }
 0x6c9   : > { %4928 = vmatmul.mubr.msk.bf16.vlgmr.msra.gmra.mrb[4].mxu1 %vm469_vm0, %v4926_v45 }
 0x6ca   : > { %3823 = vmatpush1.bf16.msra.mxu1 %v3817_v30  ;;  %3854 = vmatprep.mubr.bf16.mxu1 %v5369_v14 }
 0x6d5   : > { %4936 = vmatmul.mubr.msk.bf16.vlgmr.msra.gmra.mrb[4].mxu1 %vm469_vm0, %v4932_v36 }
 0x6d6   : > { %3926 = vmatprep.mubr.bf16.mxu1 %v5369_v14 }
 0x6f0   : > { %v4172_v46 = vpop.permute.xlu1 %4171 }
 0x6f1   : > { %v4175_v48 = vrot.slane %v4172_v46, 4 }
 0x6f4   : > { %v4174_v47 = vpop.permute.xlu0 %4173 }
 0x6f5   : > { %v4176_v31 = vrot.slane %v4174_v47, 4 }
 0x6f7   : > { %v4177_v38 = vsel %vm615_vm3, %v4175_v48, %v4176_v31  ;;  %v4179_v20 = vsel %vm2140_vm7, %v4174_v47, %v4176_v31 }
 0x6f8   : > { %v4178_v49 = vsel %vm2140_vm7, %v4172_v46, %v4177_v38  ;;  %4183 = vst.msk [vmem:[#allocation5 + $0x8] sm:$0xf] %vm623_vm5, %v4179_v20 }
 0x6f9   : > { %v3880_v21 = vpop.permute.xlu0 %3879  ;;  %v4962_v50 = vcombine.high %v4178_v49, %v4178_v49  ;;  %v6341_v51 = vcombine.low %v4178_v49, %v4178_v49  ;;  %v3878_v53 = vpop.permute.xlu1 %3877  ;;  %v4966_v49 = vld [vmem:[%s6474_s3 + $0x38] sm:$0xf] }
 0x6fa   : > { %v3883_v1 = vsel %vm644_vm9, %v3878_v53, %v3880_v21 }
 0x6fb   : > { %4258 = vrot.lane.b32.xlu0 %v4962_v50, %s5368_s29  ;;  %4256 = vrot.lane.b32.xlu1 %v6341_v51, %s5368_s29  ;;  %v3889_v10 = vsel %vm615_vm3, %v3883_v1, 0  ;;  %v4196_v24 = vsel %vm615_vm3, %v6341_v51, 0  ;;  %v4969_v1 = vld [vmem:[%s6474_s3 + $0x4c] sm:$0xf] }
 0x6fd   : > { %v3940_v54 = vpop.permute.xlu0 %3939 }
 0x6fe   : > { %v3882_v55 = vpop.permute.xlu1 %3881 }
 0x6ff   : > { %4318 = vrot.lane.b32.xlu0 %v6341_v51, %s5367_s27  ;;  %v5277_v57 = vld [vmem:[#allocation5 + $0x8] ss:$0 sps:$4 sm:$0xff]   ;;  %v3884_v58 = vsel %vm644_vm9, %v3880_v21, %v3882_v55 }
 0x700   : > { %4260 = vrot.lane.b32.xlu1 %v5277_v57, %s5368_s29  ;;  %4941 = vmatprep.subr.msk.bf16.mxu1 %vm615_vm3, %v3884_v58 }
 0x701   : > { %v3944_v63 = vpop.permute.xlu0 %3943  ;;  %3895 = vmatpush1.bf16.msra.mxu1 %v3889_v10 }
 0x702   : > { %v3942_v12 = vpop.permute.xlu1 %3941 }
 0x703   : > { %4322 = vrot.lane.b32.xlu0 %v5277_v57, %s5367_s27  ;;  %v3945_v61 = vsel %vm756_vm8, %v3940_v54, %v3942_v12  ;;  %v3946_v62 = vsel %vm756_vm8, %v3942_v12, %v3944_v63 }
 0x704   : > { %v3951_v52 = vsel %vm615_vm3, %v3945_v61, 0  ;;  %4320 = vrot.lane.b32.xlu1 %v4962_v50, %s5367_s27  ;;  %4942 = vmatmul.mubr.msk.bf16.vlgmr.msra.gmra.mrb[4].mxu1 %vm469_vm0, %v4937_v60 }
 0x705   : > { %v4004_v0 = vpop.permute.xlu0 %4003  ;;  %4944 = vmatprep.subr.msk.bf16.mxu1 %vm615_vm3, %v3946_v62  ;;  %3988 = vmatprep.mubr.bf16.mxu1 %v5369_v14 }
 0x706   : > { %3957 = vmatpush1.bf16.msra.mxu1 %v3951_v52  ;;  %v4002_v3 = vpop.permute.xlu1 %4001 }
 0x707   : > { %4382 = vrot.lane.b32.xlu0 %v4962_v50, %s5371_s16  ;;  %v4007_v35 = vsel %vm819_vm11, %v4002_v3, %v4004_v0 }
 0x708   : > { %4380 = vrot.lane.b32.xlu1 %v6341_v51, %s5371_s16  ;;  %v4013_v15 = vsel %vm615_vm3, %v4007_v35, 0 }
 0x709   : > { %v4064_v9 = vpop.permute.xlu0 %4063 }
 0x70a   : > { %v4006_v11 = vpop.permute.xlu1 %4005 }
 0x70b   : > { %4442 = vrot.lane.b32.xlu0 %v6341_v51, %s5372_s17  ;;  %v4008_v33 = vsel %vm819_vm11, %v4004_v0, %v4006_v11 }
 0x70c   : > { %4384 = vrot.lane.b32.xlu1 %v5277_v57, %s5371_s16  ;;  %4947 = vmatprep.subr.msk.bf16.mxu1 %vm615_vm3, %v4008_v33 }
 0x70d   : > { %v4068_v13 = vpop.permute.xlu0 %4067 }
 0x70e   : > { %v4066_v59 = vpop.permute.xlu1 %4065 }
 0x70f   : > { %4446 = vrot.lane.b32.xlu0 %v5277_v57, %s5372_s17  ;;  %v4070_v5 = vsel %vm882_vm13, %v4066_v59, %v4068_v13  ;;  %v4069_v18 = vsel %vm882_vm13, %v4064_v9, %v4066_v59  ;;  %v4972_v57 = vld [vmem:[%s6474_s3 + $0x60] sm:$0xf] }
 0x710   : > { %4444 = vrot.lane.b32.xlu1 %v4962_v50, %s5372_s17  ;;  %4945 = vmatmul.mubr.msk.bf16.vlgmr.msra.gmra.mrb[4].mxu1 %vm469_vm0, %v4943_v56  ;;  %v4075_v6 = vsel %vm615_vm3, %v4069_v18, 0  ;;  %s4649_s17 = sshra.s32 %s5343_s30, 3 }
 0x711   : > { %4019 = vmatpush1.bf16.msra.mxu1 %v4013_v15  ;;  %4050 = vmatprep.mubr.bf16.mxu1 %v5369_v14  ;;  %s5001_s28 = sshll.u32 %s4649_s17, 4 }
 0x712   : > { %4950 = vmatprep.subr.msk.bf16.mxu1 %vm615_vm3, %v4070_v5  ;;  %s4655_s18 = sadd.s32 %s5001_s28, %s4652_s24 }
 0x713   : > { %4509 = vperm.xlu0 %5263, %v5318_v16   ;;  %s4656_s20 = scalar_lea.vmem %s5472_s21, %s4655_s18 }
 0x714   : > { %4503 = vperm.xlu1 %5262, %v5318_v16  }
 0x717   : > { %5266 = vset.pattern.permute.xlu0 %v5381_v17 }
 0x718   : > { %5264 = vset.pattern.permute.xlu1 %v5381_v17 }
 0x719   : > { %4517 = vperm.xlu1 %5264, %v5318_v16  }
 0x71c   : > { %4948 = vmatmul.mubr.msk.bf16.vlgmr.msra.gmra.mrb[4].mxu1 %vm469_vm0, %v4946_v19 }
 0x71d   : > { %4081 = vmatpush1.bf16.msra.mxu1 %v4075_v6  ;;  %5265 = vset.pattern.permute.xlu1 %v5382_v22 }
 0x71e   : > { %4958 = vmatprep.subr.msk.bf16.mxu1 %vm615_vm3, %v4962_v50  ;;  %2527 = vperm.xlu1 %5265, %v5318_v16  }
 0x71f   : > { %4112 = vmatprep.mubr.bf16.mxu1 %v5369_v14 }
 0x728   : > { %4951 = vmatmul.mubr.msk.bf16.vlgmr.msra.gmra.mrb[4].mxu1 %vm469_vm0, %v4949_v23 }
 0x729   : > { %4202 = vmatpush1.bf16.msra.mxu1 %v4196_v24  ;;  %4233 = vmatprep.mubr.bf16.mxu1 %v5369_v14 }
 0x734   : > { %4959 = vmatmul.mubr.msk.bf16.vlgmr.msra.gmra.mrb[4].mxu1 %vm469_vm0, %v4955_v25 }
 0x735   : > { %4305 = vmatprep.mubr.bf16.mxu1 %v5369_v14 }
 0x76d   : > { %v4259_v27 = vpop.permute.xlu0 %4258  ;;  %v4257_v32 = vpop.permute.xlu1 %4256 }
 0x76e   : > { %v4262_v37 = vsel %vm644_vm9, %v4257_v32, %v4259_v27 }
 0x76f   : > { %v4268_v41 = vsel %vm615_vm3, %v4262_v37, 0 }
 0x771   : > { %v4319_v34 = vpop.permute.xlu0 %4318 }
 0x772   : > { %v4261_v39 = vpop.permute.xlu1 %4260 }
 0x773   : > { %v4263_v40 = vsel %vm644_vm9, %v4259_v27, %v4261_v39 }
 0x774   : > { %4964 = vmatprep.subr.msk.bf16.mxu1 %vm615_vm3, %v4263_v40 }
 0x775   : > { %v4323_v42 = vpop.permute.xlu0 %4322  ;;  %4274 = vmatpush1.bf16.msra.mxu1 %v4268_v41 }
 0x776   : > { %v4321_v44 = vpop.permute.xlu1 %4320 }
 0x777   : > { %v4324_v45 = vsel %vm756_vm8, %v4319_v34, %v4321_v44  ;;  %v4325_v30 = vsel %vm756_vm8, %v4321_v44, %v4323_v42 }
 0x778   : > { %v4330_v36 = vsel %vm615_vm3, %v4324_v45, 0  ;;  %4965 = vmatmul.mubr.msk.bf16.vlgmr.msra.gmra.mrb[4].mxu1 %vm469_vm0, %v4960_v43  ;;  %4967 = vmatprep.subr.msk.bf16.mxu1 %vm615_vm3, %v4325_v30 }
 0x779   : > { %v4383_v46 = vpop.permute.xlu0 %4382  ;;  %4336 = vmatpush1.bf16.msra.mxu1 %v4330_v36  ;;  %4367 = vmatprep.mubr.bf16.mxu1 %v5369_v14 }
 0x77a   : > { %v4381_v47 = vpop.permute.xlu1 %4380 }
 0x77b   : > { %v4386_v20 = vsel %vm819_vm11, %v4381_v47, %v4383_v46  ;;  %v5319_v47 = vld [vmem:[#allocation3] sm:$0xff] }
 0x77c   : > { %v4392_v53 = vsel %vm615_vm3, %v4386_v20, 0 }
 0x77d   : > { %v4443_v48 = vpop.permute.xlu0 %4442 }
 0x77e   : > { %v4385_v31 = vpop.permute.xlu1 %4384 }
 0x77f   : > { %v4387_v38 = vsel %vm819_vm11, %v4383_v46, %v4385_v31 }
 0x780   : > { %4970 = vmatprep.subr.msk.bf16.mxu1 %vm615_vm3, %v4387_v38  ;;  %v5320_v38 = vld [vmem:[#allocation3 + $0x8] sm:$0xff] }
 0x781   : > { %v4447_v50 = vpop.permute.xlu0 %4446 }
 0x782   : > { %v4445_v21 = vpop.permute.xlu1 %4444 }
 0x783   : > { %v4449_v51 = vsel %vm882_vm13, %v4445_v21, %v4447_v50  ;;  %v4448_v54 = vsel %vm882_vm13, %v4443_v48, %v4445_v21 }
 0x784   : > { %4968 = vmatmul.mubr.msk.bf16.vlgmr.msra.gmra.mrb[4].mxu1 %vm469_vm0, %v4966_v49  ;;  %v4454_v55 = vsel %vm615_vm3, %v4448_v54, 0  ;;  %v4552_v54 = vld [vmem:[%s6478_s7] sm:$0x1] }
 0x785   : > { %4398 = vmatpush1.bf16.msra.mxu1 %v4392_v53  ;;  %4429 = vmatprep.mubr.bf16.mxu1 %v5369_v14 }
 0x786   : > { %4973 = vmatprep.subr.msk.bf16.mxu1 %vm615_vm3, %v4449_v51 }
 0x790   : > { %4971 = vmatmul.mubr.msk.bf16.vlgmr.msra.gmra.mrb[4].mxu1 %vm469_vm0, %v4969_v1  ;;  %v5384_v1 = vmov 1966171168  }
 0x791   : > { %4460 = vmatpush1.bf16.msra.mxu1 %v4454_v55  ;;  %4491 = vmatprep.mubr.bf16.mxu1 %v5369_v14  ;;  %v4631_v55 = vunpack.c.l.s4 %v5384_v1 }
 0x792   : > { %v4510_v63 = vpop.permute.xlu0 %4509 }
 0x793   : > { %v4504_v58 = vpop.permute.xlu1 %4503 }
 0x794   : > { %v4506_v61 = vmul.f32 %v4504_v58, %v6001_v2  ;;  %v4507_v3 = vmul.f32 %v4504_v58, %v6005_v7 }
 0x798   : > { %v4518_v10 = vpop.permute.xlu1 %4517 }
 0x799   : > { %v4520_v62 = vmul.f32 %v4518_v10, %v6001_v2  ;;  %v4521_v14 = vmul.f32 %v4518_v10, %v6005_v7 }
 0x79c   : > { %4974 = vmatmul.mubr.msk.bf16.vlgmr.msra.gmra.mrb[4].mxu1 %vm469_vm0, %v4972_v57  ;;  %v4632_v57 = vunpack.c.0.s8 %v4631_v55 }
 0x79d   : > { %v2528_v60 = vpop.permute.xlu1 %2527 }
 0x79e   : > { %v2600_v33 = vadd.f32 %v6303_v28, %v2528_v60  ;;  %v2602_v13 = vadd.f32 %v6305_v29, %v2528_v60  ;;  %v4635_v10 = vsub.s32 %v4632_v57, %v5490_v8 }
 0x7a0   : > { %v2604_v2 = vsub.f32 0.0, %v2600_v33  ;;  %v2605_v19 = vsub.f32 0.0, %v2602_v13 }
 0x7a2   : > { %v2606_v7 = vmul.f32 1.442695, %v2604_v2  ;;  %v2608_v25 = vmul.f32 1.442695, %v2605_v19 }
 0x86f   : > { %v4493_v12 = vpop.f32.mrb[4].mxu1 }
 0x870   : > { %v4512_v52 = vmul.f32 %v4510_v63, %v4493_v12  ;;  %v4495_v0 = vpop.f32.mrb[5].mxu1  ;;  %v4522_v35 = vmul.f32 %v4520_v62, %v4493_v12 }
 0x871   : > { %v4513_v9 = vmul.f32 %v4510_v63, %v4495_v0  ;;  %v4497_v11 = vpop.f32.mrb[6].mxu1  ;;  %v4523_v15 = vmul.f32 %v4521_v14, %v4495_v0 }
 0x872   : > { %v4514_v56 = vadd.f32 %v4512_v52, %v4506_v61  ;;  %v4498_v59 = vpop.f32.mrb[7].mxu1 }
 0x873   : > { %v4515_v5 = vadd.f32 %v4513_v9, %v4507_v3 }
 0x874   : > { %v4524_v16 = vadd.f32 %v4522_v35, %v4514_v56 }
 0x875   : > { %v4525_v17 = vadd.f32 %v4523_v15, %v4515_v5 }
 0x876   : > { %v4528_v18 = vand.u32 2147483647, %v4524_v16  ;;  %v4526_v43 = vmax.f32 %v4524_v16, 0.0 }
 0x877   : > { %v4529_v6 = vand.u32 2147483647, %v4525_v17  ;;  %v4527_v45 = vmax.f32 %v4525_v17, 0.0 }
 0x878   : > { %v4530_v22 = vsub.f32 0.0, %v4528_v18 }
 0x879   : > { %v4531_v23 = vsub.f32 0.0, %v4529_v6 }
 0x87a   : > { %v4532_v24 = vmul.f32 1.442695, %v4530_v22 }
 0x87b   : > { %v4534_v26 = vmul.f32 1.442695, %v4531_v23 }
 0x87c   : > { %5302 = vpow2.f32 %v4532_v24 }
 0x87d   : > { %5304 = vpow2.f32 %v4534_v26 }
 0x87e   : > { %5306 = vpow2.f32 %v2606_v7 }
 0x87f   : > { %5308 = vpow2.f32 %v2608_v25 }
 0x886   : > { %v5303_v28 = vpop.eup %5302 }
 0x887   : > { %v5305_v29 = vpop.eup %5304  ;;  %v4536_v27 = vadd.f32 1.0, %v5303_v28 }
 0x888   : > { %v5307_v32 = vpop.eup %5306  ;;  %v4537_v34 = vadd.f32 1.0, %v5305_v29 }
 0x889   : > { %v5309_v37 = vpop.eup %5308  ;;  %5310 = vlog2.f32 %v4536_v27  ;;  %v2610_v39 = vadd.f32 1.0, %v5307_v32 }
 0x88a   : > { %5312 = vlog2.f32 %v4537_v34  ;;  %v2611_v40 = vadd.f32 1.0, %v5309_v37 }
 0x88b   : > { %5314 = vrcp.f32 %v2610_v39 }
 0x88c   : > { %5316 = vrcp.f32 %v2611_v40 }
 0x893   : > { %v5311_v41 = vpop.eup %5310 }
 0x894   : > { %v5313_v42 = vpop.eup %5312  ;;  %v4539_v44 = vmul.f32 0.6931472, %v5311_v41 }
 0x895   : > { %v4541_v30 = vmul.f32 0.6931472, %v5313_v42  ;;  %v5315_v31 = vpop.eup %5314 }
 0x896   : > { %v4542_v36 = vadd.f32 %v4539_v44, %v4526_v43  ;;  %v5317_v49 = vpop.eup %5316 }
 0x897   : > { %v4543_v46 = vadd.f32 %v4541_v30, %v4527_v45 }
 0x898   : > { %v4544_v48 = vsub.f32 %v4542_v36, %v5319_v47 }
 0x899   : > { %v4545_v20 = vsub.f32 %v4543_v46, %v5320_v38 }
 0x89a   : > { %v4546_v21 = vmul.f32 %v5315_v31, %v4544_v48 }
 0x89b   : > { %v4547_v50 = vmul.f32 %v5317_v49, %v4545_v20 }
 0x89c   : > { %v4548_v51 = vadd.f32 %v5319_v47, %v4546_v21 }
 0x89d   : > { %v4549_v53 = vadd.f32 %v5320_v38, %v4547_v50 }
 0x89e   : > { %4550 = vst [vmem:[#allocation3] sm:$0xff] %v4548_v51 }
 0x89f   : > { %4551 = vst [vmem:[#allocation3 + $0x8] sm:$0xff] %v4549_v53  ;;  %4556 = vmatprep.subr.mxu0 %v4549_v53 }
 0x8a0   : > { %4557 = vmatpush1.msra.mxu0 %v4548_v51 }
 0x8a1   : > { %4975 = vmatmul.mubr.msk.f32.vlgmr.msra.gmra.mrb[2].mxu0 %vm469_vm0, %v4552_v54 }
 0x974   : > { %v4622_v58 = vpop.f32.mrb[2].mxu0 }
 0x975   : > { %v4624_v63 = vpop.f32.mrb[3].mxu0 }
 0x976   : > { %v4629_v60 = vcombine.low %v4622_v58, %v4624_v63 }
 0x978   : > { %v4636_v12 = vrot.slane %v4629_v60, %v4635_v10 }
 0x97a   : > { %v4643_v61 = vrot.slane %v4636_v12, %v4635_v10 }
 0x97c   : > { %4657 = vst.msk [vmem:[%s4656_s20] ss:$8 sm:$0x3] %vm4647_vm1, %v4643_v61 }
 0x97d PF: > { %s19_s13 = sadd.s32 1, %s5359_s13   ;;  %s6490_s30 = smov %s5351_s11 }
 0x97e   : > { %p16_p8 = scmp.ge.s32.totalorder %s19_s13, 18   ;;  %s6491_s10 = smov %s5355_s12 }
 0x97f   : > { %s6492_s11 = smov %s6495_s14  ;;  %s6493_s12 = smov %s6499_s15 }
 0x980   :  { %18 = sbr.rel (!%p16_p8) target bundleno = 3 (0x3), region = 143 }

</bundles_post_ra>
